<compile_context>
chip_gen: v6e
topology: v6e:2x2x1
jax: 0.10.0
libtpu: 0.0.40
codegen_flags: <defaults>
</compile_context>

<pallas_src>
import jax
import jax.numpy as jnp
import numpy as np
from jax.experimental import pallas as pl
from jax.experimental.pallas import tpu as pltpu

# ----- model config (small, consistent with the module's forward) -----------
VOCAB = 50
EMBED = 8
NUM_CLASSES = 4
C1, C2 = 16, 32          # conv channel counts from the module
K = 3                    # conv kernel size == pool size
N, L = 2, 32             # batch, sequence length

# derived static sizes (PyTorch floor semantics for MaxPool1d)
L1 = L - (K - 1)         # 30  after Conv1d(E, 16, 3)
P1 = L1 // K             # 10  after MaxPool1d(3)
L2 = P1 - (K - 1)        # 8   after Conv1d(16, 32, 3)
P2 = L2 // K             # 2   after MaxPool1d(3); global max then covers rows [0, 3*P2)

# batch tiling: NB batch rows per grid step (== N here -> a single step).
# If N is scaled up with NB < N, keep NB a multiple of 8 (out BlockSpec sublane rule).
NB = N
R = NB * L2              # conv2 output rows per grid step (16)

_HI = jax.lax.Precision.HIGHEST

# ---- static sanity checks tying the selection matrices to the config --------
assert N % NB == 0
assert L % 8 == 0, "per-row stride must stay sublane aligned"
assert 0 < 3 * P2 <= L2 and (L2 - 3 * P2) <= 3 * P2, "duplicate-row trick needs enough real rows"
assert (3 * P2 - 1) + (K - 1) < P1, "conv2 taps must stay inside the pooled length"
assert 3 * ((3 * P2 - 1) + (K - 1)) + 2 * (K - 1) < L, "selected offsets must stay inside one batch row"


def _build_selection():
    """SEL[k1]: 0/1 matrix of shape (K*K*R, NB*L).

    Row ((k2*K + s)*R + n*L2 + r) of SEL[k1] @ (xe2d @ W1[k1]) is the tap-k1
    contribution to conv1 output at time 3*(r'+k2) + s of batch row n, where
    r' = r for r < 3*P2 and r' = r - 3*P2 for the trailing duplicate rows (so a
    later max over all L2 rows equals the max over the first 3*P2 rows, i.e.
    MaxPool1d(3) + global max pool).  Every selected column stays inside its own
    batch row (stride L = 32, 8-aligned), so no boundary windows are ever used.
    """
    sel = np.zeros((K, K * K * R, NB * L), np.float32)
    for k1 in range(K):
        for k2 in range(K):
            for s in range(K):
                for n in range(NB):
                    for r in range(L2):
                        rp = r if r < 3 * P2 else r - 3 * P2
                        row = (k2 * K + s) * R + n * L2 + r
                        col = n * L + 3 * (rp + k2) + s + k1
                        sel[k1, row, col] = 1.0
    return jnp.asarray(sel)


def textcnn_kernel(xe_ref, sel_ref, w1_ref, b1_ref, w2_ref, b2_ref, wfc_ref, bfc_ref,
                   o_ref):
    xe = xe_ref[...]                                             # (NB*L, E), 8-aligned rows

    # Conv1d(E, C1, 3): K per-tap matmuls on the aligned slab + MXU row-selection
    # of every (tap, pool-phase, time) combination consumed downstream.
    acc = None
    for k1 in range(K):
        p_k = jnp.dot(xe, w1_ref[k1],
                      preferred_element_type=jnp.float32, precision=_HI)      # (NB*L, C1)
        sel_p = jnp.dot(sel_ref[k1], p_k,
                        preferred_element_type=jnp.float32, precision=_HI)    # (K*K*R, C1)
        acc = sel_p if acc is None else acc + sel_p
    h1 = jnp.maximum(acc + b1_ref[...], 0.0)                     # ReLU(conv1) at selected offsets

    # MaxPool1d(3) (phase max, VPU) fused with Conv1d(C1, C2, 3) (per-tap matmuls).
    h2acc = None
    for k2 in range(K):
        base = (k2 * K) * R                                      # 16-row aligned slices
        x2 = jnp.maximum(jnp.maximum(h1[base:base + R],
                                     h1[base + R:base + 2 * R]),
                         h1[base + 2 * R:base + 3 * R])          # (R, C1) pooled tap-k2 input
        d = jnp.dot(x2, w2_ref[k2],
                    preferred_element_type=jnp.float32, precision=_HI)
        h2acc = d if h2acc is None else h2acc + d
    h2 = jnp.maximum(h2acc + b2_ref[...], 0.0)                   # (NB*L2, C2)

    # MaxPool1d(3) + global max pool == max over the first 3*P2 rows per batch row;
    # the trailing rows are duplicates (built into SEL) so one reshape + max over
    # axis=1 is exact -- no -inf mask, no per-row loop, no concat.
    feat = jnp.max(h2.reshape(NB, L2, C2), axis=1)               # (NB, C2)

    logits = jnp.dot(feat, wfc_ref[...],
                     preferred_element_type=jnp.float32, precision=_HI)
    o_ref[...] = (logits + bfc_ref[...]).astype(o_ref.dtype)     # lane-dense (NB, classes) store


def textcnn_forward(tokens, params):
    emb, w1, b1, w2, b2, wfc, bfc = params
    # Embedding lookup (gather) -- plain-JAX glue outside the kernel.
    # TODO(synk): the vocab-table gather stays in XLA; an in-kernel DMA gather is not
    # worth it at these sizes.
    xe = jnp.take(emb, tokens, axis=0).astype(jnp.float32)       # (N, L, E)
    xe2d = xe.reshape(N * L, EMBED)                              # row stride L=32 (8-aligned)

    # Pre-split PyTorch-layout weights into per-tap matrices OUTSIDE the kernel:
    #   conv (Cout, Cin, K) -> (K, Cin, Cout);  fc (classes, C2) -> (C2, classes).
    w1t = jnp.transpose(w1, (2, 1, 0))                           # (K, E,  C1)
    w2t = jnp.transpose(w2, (2, 1, 0))                           # (K, C1, C2)
    wfct = wfc.T                                                 # (C2, classes)
    b1r = b1.reshape(1, C1)
    b2r = b2.reshape(1, C2)
    bfr = bfc.reshape(1, NUM_CLASSES)
    sel = _build_selection()                                     # (K, K*K*R, NB*L), ~108 KB

    out = pl.pallas_call(
        textcnn_kernel,
        out_shape=jax.ShapeDtypeStruct((N, NUM_CLASSES), jnp.float32),
        grid_spec=pltpu.PrefetchScalarGridSpec(
            num_scalar_prefetch=0,
            grid=(N // NB,),                       # batch-tile grid (1 step at N == NB)
            in_specs=[
                pl.BlockSpec((NB * L, EMBED), lambda i: (i, 0)),
                pl.BlockSpec((K, K * K * R, NB * L), lambda i: (0, 0, 0)),
                pl.BlockSpec((K, EMBED, C1), lambda i: (0, 0, 0)),
                pl.BlockSpec((1, C1), lambda i: (0, 0)),
                pl.BlockSpec((K, C1, C2), lambda i: (0, 0, 0)),
                pl.BlockSpec((1, C2), lambda i: (0, 0)),
                pl.BlockSpec((C2, NUM_CLASSES), lambda i: (0, 0)),
                pl.BlockSpec((1, NUM_CLASSES), lambda i: (0, 0)),
            ],
            out_specs=pl.BlockSpec((NB, NUM_CLASSES), lambda i: (i, 0)),
        ),
        compiler_params=pltpu.CompilerParams(dimension_semantics=("parallel",)),
    )(xe2d, sel, w1t, b1r, w2t, b2r, wfct, bfr)
    return out                                                   # (N, num_classes)


def reference_forward(tokens, params):
    """Pure-JAX (XLA, f32 HIGHEST) reference matching PyTorch semantics."""
    emb, w1, b1, w2, b2, wfc, bfc = params
    xe = jnp.take(emb, tokens, axis=0).astype(jnp.float32)       # (N, L, E)
    x = jnp.transpose(xe, (0, 2, 1))                             # (N, E, L)  NCW
    h = jax.lax.conv_general_dilated(x, w1, (1,), 'VALID',
                                     dimension_numbers=('NCH', 'OIH', 'NCH'),
                                     precision=_HI)
    h = jnp.maximum(h + b1[None, :, None], 0.0)
    h = jax.lax.reduce_window(h, -jnp.inf, jax.lax.max, (1, 1, 3), (1, 1, 3), 'VALID')
    h = jax.lax.conv_general_dilated(h, w2, (1,), 'VALID',
                                     dimension_numbers=('NCH', 'OIH', 'NCH'),
                                     precision=_HI)
    h = jnp.maximum(h + b2[None, :, None], 0.0)
    h = jax.lax.reduce_window(h, -jnp.inf, jax.lax.max, (1, 1, 3), (1, 1, 3), 'VALID')
    h = h.max(axis=2)                                            # (N, 32) global max pool
    return jnp.dot(h, wfc.T, precision=_HI) + bfc


if __name__ == "__main__":
    key = jax.random.PRNGKey(0)
    ks = jax.random.split(key, 8)
    # deterministic synthetic parameters (same shapes as the nn.Module __init__)
    emb = jax.random.normal(ks[0], (VOCAB, EMBED), jnp.float32)
    w1 = jax.random.normal(ks[1], (C1, EMBED, K), jnp.float32) * 0.2
    b1 = jax.random.normal(ks[2], (C1,), jnp.float32) * 0.1
    w2 = jax.random.normal(ks[3], (C2, C1, K), jnp.float32) * 0.15
    b2 = jax.random.normal(ks[4], (C2,), jnp.float32) * 0.1
    wfc = jax.random.normal(ks[5], (NUM_CLASSES, C2), jnp.float32) * 0.2
    bfc = jax.random.normal(ks[6], (NUM_CLASSES,), jnp.float32) * 0.1
    params = (emb, w1, b1, w2, b2, wfc, bfc)

    tokens = jax.random.randint(ks[7], (N, L), 0, VOCAB, dtype=jnp.int32)

    out = jax.block_until_ready(textcnn_forward(tokens, params))
    ref = jax.block_until_ready(reference_forward(tokens, params))
    # All in-kernel dots run at f32 HIGHEST (free: MXU ~idle at these sizes), so the
    # kernel matches the f32 reference to rounding; 1e-3 still flags any real
    # indexing/pooling bug, which would be orders of magnitude larger.
    np.testing.assert_allclose(np.asarray(out), np.asarray(ref), rtol=1e-3, atol=1e-3)
    print("KERNEL_OK")
</pallas_src>

<mosaic_0001>
module attributes {stable_mosaic.version = 11 : i64} {
  func.func @textcnn_kernel(%arg0: i32, %arg1: memref<64x8xf32, #tpu.memory_space<vmem>>, %arg2: memref<3x144x64xf32, #tpu.memory_space<vmem>>, %arg3: memref<3x8x16xf32, #tpu.memory_space<vmem>>, %arg4: memref<1x16xf32, #tpu.memory_space<vmem>>, %arg5: memref<3x16x32xf32, #tpu.memory_space<vmem>>, %arg6: memref<1x32xf32, #tpu.memory_space<vmem>>, %arg7: memref<32x4xf32, #tpu.memory_space<vmem>>, %arg8: memref<1x4xf32, #tpu.memory_space<vmem>>, %arg9: memref<2x4xf32, #tpu.memory_space<vmem>>) attributes {dimension_semantics = [#tpu.dimension_semantics<parallel>], iteration_bounds = array<i64: 1>, scalar_prefetch = 0 : i64, scratch_operands = 0 : i64, tpu.core_type = #tpu.core_type<tc>, window_params = [{transform_indices = @transform_0, window_bounds = array<i64: 64, 8>}, {pipeline_mode = #tpu.pipeline_mode<synchronous>, transform_indices = @transform_1, window_bounds = array<i64: 3, 144, 64>}, {pipeline_mode = #tpu.pipeline_mode<synchronous>, transform_indices = @transform_2, window_bounds = array<i64: 3, 8, 16>}, {pipeline_mode = #tpu.pipeline_mode<synchronous>, transform_indices = @transform_3, window_bounds = array<i64: 1, 16>}, {pipeline_mode = #tpu.pipeline_mode<synchronous>, transform_indices = @transform_4, window_bounds = array<i64: 3, 16, 32>}, {pipeline_mode = #tpu.pipeline_mode<synchronous>, transform_indices = @transform_5, window_bounds = array<i64: 1, 32>}, {pipeline_mode = #tpu.pipeline_mode<synchronous>, transform_indices = @transform_6, window_bounds = array<i64: 32, 4>}, {pipeline_mode = #tpu.pipeline_mode<synchronous>, transform_indices = @transform_7, window_bounds = array<i64: 1, 4>}, {transform_indices = @transform_8, window_bounds = array<i64: 2, 4>}]} {
    %c0 = arith.constant 0 : index
    %c0_0 = arith.constant 0 : index
    %0 = vector.load %arg1[%c0, %c0_0] : memref<64x8xf32, #tpu.memory_space<vmem>>, vector<64x8xf32>
    %c0_1 = arith.constant 0 : index
    %c0_2 = arith.constant 0 : index
    %c0_3 = arith.constant 0 : index
    %1 = vector.load %arg3[%c0_1, %c0_2, %c0_3] : memref<3x8x16xf32, #tpu.memory_space<vmem>>, vector<1x8x16xf32>
    %2 = vector.shape_cast %1 : vector<1x8x16xf32> to vector<8x16xf32>
    %cst = arith.constant dense<0.000000e+00> : vector<64x16xf32>
    %3 = tpu.matmul %0, %2, %cst {dimension_numbers = #tpu.dot_dimension_numbers<[1], [0], [0], [1], [0, 0, 1, 1], [], []>, precision = #tpu.contract_precision<fp32>} : vector<64x8xf32>, vector<8x16xf32>, vector<64x16xf32> -> vector<64x16xf32>
    %c0_4 = arith.constant 0 : index
    %c0_5 = arith.constant 0 : index
    %c0_6 = arith.constant 0 : index
    %4 = vector.load %arg2[%c0_4, %c0_5, %c0_6] : memref<3x144x64xf32, #tpu.memory_space<vmem>>, vector<1x144x64xf32>
    %5 = vector.shape_cast %4 : vector<1x144x64xf32> to vector<144x64xf32>
    %cst_7 = arith.constant dense<0.000000e+00> : vector<144x16xf32>
    %6 = tpu.matmul %5, %3, %cst_7 {dimension_numbers = #tpu.dot_dimension_numbers<[1], [0], [0], [1], [0, 0, 1, 1], [], []>, precision = #tpu.contract_precision<fp32>} : vector<144x64xf32>, vector<64x16xf32>, vector<144x16xf32> -> vector<144x16xf32>
    %c1 = arith.constant 1 : index
    %c0_8 = arith.constant 0 : index
    %c0_9 = arith.constant 0 : index
    %7 = vector.load %arg3[%c1, %c0_8, %c0_9] : memref<3x8x16xf32, #tpu.memory_space<vmem>>, vector<1x8x16xf32>
    %8 = vector.shape_cast %7 : vector<1x8x16xf32> to vector<8x16xf32>
    %cst_10 = arith.constant dense<0.000000e+00> : vector<64x16xf32>
    %9 = tpu.matmul %0, %8, %cst_10 {dimension_numbers = #tpu.dot_dimension_numbers<[1], [0], [0], [1], [0, 0, 1, 1], [], []>, precision = #tpu.contract_precision<fp32>} : vector<64x8xf32>, vector<8x16xf32>, vector<64x16xf32> -> vector<64x16xf32>
    %c1_11 = arith.constant 1 : index
    %c0_12 = arith.constant 0 : index
    %c0_13 = arith.constant 0 : index
    %10 = vector.load %arg2[%c1_11, %c0_12, %c0_13] : memref<3x144x64xf32, #tpu.memory_space<vmem>>, vector<1x144x64xf32>
    %11 = vector.shape_cast %10 : vector<1x144x64xf32> to vector<144x64xf32>
    %cst_14 = arith.constant dense<0.000000e+00> : vector<144x16xf32>
    %12 = tpu.matmul %11, %9, %cst_14 {dimension_numbers = #tpu.dot_dimension_numbers<[1], [0], [0], [1], [0, 0, 1, 1], [], []>, precision = #tpu.contract_precision<fp32>} : vector<144x64xf32>, vector<64x16xf32>, vector<144x16xf32> -> vector<144x16xf32>
    %13 = arith.addf %6, %12 : vector<144x16xf32>
    %c2 = arith.constant 2 : index
    %c0_15 = arith.constant 0 : index
    %c0_16 = arith.constant 0 : index
    %14 = vector.load %arg3[%c2, %c0_15, %c0_16] : memref<3x8x16xf32, #tpu.memory_space<vmem>>, vector<1x8x16xf32>
    %15 = vector.shape_cast %14 : vector<1x8x16xf32> to vector<8x16xf32>
    %cst_17 = arith.constant dense<0.000000e+00> : vector<64x16xf32>
    %16 = tpu.matmul %0, %15, %cst_17 {dimension_numbers = #tpu.dot_dimension_numbers<[1], [0], [0], [1], [0, 0, 1, 1], [], []>, precision = #tpu.contract_precision<fp32>} : vector<64x8xf32>, vector<8x16xf32>, vector<64x16xf32> -> vector<64x16xf32>
    %c2_18 = arith.constant 2 : index
    %c0_19 = arith.constant 0 : index
    %c0_20 = arith.constant 0 : index
    %17 = vector.load %arg2[%c2_18, %c0_19, %c0_20] : memref<3x144x64xf32, #tpu.memory_space<vmem>>, vector<1x144x64xf32>
    %18 = vector.shape_cast %17 : vector<1x144x64xf32> to vector<144x64xf32>
    %cst_21 = arith.constant dense<0.000000e+00> : vector<144x16xf32>
    %19 = tpu.matmul %18, %16, %cst_21 {dimension_numbers = #tpu.dot_dimension_numbers<[1], [0], [0], [1], [0, 0, 1, 1], [], []>, precision = #tpu.contract_precision<fp32>} : vector<144x64xf32>, vector<64x16xf32>, vector<144x16xf32> -> vector<144x16xf32>
    %20 = arith.addf %13, %19 : vector<144x16xf32>
    %c0_22 = arith.constant 0 : index
    %c0_23 = arith.constant 0 : index
    %21 = vector.load %arg4[%c0_22, %c0_23] : memref<1x16xf32, #tpu.memory_space<vmem>>, vector<1x16xf32>
    %22 = vector.broadcast %21 : vector<1x16xf32> to vector<144x16xf32>
    %23 = arith.addf %20, %22 : vector<144x16xf32>
    %cst_24 = arith.constant 0.000000e+00 : f32
    %24 = vector.broadcast %cst_24 : f32 to vector<144x16xf32>
    %25 = arith.maximumf %23, %24 : vector<144x16xf32>
    %26 = vector.extract_strided_slice %25 {offsets = [0, 0], sizes = [16, 16], strides = [1, 1]} : vector<144x16xf32> to vector<16x16xf32>
    %27 = vector.extract_strided_slice %25 {offsets = [16, 0], sizes = [16, 16], strides = [1, 1]} : vector<144x16xf32> to vector<16x16xf32>
    %28 = arith.maximumf %26, %27 : vector<16x16xf32>
    %29 = vector.extract_strided_slice %25 {offsets = [32, 0], sizes = [16, 16], strides = [1, 1]} : vector<144x16xf32> to vector<16x16xf32>
    %30 = arith.maximumf %28, %29 : vector<16x16xf32>
    %c0_25 = arith.constant 0 : index
    %c0_26 = arith.constant 0 : index
    %c0_27 = arith.constant 0 : index
    %31 = vector.load %arg5[%c0_25, %c0_26, %c0_27] : memref<3x16x32xf32, #tpu.memory_space<vmem>>, vector<1x16x32xf32>
    %32 = vector.shape_cast %31 : vector<1x16x32xf32> to vector<16x32xf32>
    %cst_28 = arith.constant dense<0.000000e+00> : vector<16x32xf32>
    %33 = tpu.matmul %30, %32, %cst_28 {dimension_numbers = #tpu.dot_dimension_numbers<[1], [0], [0], [1], [0, 0, 1, 1], [], []>, precision = #tpu.contract_precision<fp32>} : vector<16x16xf32>, vector<16x32xf32>, vector<16x32xf32> -> vector<16x32xf32>
    %34 = vector.extract_strided_slice %25 {offsets = [48, 0], sizes = [16, 16], strides = [1, 1]} : vector<144x16xf32> to vector<16x16xf32>
    %35 = vector.extract_strided_slice %25 {offsets = [64, 0], sizes = [16, 16], strides = [1, 1]} : vector<144x16xf32> to vector<16x16xf32>
    %36 = arith.maximumf %34, %35 : vector<16x16xf32>
    %37 = vector.extract_strided_slice %25 {offsets = [80, 0], sizes = [16, 16], strides = [1, 1]} : vector<144x16xf32> to vector<16x16xf32>
    %38 = arith.maximumf %36, %37 : vector<16x16xf32>
    %c1_29 = arith.constant 1 : index
    %c0_30 = arith.constant 0 : index
    %c0_31 = arith.constant 0 : index
    %39 = vector.load %arg5[%c1_29, %c0_30, %c0_31] : memref<3x16x32xf32, #tpu.memory_space<vmem>>, vector<1x16x32xf32>
    %40 = vector.shape_cast %39 : vector<1x16x32xf32> to vector<16x32xf32>
    %cst_32 = arith.constant dense<0.000000e+00> : vector<16x32xf32>
    %41 = tpu.matmul %38, %40, %cst_32 {dimension_numbers = #tpu.dot_dimension_numbers<[1], [0], [0], [1], [0, 0, 1, 1], [], []>, precision = #tpu.contract_precision<fp32>} : vector<16x16xf32>, vector<16x32xf32>, vector<16x32xf32> -> vector<16x32xf32>
    %42 = arith.addf %33, %41 : vector<16x32xf32>
    %43 = vector.extract_strided_slice %25 {offsets = [96, 0], sizes = [16, 16], strides = [1, 1]} : vector<144x16xf32> to vector<16x16xf32>
    %44 = vector.extract_strided_slice %25 {offsets = [112, 0], sizes = [16, 16], strides = [1, 1]} : vector<144x16xf32> to vector<16x16xf32>
    %45 = arith.maximumf %43, %44 : vector<16x16xf32>
    %46 = vector.extract_strided_slice %25 {offsets = [128, 0], sizes = [16, 16], strides = [1, 1]} : vector<144x16xf32> to vector<16x16xf32>
    %47 = arith.maximumf %45, %46 : vector<16x16xf32>
    %c2_33 = arith.constant 2 : index
    %c0_34 = arith.constant 0 : index
    %c0_35 = arith.constant 0 : index
    %48 = vector.load %arg5[%c2_33, %c0_34, %c0_35] : memref<3x16x32xf32, #tpu.memory_space<vmem>>, vector<1x16x32xf32>
    %49 = vector.shape_cast %48 : vector<1x16x32xf32> to vector<16x32xf32>
    %cst_36 = arith.constant dense<0.000000e+00> : vector<16x32xf32>
    %50 = tpu.matmul %47, %49, %cst_36 {dimension_numbers = #tpu.dot_dimension_numbers<[1], [0], [0], [1], [0, 0, 1, 1], [], []>, precision = #tpu.contract_precision<fp32>} : vector<16x16xf32>, vector<16x32xf32>, vector<16x32xf32> -> vector<16x32xf32>
    %51 = arith.addf %42, %50 : vector<16x32xf32>
    %c0_37 = arith.constant 0 : index
    %c0_38 = arith.constant 0 : index
    %52 = vector.load %arg6[%c0_37, %c0_38] : memref<1x32xf32, #tpu.memory_space<vmem>>, vector<1x32xf32>
    %53 = vector.broadcast %52 : vector<1x32xf32> to vector<16x32xf32>
    %54 = arith.addf %51, %53 : vector<16x32xf32>
    %cst_39 = arith.constant 0.000000e+00 : f32
    %55 = vector.broadcast %cst_39 : f32 to vector<16x32xf32>
    %56 = arith.maximumf %54, %55 : vector<16x32xf32>
    %57 = vector.shape_cast %56 : vector<16x32xf32> to vector<2x8x32xf32>
    %cst_40 = arith.constant dense<0xFF800000> : vector<2x32xf32>
    %58 = vector.multi_reduction <maximumf>, %57, %cst_40 [1] : vector<2x8x32xf32> to vector<2x32xf32>
    %c0_41 = arith.constant 0 : index
    %c0_42 = arith.constant 0 : index
    %59 = vector.load %arg7[%c0_41, %c0_42] : memref<32x4xf32, #tpu.memory_space<vmem>>, vector<32x4xf32>
    %cst_43 = arith.constant dense<0.000000e+00> : vector<2x4xf32>
    %60 = tpu.matmul %58, %59, %cst_43 {dimension_numbers = #tpu.dot_dimension_numbers<[1], [0], [0], [1], [0, 0, 1, 1], [], []>, precision = #tpu.contract_precision<fp32>} : vector<2x32xf32>, vector<32x4xf32>, vector<2x4xf32> -> vector<2x4xf32>
    %c0_44 = arith.constant 0 : index
    %c0_45 = arith.constant 0 : index
    %61 = vector.load %arg8[%c0_44, %c0_45] : memref<1x4xf32, #tpu.memory_space<vmem>>, vector<1x4xf32>
    %62 = vector.broadcast %61 : vector<1x4xf32> to vector<2x4xf32>
    %63 = arith.addf %60, %62 : vector<2x4xf32>
    %c0_46 = arith.constant 0 : index
    %c0_47 = arith.constant 0 : index
    %64 = vector.load %arg9[%c0_46, %c0_47] : memref<2x4xf32, #tpu.memory_space<vmem>>, vector<2x4xf32>
    tpu.vector_store %arg9[%c0_46, %c0_47], %63 {strides = array<i32>} : memref<2x4xf32, #tpu.memory_space<vmem>>, vector<2x4xf32>,
    return
  }
  func.func @transform_0(%arg0: i32) -> (i32, i32) {
    %c0_i32 = arith.constant 0 : i32
    %c0_i32_0 = arith.constant 0 : i32
    return %arg0, %c0_i32 : i32, i32
  }
  func.func @transform_1(%arg0: i32) -> (i32, i32, i32) {
    %c0_i32 = arith.constant 0 : i32
    %c0_i32_0 = arith.constant 0 : i32
    %c0_i32_1 = arith.constant 0 : i32
    %c0_i32_2 = arith.constant 0 : i32
    return %c0_i32, %c0_i32_0, %c0_i32_1 : i32, i32, i32
  }
  func.func @transform_2(%arg0: i32) -> (i32, i32, i32) {
    %c0_i32 = arith.constant 0 : i32
    %c0_i32_0 = arith.constant 0 : i32
    %c0_i32_1 = arith.constant 0 : i32
    %c0_i32_2 = arith.constant 0 : i32
    return %c0_i32, %c0_i32_0, %c0_i32_1 : i32, i32, i32
  }
  func.func @transform_3(%arg0: i32) -> (i32, i32) {
    %c0_i32 = arith.constant 0 : i32
    %c0_i32_0 = arith.constant 0 : i32
    %c0_i32_1 = arith.constant 0 : i32
    return %c0_i32, %c0_i32_0 : i32, i32
  }
  func.func @transform_4(%arg0: i32) -> (i32, i32, i32) {
    %c0_i32 = arith.constant 0 : i32
    %c0_i32_0 = arith.constant 0 : i32
    %c0_i32_1 = arith.constant 0 : i32
    %c0_i32_2 = arith.constant 0 : i32
    return %c0_i32, %c0_i32_0, %c0_i32_1 : i32, i32, i32
  }
  func.func @transform_5(%arg0: i32) -> (i32, i32) {
    %c0_i32 = arith.constant 0 : i32
    %c0_i32_0 = arith.constant 0 : i32
    %c0_i32_1 = arith.constant 0 : i32
    return %c0_i32, %c0_i32_0 : i32, i32
  }
  func.func @transform_6(%arg0: i32) -> (i32, i32) {
    %c0_i32 = arith.constant 0 : i32
    %c0_i32_0 = arith.constant 0 : i32
    %c0_i32_1 = arith.constant 0 : i32
    return %c0_i32, %c0_i32_0 : i32, i32
  }
  func.func @transform_7(%arg0: i32) -> (i32, i32) {
    %c0_i32 = arith.constant 0 : i32
    %c0_i32_0 = arith.constant 0 : i32
    %c0_i32_1 = arith.constant 0 : i32
    return %c0_i32, %c0_i32_0 : i32, i32
  }
  func.func @transform_8(%arg0: i32) -> (i32, i32) {
    %c0_i32 = arith.constant 0 : i32
    %c0_i32_0 = arith.constant 0 : i32
    return %arg0, %c0_i32 : i32, i32
  }
}

</mosaic_0001>

<bundles_post_ra>
// kernel: tpu_custom_call.1
= control target key start
LH: loop header
LB: loop body
LE: loop exit
PB: predicated region body
PF: predicated region fallthrough
CT: control target
= control target key end

     0   :  { %vm39_vm0 = vcmask 64512   ;;  %s13354_s0 = inlined_call_operand.vmem [shape: f32[64,8], index: 0, kind: input, shape index: {}]   ;;  %s13355_s1 = inlined_call_operand.vmem [shape: f32[3,144,64], index: 1, kind: input, shape index: {}]   ;;  %s13356_s2 = inlined_call_operand.vmem [shape: f32[3,8,16], index: 2, kind: input, shape index: {}]   ;;  %s13357_s3 = inlined_call_operand.vmem [shape: f32[1,16], index: 3, kind: input, shape index: {}]   ;;  %s13358_s4 = inlined_call_operand.vmem [shape: f32[3,16,32], index: 4, kind: input, shape index: {}]   ;;  %s13359_s5 = inlined_call_operand.vmem [shape: f32[1,32], index: 5, kind: input, shape index: {}]   ;;  %s13360_s6 = inlined_call_operand.vmem [shape: f32[32,4], index: 6, kind: input, shape index: {}]   ;;  %s13361_s7 = inlined_call_operand.vmem [shape: f32[1,4], index: 7, kind: input, shape index: {}]   ;;  %s13362_s8 = inlined_call_operand.hbm [shape: f32[2,4], index: 8, kind: output, shape index: {}]  }
   0x1   :  { %v38_v0 = vld [vmem:[%s13356_s2] sm:$0xff]  ;;  %v31_v2 = vld [vmem:[%s13354_s0 + $0x8] sm:$0xff]  ;;  %v32_v6 = vld [vmem:[%s13354_s0 + $0x10] sm:$0xff] }
   0x2   :  { %v30_v1 = vld [vmem:[%s13354_s0] sm:$0xff]  ;;  %v10561_v3 = vand.u32 4294901760, %v38_v0  ;;  %v44_v5 = vsel %vm39_vm0, %v31_v2, 0  ;;  %v33_v7 = vld [vmem:[%s13354_s0 + $0x18] sm:$0xff]  ;;  %v47_v11 = vsel %vm39_vm0, %v32_v6, 0  ;;  %v35_v13 = vld [vmem:[%s13354_s0 + $0x28] sm:$0xff] }
   0x3   :  { %v41_v4 = vsel %vm39_vm0, %v30_v1, 0  ;;  %v34_v8 = vld [vmem:[%s13354_s0 + $0x20] sm:$0xff]  ;;  %v10576_v10 = vand.u32 4294901760, %v44_v5  ;;  %v50_v12 = vsel %vm39_vm0, %v33_v7, 0  ;;  %v10585_v15 = vand.u32 4294901760, %v47_v11  ;;  %v36_v18 = vld [vmem:[%s13354_s0 + $0x30] sm:$0xff] }
   0x4   :  { %v10574_v9 = vand.u32 4294901760, %v41_v4  ;;  %9261 = vmatprep.subr.mxu0 %v10561_v3  ;;  %v242_v14 = vsub.f32 %v38_v0, %v10561_v3  ;;  %v10587_v16 = vand.u32 4294901760, %v50_v12  ;;  %v53_v17 = vsel %vm39_vm0, %v34_v8, 0 }
   0x5   :  { %13461 = vst [vmem:[#allocation6_spill] sm:$0xff] %v10576_v10  ;;  %13462 = vst [vmem:[#allocation7_spill] sm:$0xff] %v10585_v15  ;;  %9262 = vmatpush3.msra.mxu0 %v10561_v3  ;;  %v10599_v20 = vsub.f32 %v44_v5, %v10576_v10  ;;  %v10601_v21 = vand.u32 4294901760, %v53_v17  ;;  %v56_v22 = vsel %vm39_vm0, %v35_v13, 0 }
   0x6   :  { %13460 = vst [vmem:[#allocation5_spill] sm:$0xff] %v10574_v9  ;;  %13463 = vst [vmem:[#allocation8_spill] sm:$0xff] %v10587_v16  ;;  %v10595_v19 = vsub.f32 %v41_v4, %v10574_v9  ;;  %9277 = vmatprep.mubr.f32.mxu1 %v10574_v9 }
   0x7   :  { %13465 = vst [vmem:[#allocation10_spill] sm:$0xff] %v10599_v20  ;;  %13466 = vst [vmem:[#allocation11_spill] sm:$0xff] %v10601_v21 }
   0x8   :  { %13464 = vst [vmem:[#allocation9_spill] sm:$0xff] %v10595_v19 }
   0x9   :  { %13 = vsyncpa [#allocation3], 0  ;;  %v10604_v23 = vand.u32 4294901760, %v242_v14  ;;  %9289 = vmatprep.subr.mxu0 %v242_v14  ;;  %v10607_v24 = vsub.f32 %v47_v11, %v10585_v15  ;;  %v10610_v25 = vsub.f32 %v50_v12, %v10587_v16  ;;  %v10612_v26 = vand.u32 4294901760, %v56_v22  ;;  %v37_v39 = vld [vmem:[%s13354_s0 + $0x38] sm:$0xff]  ;;  %v8484_v44 = vld [vmem:[%s13356_s2 + $0x8] sm:$0xff] }
   0xa   :  { %v10615_v27 = vand.u32 4294901760, %v10595_v19  ;;  %v10618_v28 = vand.u32 4294901760, %v10599_v20  ;;  %v10621_v29 = vsub.f32 %v53_v17, %v10601_v21  ;;  %v59_v30 = vsel %vm39_vm0, %v36_v18, 0  ;;  %s10506_s15 = smov [#allocation2]  }
   0xb   :  { %13467 = vst [vmem:[#allocation12_spill] sm:$0xff] %v10607_v24  ;;  %13468 = vst [vmem:[#allocation13_spill] sm:$0xff] %v10610_v25  ;;  %v244_v31 = vsub.f32 %v242_v14, %v10604_v23  ;;  %v10626_v32 = vand.u32 4294901760, %v10607_v24  ;;  %v10629_v33 = vand.u32 4294901760, %v10610_v25  ;;  %v10632_v34 = vsub.f32 %v56_v22, %v10612_v26  ;;  %s8476_s16 = sshll.u32 %s10506_s15, 4  ;;  %s8477_s16 = int_to_ptr.vmem [resolvable:$true] %s8476_s16 }
   0xc   :  { %13469 = vst [vmem:[#allocation14_spill] sm:$0xff] %v10612_v26  ;;  %13470 = vst [vmem:[#allocation15_spill] sm:$0xff] %v10615_v27  ;;  %v133_v35 = vsub.f32 %v10595_v19, %v10615_v27  ;;  %v143_v36 = vsub.f32 %v10599_v20, %v10618_v28  ;;  %v10639_v37 = vand.u32 4294901760, %v10621_v29  ;;  %v10641_v38 = vand.u32 4294901760, %v59_v30  ;;  %s10482_s17 = scalar_lea.vmem %s8477_s16, 32  ;;  %p10487_p1 = scmp.lt.s32.totalorder %s8477_s16, %s8477_s16 }
   0xd   :  { %13471 = vst [vmem:[#allocation16_spill] sm:$0xff] %v10618_v28  ;;  %13472 = vst [vmem:[#allocation17_spill] sm:$0xff] %v10621_v29  ;;  %v245_v40 = vand.u32 4294901760, %v244_v31  ;;  %v153_v41 = vsub.f32 %v10607_v24, %v10626_v32  ;;  %v163_v42 = vsub.f32 %v10610_v25, %v10629_v33  ;;  %v10651_v43 = vand.u32 4294901760, %v10632_v34  ;;  %p10483_p0 = scmp.ne.s32.totalorder %s8477_s16, %s10482_s17  ;;  %p10488_p2 = scmp.lt.s32.totalorder %s10482_s17, %s10482_s17 }
   0xe   :  { %13473 = vst [vmem:[#allocation18_spill] sm:$0xff] %v10626_v32  ;;  %13474 = vst [vmem:[#allocation19_spill] sm:$0xff] %v10629_v33  ;;  %v10656_v45 = vand.u32 4294901760, %v133_v35  ;;  %v10658_v46 = vand.u32 4294901760, %v143_v36  ;;  %v173_v47 = vsub.f32 %v10621_v29, %v10639_v37  ;;  %v10663_v48 = vsub.f32 %v59_v30, %v10641_v38 }
   0xf   :  { %13475 = vst [vmem:[#allocation20_spill] sm:$0xff] %v10632_v34  ;;  %13476 = vst [vmem:[#allocation21_spill] sm:$0xff] %v10639_v37  ;;  %9275 = vmatprep.subr.mxu1 %v245_v40  ;;  %v10665_v49 = vand.u32 4294901760, %v153_v41  ;;  %v62_v50 = vsel %vm39_vm0, %v37_v39, 0  ;;  %v10674_v53 = vand.u32 4294901760, %v8484_v44  ;;  %v10678_v54 = vand.u32 4294901760, %v163_v42  ;;  %p10489_p3 = por %p10488_p2, %p10487_p1 }
  0x10   :  { %13477 = vst [vmem:[#allocation22_spill] sm:$0xff] %v10641_v38  ;;  %13478 = vst [vmem:[#allocation23_spill] sm:$0xff] %v10651_v43  ;;  %9263 = vmatprep.mubr.f32.mxu0 %v10656_v45  ;;  %9276 = vmatpush3.msra.mxu1 %v245_v40  ;;  %v10670_v51 = vand.u32 4294901760, %v10663_v48  ;;  %v10672_v52 = vand.u32 4294901760, %v62_v50  ;;  %v183_v55 = vsub.f32 %v10632_v34, %v10651_v43  ;;  %v10683_v56 = vand.u32 4294901760, %v173_v47 }
  0x11   :  { %13479 = vst [vmem:[#allocation24_spill] sm:$0xff] %v10656_v45  ;;  %13480 = vst [vmem:[#allocation25_spill] sm:$0xff] %v10658_v46  ;;  %9264 = vmatmul.mubr.f32.vlgmr.msra.gmra.mxu0 %v10658_v46  ;;  %9278 = vmatmul.mubr.f32.vlgmr.msra.gmra.mxu1 %v10576_v10  ;;  %v1009_v60 = vsub.f32 %v8484_v44, %v10674_v53  ;;  %vm1597_vm1 = vcmask 523264   ;;  %vm6406_vm2 = vcmask 130048   ;;  %vm10505_vm3 = vmmov 0   ;;  %p10490_p4 = pnand %p10489_p3, %p10483_p0 }
  0x12   :  { %13481 = vst [vmem:[#allocation26_spill] sm:$0xff] %v10663_v48  ;;  %13482 = vst [vmem:[#allocation27_spill] sm:$0xff] %v10665_v49  ;;  %9290 = vmatpush3.msra.mxu0 %v242_v14  ;;  %9303 = vmatprep.subr.mxu1 %v10561_v3  ;;  %v193_v57 = vsub.f32 %v10663_v48, %v10670_v51  ;;  %v10688_v58 = vsub.f32 %v62_v50, %v10672_v52  ;;  %v10700_v61 = vand.u32 4294901760, %v183_v55  ;;  %vm7951_vm4 = vcmask 261120  }
  0x13   :  { %13483 = vst [vmem:[#allocation28_spill] sm:$0xff] %v10670_v51  ;;  %13484 = vst [vmem:[#allocation29_spill] sm:$0xff] %v10672_v52  ;;  %9266 = vmatprep.mubr.f32.mxu0 %v10665_v49  ;;  %9280 = vmatprep.mubr.f32.mxu1 %v10585_v15  ;;  %v10709_v0 = vand.u32 4294901760, %v1009_v60  ;;  %vm7979_vm5 = vcmask 1041409   ;;  %vm8468_vm6 = vcmask 25600  }
  0x14   :  { %13485 = vst [vmem:[#allocation30_spill] sm:$0xff] %v10678_v54  ;;  %13486 = vst [vmem:[#allocation31_spill] sm:$0xff] %v10683_v56  ;;  %9304 = vmatpush3.msra.mxu1 %v10561_v3  ;;  %v10694_v59 = vand.u32 4294901760, %v10688_v58  ;;  %9317 = vmatprep.subr.mxu0 %v10604_v23  ;;  %v10704_v62 = vand.u32 4294901760, %v193_v57 }
  0x15   :  { %13487 = vst [vmem:[#allocation32_spill] sm:$0xff] %v10688_v58  ;;  %9267 = vmatmul.mubr.f32.gmra.mxu0 %v10678_v54  ;;  %9281 = vmatmul.mubr.f32.gmra.mxu1 %v10587_v16  ;;  %13489 = vst [vmem:[#allocation34_spill] sm:$0xff] %v10700_v61  ;;  %v1011_v2 = vsub.f32 %v1009_v60, %v10709_v0 }
  0x16   :  { %13488 = vst [vmem:[#allocation33_spill] sm:$0xff] %v10694_v59  ;;  %9269 = vmatprep.mubr.f32.mxu0 %v10683_v56  ;;  %9283 = vmatprep.mubr.f32.mxu1 %v10601_v21  ;;  %13490 = vst [vmem:[#allocation35_spill] sm:$0xff] %v10704_v62  ;;  %v203_v63 = vsub.f32 %v10688_v58, %v10694_v59 }
  0x17   :  { %9331 = vmatprep.subr.mxu1 %v10561_v3  ;;  %v1012_v4 = vand.u32 4294901760, %v1011_v2 }
  0x18   :  { %v10713_v1 = vand.u32 4294901760, %v203_v63 }
  0x19   :  { %9270 = vmatmul.mubr.f32.gmra.mxu0 %v10700_v61  ;;  %9284 = vmatmul.mubr.f32.gmra.mxu1 %v10612_v26 }
  0x1a   :  { %13491 = vst [vmem:[#allocation36_spill] sm:$0xff] %v10713_v1  ;;  %9272 = vmatprep.mubr.f32.mxu0 %v10704_v62  ;;  %9286 = vmatprep.mubr.f32.mxu1 %v10641_v38 }
  0x1d   :  { %9273 = vmatmul.mubr.f32.gmra.mxu0 %v10713_v1  ;;  %9287 = vmatmul.mubr.f32.gmra.mxu1 %v10672_v52 }
  0x1e   :  { %9291 = vmatprep.mubr.f32.mxu0 %v10595_v19  ;;  %9305 = vmatprep.mubr.f32.mxu1 %v10615_v27 }
  0x21   :  { %9292 = vmatmul.mubr.f32.vlgmr.msra.gmra.mxu0 %v10599_v20  ;;  %9306 = vmatmul.mubr.f32.vlgmr.msra.gmra.mxu1 %v10618_v28 }
  0x22   :  { %9318 = vmatpush3.msra.mxu0 %v10604_v23  ;;  %9294 = vmatprep.mubr.f32.mxu0 %v10607_v24 }
  0x23   :  { %9308 = vmatprep.mubr.f32.mxu1 %v10626_v32  ;;  %9332 = vmatpush3.msra.mxu1 %v10561_v3  ;;  %v8485_v3 = vld [vmem:[%s13355_s1 + $0x90] sm:$0xff] }
  0x24   :  { %9345 = vmatprep.subr.mxu0 %v10674_v53  ;;  %9359 = vmatprep.subr.mxu1 %v1012_v4  ;;  %v1599_v5 = vsel %vm1597_vm1, %v8485_v3, 0 }
  0x25   :  { %9295 = vmatmul.mubr.f32.gmra.mxu0 %v10610_v25  ;;  %9309 = vmatmul.mubr.f32.gmra.mxu1 %v10629_v33  ;;  %v10814_v6 = vand.u32 4294901760, %v1599_v5 }
  0x26   :  { %9297 = vmatprep.mubr.f32.mxu0 %v10621_v29  ;;  %9311 = vmatprep.mubr.f32.mxu1 %v10639_v37 }
  0x27   :  { %13492 = vst [vmem:[#allocation37_spill] sm:$0xff] %v10814_v6  ;;  %v10817_v7 = vsub.f32 %v1599_v5, %v10814_v6 }
  0x29   :  { %9298 = vmatmul.mubr.f32.gmra.mxu0 %v10632_v34  ;;  %9312 = vmatmul.mubr.f32.gmra.mxu1 %v10651_v43  ;;  %v13363_v8 = vand.u32 4294901760, %v10817_v7 }
  0x2a   :  { %9300 = vmatprep.mubr.f32.mxu0 %v10663_v48  ;;  %9314 = vmatprep.mubr.f32.mxu1 %v10670_v51 }
  0x2b   :  { %v1728_v11 = vsub.f32 %v10817_v7, %v13363_v8 }
  0x2d   :  { %9301 = vmatmul.mubr.f32.gmra.mxu0 %v10688_v58  ;;  %9315 = vmatmul.mubr.f32.gmra.mxu1 %v10694_v59  ;;  %v1729_v12 = vand.u32 4294901760, %v1728_v11 }
  0x2e   :  { %9319 = vmatprep.mubr.f32.mxu0 %v10574_v9  ;;  %9333 = vmatprep.mubr.f32.mxu1 %v10574_v9 }
  0x31   :  { %9320 = vmatmul.mubr.f32.vlgmr.msra.gmra.mxu0 %v10576_v10  ;;  %9334 = vmatmul.mubr.f32.vlgmr.msra.gmra.mxu1 %v10576_v10 }
  0x32   :  { %9346 = vmatpush3.msra.mxu0 %v10674_v53  ;;  %9322 = vmatprep.mubr.f32.mxu0 %v10585_v15 }
  0x33   :  { %9336 = vmatprep.mubr.f32.mxu1 %v10585_v15  ;;  %9360 = vmatpush3.msra.mxu1 %v1012_v4 }
  0x34   :  { %9373 = vmatprep.subr.mxu0 %v1009_v60  ;;  %9387 = vmatprep.subr.mxu1 %v10674_v53 }
  0x35   :  { %9323 = vmatmul.mubr.f32.gmra.mxu0 %v10587_v16  ;;  %9337 = vmatmul.mubr.f32.gmra.mxu1 %v10587_v16 }
  0x36   :  { %9325 = vmatprep.mubr.f32.mxu0 %v10601_v21  ;;  %9339 = vmatprep.mubr.f32.mxu1 %v10601_v21 }
  0x39   :  { %9326 = vmatmul.mubr.f32.gmra.mxu0 %v10612_v26  ;;  %9340 = vmatmul.mubr.f32.gmra.mxu1 %v10612_v26 }
  0x3a   :  { %9328 = vmatprep.mubr.f32.mxu0 %v10641_v38  ;;  %9342 = vmatprep.mubr.f32.mxu1 %v10641_v38 }
  0x3d   :  { %9329 = vmatmul.mubr.f32.gmra.mxu0 %v10672_v52  ;;  %9343 = vmatmul.mubr.f32.gmra.mxu1 %v10672_v52 }
  0x3e   :  { %9347 = vmatprep.mubr.f32.mxu0 %v10656_v45  ;;  %9361 = vmatprep.mubr.f32.mxu1 %v10574_v9 }
  0x41   :  { %9348 = vmatmul.mubr.f32.vlgmr.msra.gmra.mxu0 %v10658_v46  ;;  %9362 = vmatmul.mubr.f32.vlgmr.msra.gmra.mxu1 %v10576_v10 }
  0x42   :  { %9374 = vmatpush3.msra.mxu0 %v1009_v60  ;;  %9350 = vmatprep.mubr.f32.mxu0 %v10665_v49 }
  0x43   :  { %9364 = vmatprep.mubr.f32.mxu1 %v10585_v15  ;;  %9388 = vmatpush3.msra.mxu1 %v10674_v53 }
  0x44   :  { %9401 = vmatprep.subr.mxu0 %v10709_v0  ;;  %9415 = vmatprep.subr.mxu1 %v10674_v53 }
  0x45   :  { %9351 = vmatmul.mubr.f32.gmra.mxu0 %v10678_v54  ;;  %9365 = vmatmul.mubr.f32.gmra.mxu1 %v10587_v16 }
  0x46   :  { %9353 = vmatprep.mubr.f32.mxu0 %v10683_v56  ;;  %9367 = vmatprep.mubr.f32.mxu1 %v10601_v21 }
  0x49   :  { %9354 = vmatmul.mubr.f32.gmra.mxu0 %v10700_v61  ;;  %9368 = vmatmul.mubr.f32.gmra.mxu1 %v10612_v26 }
  0x4a   :  { %9356 = vmatprep.mubr.f32.mxu0 %v10704_v62  ;;  %9370 = vmatprep.mubr.f32.mxu1 %v10641_v38 }
  0x4d   :  { %9357 = vmatmul.mubr.f32.gmra.mxu0 %v10713_v1  ;;  %9371 = vmatmul.mubr.f32.gmra.mxu1 %v10672_v52 }
  0x4e   :  { %9375 = vmatprep.mubr.f32.mxu0 %v10595_v19  ;;  %9389 = vmatprep.mubr.f32.mxu1 %v10615_v27 }
  0x51   :  { %9376 = vmatmul.mubr.f32.vlgmr.msra.gmra.mxu0 %v10599_v20  ;;  %9390 = vmatmul.mubr.f32.vlgmr.msra.gmra.mxu1 %v10618_v28 }
  0x52   :  { %9402 = vmatpush3.msra.mxu0 %v10709_v0  ;;  %9378 = vmatprep.mubr.f32.mxu0 %v10607_v24 }
  0x53   :  { %9392 = vmatprep.mubr.f32.mxu1 %v10626_v32  ;;  %9416 = vmatpush3.msra.mxu1 %v10674_v53 }
  0x55   :  { %9379 = vmatmul.mubr.f32.gmra.mxu0 %v10610_v25  ;;  %9393 = vmatmul.mubr.f32.gmra.mxu1 %v10629_v33 }
  0x56   :  { %9381 = vmatprep.mubr.f32.mxu0 %v10621_v29  ;;  %9395 = vmatprep.mubr.f32.mxu1 %v10639_v37 }
  0x59   :  { %9382 = vmatmul.mubr.f32.gmra.mxu0 %v10632_v34  ;;  %9396 = vmatmul.mubr.f32.gmra.mxu1 %v10651_v43 }
  0x5a   :  { %9384 = vmatprep.mubr.f32.mxu0 %v10663_v48  ;;  %9398 = vmatprep.mubr.f32.mxu1 %v10670_v51 }
  0x5d   :  { %9385 = vmatmul.mubr.f32.gmra.mxu0 %v10688_v58  ;;  %9399 = vmatmul.mubr.f32.gmra.mxu1 %v10694_v59 }
  0x5e   :  { %9403 = vmatprep.mubr.f32.mxu0 %v10574_v9  ;;  %9417 = vmatprep.mubr.f32.mxu1 %v10574_v9 }
  0x61   :  { %9404 = vmatmul.mubr.f32.vlgmr.msra.gmra.mxu0 %v10576_v10  ;;  %9418 = vmatmul.mubr.f32.vlgmr.msra.gmra.mxu1 %v10576_v10 }
  0x62   :  { %9406 = vmatprep.mubr.f32.mxu0 %v10585_v15  ;;  %9420 = vmatprep.mubr.f32.mxu1 %v10585_v15 }
  0x65   :  { %9407 = vmatmul.mubr.f32.gmra.mxu0 %v10587_v16  ;;  %9421 = vmatmul.mubr.f32.gmra.mxu1 %v10587_v16 }
  0x66   :  { %9409 = vmatprep.mubr.f32.mxu0 %v10601_v21  ;;  %9423 = vmatprep.mubr.f32.mxu1 %v10601_v21 }
  0x69   :  { %9410 = vmatmul.mubr.f32.gmra.mxu0 %v10612_v26  ;;  %9424 = vmatmul.mubr.f32.gmra.mxu1 %v10612_v26 }
  0x6a   :  { %9412 = vmatprep.mubr.f32.mxu0 %v10641_v38  ;;  %9426 = vmatprep.mubr.f32.mxu1 %v10641_v38 }
  0x6d   :  { %9413 = vmatmul.mubr.f32.gmra.mxu0 %v10672_v52  ;;  %9427 = vmatmul.mubr.f32.gmra.mxu1 %v10672_v52 }
  0x6e   :  { %9488 = vmatprep.mubr.f32.mxu1 %v10814_v6  ;;  %9445 = vmatprep.mubr.f32.mxu0 %v1729_v12 }
  0xd1   :  { %v9265_v13 = vpop.f32.mrf.mxu0  ;;  %v9279_v14 = vpop.f32.mrf.mxu1 }
  0xd2   :  { %v289_v17 = vadd.f32 %v9279_v14, %v9265_v13 }
  0xd3   :  { %v10824_v18 = vpop.f32.mrf.mxu0  ;;  %v10826_v22 = vpop.f32.mrf.mxu1 }
  0xd4   :  { %13493 = vst [vmem:[#allocation38_spill] sm:$0xff] %v10824_v18  ;;  %13494 = vst [vmem:[#allocation39_spill] sm:$0xff] %v10826_v22  ;;  %v8486_v18 = vld [vmem:[%s13355_s1 + $0x98] sm:$0xff] }
  0xd5   :  { %v9268_v23 = vpop.f32.mrf.mxu0  ;;  %v9282_v30 = vpop.f32.mrf.mxu1 }
  0xd6   :  { %v301_v31 = vadd.f32 %v9282_v30, %v9268_v23 }
  0xd7   :  { %v10828_v35 = vpop.f32.mrf.mxu0  ;;  %v10830_v36 = vpop.f32.mrf.mxu1 }
  0xd8   :  { %13495 = vst [vmem:[#allocation40_spill] sm:$0xff] %v10828_v35  ;;  %13496 = vst [vmem:[#allocation41_spill] sm:$0xff] %v10830_v36 }
  0xd9   :  { %v9271_v39 = vpop.f32.mrf.mxu0  ;;  %v9285_v40 = vpop.f32.mrf.mxu1 }
  0xda   :  { %v313_v41 = vadd.f32 %v9285_v40, %v9271_v39 }
  0xdb   :  { %v10832_v42 = vpop.f32.mrf.mxu0  ;;  %v10834_v44 = vpop.f32.mrf.mxu1 }
  0xdc   :  { %13497 = vst [vmem:[#allocation42_spill] sm:$0xff] %v10832_v42  ;;  %13498 = vst [vmem:[#allocation43_spill] sm:$0xff] %v10834_v44  ;;  %v8498_v44 = vld [vmem:[%s13355_s1 + $0xf8] sm:$0xff] }
  0xdd   :  { %v9274_v47 = vpop.f32.mrf.mxu0  ;;  %v9288_v50 = vpop.f32.mrf.mxu1 }
  0xde   :  { %v325_v53 = vadd.f32 %v9288_v50, %v9274_v47 }
  0xdf   :  { %v10836_v55 = vpop.f32.mrf.mxu0  ;;  %v10838_v57 = vpop.f32.mrf.mxu1 }
  0xe1   :  { %v9293_v60 = vpop.f32.mrf.mxu0  ;;  %v9307_v63 = vpop.f32.mrf.mxu1 }
  0xe2   :  { %v406_v0 = vadd.f32 %v9293_v60, %v289_v17 }
  0xe3   :  { %v10840_v2 = vpop.f32.mrf.mxu0  ;;  %v10842_v4 = vpop.f32.mrf.mxu1 }
  0xe4   :  { %13499 = vst [vmem:[#allocation44_spill] sm:$0xff] %v10840_v2  ;;  %13500 = vst [vmem:[#allocation45_spill] sm:$0xff] %v10842_v4  ;;  %v530_v3 = vadd.f32 %v9307_v63, %v406_v0 }
  0xe5   :  { %v9296_v5 = vpop.f32.mrf.mxu0  ;;  %v9310_v11 = vpop.f32.mrf.mxu1 }
  0xe6   :  { %v420_v12 = vadd.f32 %v9296_v5, %v301_v31 }
  0xe7   :  { %v10844_v13 = vpop.f32.mrf.mxu0  ;;  %v10846_v14 = vpop.f32.mrf.mxu1 }
  0xe8   :  { %13501 = vst [vmem:[#allocation46_spill] sm:$0xff] %v10844_v13  ;;  %13502 = vst [vmem:[#allocation47_spill] sm:$0xff] %v10846_v14  ;;  %v546_v23 = vadd.f32 %v9310_v11, %v420_v12 }
  0xe9   :  { %v9299_v30 = vpop.f32.mrf.mxu0  ;;  %v9313_v39 = vpop.f32.mrf.mxu1 }
  0xea   :  { %v434_v40 = vadd.f32 %v9299_v30, %v313_v41 }
  0xeb   :  { %v10848_v47 = vpop.f32.mrf.mxu0  ;;  %v10850_v50 = vpop.f32.mrf.mxu1 }
  0xec   :  { %13503 = vst [vmem:[#allocation48_spill] sm:$0xff] %v10848_v47  ;;  %13504 = vst [vmem:[#allocation49_spill] sm:$0xff] %v10850_v50  ;;  %v562_v17 = vadd.f32 %v9313_v39, %v434_v40 }
  0xed   :  { %v9302_v60 = vpop.f32.mrf.mxu0  ;;  %v9316_v8 = vpop.f32.mrf.mxu1 }
  0xee   :  { %v448_v59 = vadd.f32 %v9302_v60, %v325_v53 }
  0xef   :  { %v10852_v63 = vpop.f32.mrf.mxu0  ;;  %v10854_v0 = vpop.f32.mrf.mxu1 }
  0xf0   :  { %13505 = vst [vmem:[#allocation50_spill] sm:$0xff] %v10854_v0  ;;  %v578_v31 = vadd.f32 %v9316_v8, %v448_v59 }
  0xf1   :  { %v9321_v5 = vpop.f32.mrf.mxu0  ;;  %v9335_v51 = vpop.f32.mrf.mxu1 }
  0xf2   :  { %v658_v43 = vadd.f32 %v9321_v5, %v530_v3 }
  0xf3   :  { %v10856_v11 = vpop.f32.mrf.mxu0  ;;  %v10858_v12 = vpop.f32.mrf.mxu1 }
  0xf4   :  { %13506 = vst [vmem:[#allocation51_spill] sm:$0xff] %v10856_v11  ;;  %13507 = vst [vmem:[#allocation52_spill] sm:$0xff] %v10858_v12  ;;  %v10860_v41 = vadd.f32 %v9335_v51, %v658_v43 }
  0xf5   :  { %v9324_v30 = vpop.f32.mrf.mxu0  ;;  %v9338_v37 = vpop.f32.mrf.mxu1 }
  0xf6   :  { %13508 = vst [vmem:[#allocation53_spill] sm:$0xff] %v10860_v41  ;;  %v670_v39 = vadd.f32 %v9324_v30, %v546_v23 }
  0xf7   :  { %v10862_v40 = vpop.f32.mrf.mxu0  ;;  %v10864_v53 = vpop.f32.mrf.mxu1 }
  0xf8   :  { %13509 = vst [vmem:[#allocation54_spill] sm:$0xff] %v10862_v40  ;;  %13510 = vst [vmem:[#allocation55_spill] sm:$0xff] %v10864_v53  ;;  %v10866_v60 = vadd.f32 %v9338_v37, %v670_v39 }
  0xf9   :  { %v9327_v33 = vpop.f32.mrf.mxu0  ;;  %v9341_v59 = vpop.f32.mrf.mxu1 }
  0xfa   :  { %13511 = vst [vmem:[#allocation56_spill] sm:$0xff] %v10866_v60  ;;  %v682_v8 = vadd.f32 %v9327_v33, %v562_v17 }
  0xfb   :  { %v10868_v58 = vpop.f32.mrf.mxu0  ;;  %v10870_v3 = vpop.f32.mrf.mxu1 }
  0xfc   :  { %13512 = vst [vmem:[#allocation57_spill] sm:$0xff] %v10868_v58  ;;  %13513 = vst [vmem:[#allocation58_spill] sm:$0xff] %v10870_v3  ;;  %v10872_v5 = vadd.f32 %v9341_v59, %v682_v8 }
  0xfd   :  { %v9330_v43 = vpop.f32.mrf.mxu0  ;;  %v9344_v51 = vpop.f32.mrf.mxu1 }
  0xfe   :  { %13514 = vst [vmem:[#allocation59_spill] sm:$0xff] %v10872_v5  ;;  %v694_v32 = vadd.f32 %v9330_v43, %v578_v31 }
  0xff   :  { %v10874_v48 = vpop.f32.mrf.mxu0  ;;  %v10876_v23 = vpop.f32.mrf.mxu1 }
 0x100   :  { %13515 = vst [vmem:[#allocation60_spill] sm:$0xff] %v10874_v48  ;;  %13516 = vst [vmem:[#allocation61_spill] sm:$0xff] %v10876_v23  ;;  %v10878_v30 = vadd.f32 %v9344_v51, %v694_v32 }
 0x101   :  { %v9349_v37 = vpop.f32.mrf.mxu0  ;;  %v9363_v39 = vpop.f32.mrf.mxu1 }
 0x102   :  { %v1056_v58 = vadd.f32 %v9363_v39, %v9349_v37 }
 0x103   :  { %v903_v28 = vpop.f32.mrf.mxu0  ;;  %v1049_v34 = vpop.f32.mrf.mxu1 }
 0x105   :  { %v9352_v33 = vpop.f32.mrf.mxu0  ;;  %v9366_v17 = vpop.f32.mrf.mxu1 }
 0x106   :  { %v1068_v41 = vadd.f32 %v9366_v17, %v9352_v33 }
 0x107   :  { %v923_v27 = vpop.f32.mrf.mxu0  ;;  %v1061_v29 = vpop.f32.mrf.mxu1 }
 0x108   :  { %v1062_v11 = vadd.f32 %v1061_v29, %v923_v27  ;;  %v1050_v27 = vadd.f32 %v1049_v34, %v903_v28 }
 0x109   :  { %v9355_v52 = vpop.f32.mrf.mxu0  ;;  %v9369_v59 = vpop.f32.mrf.mxu1 }
 0x10a   :  { %v1080_v12 = vadd.f32 %v9369_v59, %v9355_v52 }
 0x10b   :  { %v943_v8 = vpop.f32.mrf.mxu0  ;;  %v1073_v25 = vpop.f32.mrf.mxu1 }
 0x10c   :  { %v1074_v4 = vadd.f32 %v1073_v25, %v943_v8 }
 0x10d   :  { %v9358_v38 = vpop.f32.mrf.mxu0  ;;  %v9372_v31 = vpop.f32.mrf.mxu1 }
 0x10e   :  { %v1092_v14 = vadd.f32 %v9372_v31, %v9358_v38  ;;  %v1602_v38 = vsel %vm1597_vm1, %v8486_v18, 0 }
 0x10f   :  { %v963_v43 = vpop.f32.mrf.mxu0  ;;  %v1085_v24 = vpop.f32.mrf.mxu1 }
 0x110   :  { %v1086_v13 = vadd.f32 %v1085_v24, %v963_v43 }
 0x111   :  { %v9377_v26 = vpop.f32.mrf.mxu0  ;;  %v9391_v20 = vpop.f32.mrf.mxu1 }
 0x112   :  { %v1173_v25 = vadd.f32 %v9377_v26, %v1056_v58  ;;  %v10893_v58 = vand.u32 4294901760, %v1602_v38 }
 0x113   :  { %v1165_v32 = vpop.f32.mrf.mxu0  ;;  %v10880_v51 = vpop.f32.mrf.mxu1 }
 0x114   :  { %v1297_v26 = vadd.f32 %v9391_v20, %v1173_v25  ;;  %13517 = vst [vmem:[#allocation62_spill] sm:$0xff] %v10893_v58  ;;  %v10908_v31 = vsub.f32 %v1602_v38, %v10893_v58 }
 0x115   :  { %v9380_v21 = vpop.f32.mrf.mxu0  ;;  %v9394_v19 = vpop.f32.mrf.mxu1 }
 0x116   :  { %v1187_v6 = vadd.f32 %v9380_v21, %v1068_v41 }
 0x117   :  { %v1179_v16 = vpop.f32.mrf.mxu0  ;;  %v1304_v1 = vpop.f32.mrf.mxu1 }
 0x118   :  { %v1180_v2 = vadd.f32 %v1179_v16, %v1062_v11  ;;  %v1313_v17 = vadd.f32 %v9394_v19, %v1187_v6 }
 0x119   :  { %v9383_v15 = vpop.f32.mrf.mxu0  ;;  %v9397_v62 = vpop.f32.mrf.mxu1 }
 0x11a   :  { %v1201_v40 = vadd.f32 %v9383_v15, %v1080_v12  ;;  %v1305_v16 = vadd.f32 %v1304_v1, %v1180_v2  ;;  %v1166_v12 = vadd.f32 %v1165_v32, %v1050_v27 }
 0x11b   :  { %v1193_v10 = vpop.f32.mrf.mxu0  ;;  %v1320_v61 = vpop.f32.mrf.mxu1 }
 0x11c   :  { %v1194_v22 = vadd.f32 %v1193_v10, %v1074_v4  ;;  %v1329_v59 = vadd.f32 %v9397_v62, %v1201_v40  ;;  %v1289_v18 = vadd.f32 %v10880_v51, %v1166_v12 }
 0x11d   :  { %v9386_v9 = vpop.f32.mrf.mxu0  ;;  %v9400_v56 = vpop.f32.mrf.mxu1 }
 0x11e   :  { %v1215_v23 = vadd.f32 %v9386_v9, %v1092_v14  ;;  %v1321_v10 = vadd.f32 %v1320_v61, %v1194_v22  ;;  %v8487_v9 = vld [vmem:[%s13355_s1 + $0xa0] sm:$0xff] }
 0x11f   :  { %v1207_v54 = vpop.f32.mrf.mxu0  ;;  %v1336_v49 = vpop.f32.mrf.mxu1  ;;  %v1605_v20 = vsel %vm1597_vm1, %v8487_v9, 0  ;;  %v8491_v9 = vld [vmem:[%s13355_s1 + $0xc0] sm:$0xff] }
 0x120   :  { %v1208_v21 = vadd.f32 %v1207_v54, %v1086_v13  ;;  %v1345_v24 = vadd.f32 %v9400_v56, %v1215_v23  ;;  %v8488_v56 = vld [vmem:[%s13355_s1 + $0xa8] sm:$0xff] }
 0x121   :  { %v9405_v46 = vpop.f32.mrf.mxu0  ;;  %v10882_v45 = vpop.f32.mrf.mxu1  ;;  %v1608_v43 = vsel %vm1597_vm1, %v8488_v56, 0 }
 0x122   :  { %v1337_v28 = vadd.f32 %v1336_v49, %v1208_v21  ;;  %v1425_v22 = vadd.f32 %v9405_v46, %v1297_v26  ;;  %v10939_v38 = vand.u32 4294901760, %v1608_v43 }
 0x123   :  { %v1418_v53 = vpop.f32.mrf.mxu0  ;;  %v10884_v60 = vpop.f32.mrf.mxu1 }
 0x125   :  { %v9408_v5 = vpop.f32.mrf.mxu0  ;;  %v9422_v3 = vpop.f32.mrf.mxu1 }
 0x126   :  { %v1437_v4 = vadd.f32 %v9408_v5, %v1313_v17  ;;  %v1419_v5 = vadd.f32 %v1418_v53, %v1289_v18  ;;  %v1539_v53 = vadd.f32 %v10882_v45, %v1425_v22  ;;  %v10922_v17 = vand.u32 4294901760, %v1605_v20 }
 0x127   :  { %v1430_v33 = vpop.f32.mrf.mxu0  ;;  %v1544_v52 = vpop.f32.mrf.mxu1  ;;  %v13410_v45 = vand.u32 4294901760, %v10908_v31 }
 0x128   :  { %v1431_v39 = vadd.f32 %v1430_v33, %v1305_v16  ;;  %v1551_v61 = vadd.f32 %v9422_v3, %v1437_v4  ;;  %v8489_v3 = vld [vmem:[%s13355_s1 + $0xb0] sm:$0xff]  ;;  %13518 = vst [vmem:[#allocation63_spill] sm:$0xff] %v10922_v17  ;;  %v10955_v12 = vand.u32 4294901760, %v1539_v53 }
 0x129   :  { %v9411_v15 = vpop.f32.mrf.mxu0  ;;  %v9425_v29 = vpop.f32.mrf.mxu1 }
 0x12a   :  { %v1449_v11 = vadd.f32 %v9411_v15, %v1329_v59  ;;  %v1545_v49 = vadd.f32 %v1544_v52, %v1431_v39  ;;  %v10911_v46 = vand.u32 4294901760, %v1551_v61  ;;  %v8490_v52 = vld [vmem:[%s13355_s1 + $0xb8] sm:$0xff]  ;;  %v1611_v59 = vsel %vm1597_vm1, %v8489_v3, 0 }
 0x12b   :  { %v1442_v41 = vpop.f32.mrf.mxu0  ;;  %v1556_v37 = vpop.f32.mrf.mxu1  ;;  %v1614_v16 = vsel %vm1597_vm1, %v8490_v52, 0  ;;  %v11001_v22 = vsub.f32 %v1539_v53, %v10955_v12 }
 0x12c   :  { %v1563_v8 = vadd.f32 %v9425_v29, %v1449_v11  ;;  %v1443_v19 = vadd.f32 %v1442_v41, %v1321_v10  ;;  %v10925_v27 = vand.u32 4294901760, %v1545_v49  ;;  %v1533_v29 = vadd.f32 %v10884_v60, %v1419_v5 }
 0x12d   :  { %v9414_v34 = vpop.f32.mrf.mxu0  ;;  %v9428_v54 = vpop.f32.mrf.mxu1  ;;  %v10943_v10 = vsub.f32 %v1551_v61, %v10911_v46  ;;  %v10959_v41 = vsub.f32 %v1605_v20, %v10922_v17  ;;  %v8492_v61 = vld [vmem:[%s13355_s1 + $0xc8] sm:$0xff] }
 0x12e   :  { %v10895_v62 = vand.u32 4294901760, %v1563_v8  ;;  %v1557_v1 = vadd.f32 %v1556_v37, %v1443_v19  ;;  %v1461_v6 = vadd.f32 %v9414_v34, %v1345_v24  ;;  %v10961_v37 = vand.u32 4294901760, %v1611_v59 }
 0x12f   :  { %v1454_v2 = vpop.f32.mrf.mxu0  ;;  %v1568_v23 = vpop.f32.mrf.mxu1  ;;  %v10964_v24 = vsub.f32 %v1545_v49, %v10925_v27  ;;  %v10978_v26 = vand.u32 4294901760, %v1533_v29  ;;  %v10985_v34 = vsub.f32 %v1608_v43, %v10939_v38  ;;  %v10998_v18 = vand.u32 4294901760, %v10943_v10 }
 0x130   :  { %v10902_v13 = vand.u32 4294901760, %v1557_v1  ;;  %v1575_v14 = vadd.f32 %v9428_v54, %v1461_v6  ;;  %v1455_v40 = vadd.f32 %v1454_v2, %v1337_v28  ;;  %v10914_v32 = vsub.f32 %v1563_v8, %v10895_v62  ;;  %13519 = vst [vmem:[#allocation64_spill] sm:$0xff] %v10961_v37 }
 0x131   :  { %v1738_v28 = vsub.f32 %v10908_v31, %v13410_v45  ;;  %v10987_v54 = vand.u32 4294901760, %v1614_v16  ;;  %v13409_v2 = vand.u32 4294901760, %v10959_v41  ;;  %v11006_v20 = vsub.f32 %v1611_v59, %v10961_v37 }
 0x132   :  { %v10916_v51 = vand.u32 4294901760, %v1575_v14  ;;  %v1569_v33 = vadd.f32 %v1568_v23, %v1455_v40  ;;  %v10928_v25 = vsub.f32 %v1557_v1, %v10902_v13  ;;  %v10953_v60 = vand.u32 4294901760, %v10914_v32 }
 0x133   :  { %v1617_v49 = vsel %vm1597_vm1, %v8491_v9, 0  ;;  %v11013_v3 = vand.u32 4294901760, %v10964_v24  ;;  %v1620_v5 = vsel %vm1597_vm1, %v8492_v61, 0  ;;  %v11017_v23 = vsub.f32 %v1533_v29, %v10978_v26 }
 0x134   :  { %v10931_v21 = vsub.f32 %v1575_v14, %v10916_v51  ;;  %v10933_v15 = vand.u32 4294901760, %v1569_v33  ;;  %9429 = vmatprep.subr.mxu0 %v10916_v51  ;;  %v10973_v19 = vand.u32 4294901760, %v10928_v25  ;;  %v1939_v56 = vsub.f32 %v10914_v32, %v10953_v60 }
 0x135   :  { %9430 = vmatpush3.msra.mxu0 %v10916_v51  ;;  %v13411_v43 = vand.u32 4294901760, %v10985_v34  ;;  %v1953_v53 = vsub.f32 %v10943_v10, %v10998_v18  ;;  %v11028_v59 = vsub.f32 %v1614_v16, %v10987_v54  ;;  %v11030_v29 = vand.u32 4294901760, %v1617_v49  ;;  %v8494_v16 = vld [vmem:[%s13355_s1 + $0xd8] sm:$0xff] }
 0x136   :  { %v10946_v4 = vsub.f32 %v1569_v33, %v10933_v15  ;;  %9431 = vmatprep.subr.mxu0 %v10933_v15  ;;  %v10950_v11 = vand.u32 4294901760, %v10931_v21  ;;  %v1946_v40 = vsub.f32 %v10928_v25, %v10973_v19  ;;  %v8493_v33 = vld [vmem:[%s13355_s1 + $0xd0] sm:$0xff]  ;;  %v1940_v52 = vand.u32 4294901760, %v1939_v56 }
 0x137   :  { %9432 = vmatpush3.msra.mxu0 %v10933_v15  ;;  %v1748_v9 = vsub.f32 %v10959_v41, %v13409_v2  ;;  %v11037_v61 = vand.u32 4294901760, %v11001_v22  ;;  %v1758_v2 = vsub.f32 %v10985_v34, %v13411_v43  ;;  %v11054_v45 = vand.u32 4294901760, %v11017_v23 }
 0x138   :  { %9433 = vmatprep.subr.mxu0 %v10895_v62  ;;  %v1925_v39 = vsub.f32 %v10931_v21, %v10950_v11  ;;  %v10970_v8 = vand.u32 4294901760, %v10946_v4  ;;  %v11059_v56 = vsub.f32 %v1617_v49, %v11030_v29 }
 0x139   :  { %9434 = vmatpush3.msra.mxu0 %v10895_v62  ;;  %v1749_v43 = vand.u32 4294901760, %v1748_v9  ;;  %v1967_v36 = vsub.f32 %v11001_v22, %v11037_v61  ;;  %v1759_v9 = vand.u32 4294901760, %v1758_v2  ;;  %v8497_v2 = vld [vmem:[%s13355_s1 + $0xf0] sm:$0xff] }
 0x13a   :  { %9435 = vmatprep.subr.mxu0 %v10902_v13  ;;  %v1926_v1 = vand.u32 4294901760, %v1925_v39  ;;  %v1932_v6 = vsub.f32 %v10946_v4, %v10970_v8  ;;  %v1739_v39 = vand.u32 4294901760, %v1738_v28  ;;  %v1960_v28 = vsub.f32 %v10964_v24, %v11013_v3 }
 0x13b   :  { %9436 = vmatpush3.msra.mxu0 %v10902_v13 }
 0x13c   :  { %9437 = vmatprep.subr.mxu0 %v10911_v46  ;;  %9472 = vmatprep.subr.mxu1 %v1926_v1  ;;  %v1933_v14 = vand.u32 4294901760, %v1932_v6  ;;  %v1947_v6 = vand.u32 4294901760, %v1946_v40  ;;  %v1954_v40 = vand.u32 4294901760, %v1953_v53  ;;  %v1961_v49 = vand.u32 4294901760, %v1960_v28 }
 0x13d   :  { %9438 = vmatpush3.msra.mxu0 %v10911_v46  ;;  %9473 = vmatpush3.msra.mxu1 %v1926_v1  ;;  %v11039_v1 = vand.u32 4294901760, %v1620_v5  ;;  %v13521_v28 = vand.u32 4294901760, %v11028_v59 }
 0x13e   :  { %9439 = vmatprep.subr.mxu0 %v10925_v27  ;;  %9474 = vmatprep.subr.mxu1 %v1933_v14 }
 0x13f   :  { %9440 = vmatpush3.msra.mxu0 %v10925_v27  ;;  %9475 = vmatpush3.msra.mxu1 %v1933_v14  ;;  %v1623_v14 = vsel %vm1597_vm1, %v8493_v33, 0  ;;  %v1626_v33 = vsel %vm1597_vm1, %v8494_v16, 0  ;;  %v11069_v53 = vsub.f32 %v1620_v5, %v11039_v1  ;;  %v13520_v16 = vand.u32 4294901760, %v11006_v20 }
 0x140   :  { %9441 = vmatprep.subr.mxu0 %v10955_v12  ;;  %9476 = vmatprep.subr.mxu1 %v1940_v52  ;;  %v11071_v50 = vand.u32 4294901760, %v1623_v14  ;;  %v1974_v5 = vsub.f32 %v11017_v23, %v11054_v45  ;;  %v11082_v48 = vand.u32 4294901760, %v1626_v33 }
 0x141   :  { %9442 = vmatpush3.msra.mxu0 %v10955_v12  ;;  %9477 = vmatpush3.msra.mxu1 %v1940_v52  ;;  %v8495_v52 = vld [vmem:[%s13355_s1 + $0xe0] sm:$0xff]  ;;  %v1768_v35 = vsub.f32 %v11006_v20, %v13520_v16  ;;  %v1778_v16 = vsub.f32 %v11028_v59, %v13521_v28  ;;  %v13412_v0 = vand.u32 4294901760, %v11069_v53 }
 0x142   :  { %9443 = vmatprep.subr.mxu0 %v10978_v26  ;;  %9478 = vmatprep.subr.mxu1 %v1947_v6 }
 0x143   :  { %9444 = vmatpush3.msra.mxu0 %v10978_v26  ;;  %9479 = vmatpush3.msra.mxu1 %v1947_v6  ;;  %v8496_v6 = vld [vmem:[%s13355_s1 + $0xe8] sm:$0xff]  ;;  %v1769_v28 = vand.u32 4294901760, %v1768_v35  ;;  %v13522_v35 = vand.u32 4294901760, %v11059_v56 }
 0x144   :  { %9446 = vmatmul.mubr.f32.vlgmr.msra.gmra.mxu0 %v1739_v39  ;;  %9480 = vmatprep.subr.mxu1 %v1954_v40  ;;  %v1629_v39 = vsel %vm1597_vm1, %v8495_v52, 0  ;;  %v11096_v52 = vsub.f32 %v1623_v14, %v11071_v50  ;;  %v1635_v14 = vsel %vm1597_vm1, %v8497_v2, 0 }
 0x145   :  { %9515 = vmatprep.subr.mxu0 %v10931_v21  ;;  %9481 = vmatpush3.msra.mxu1 %v1954_v40  ;;  %v1968_v40 = vand.u32 4294901760, %v1967_v36  ;;  %v11100_v47 = vand.u32 4294901760, %v1629_v39  ;;  %v1975_v36 = vand.u32 4294901760, %v1974_v5 }
 0x146   :  { %9516 = vmatpush3.msra.mxu0 %v10931_v21  ;;  %9482 = vmatprep.subr.mxu1 %v1961_v49  ;;  %v1632_v21 = vsel %vm1597_vm1, %v8496_v6, 0 }
 0x147   :  { %9517 = vmatprep.subr.mxu0 %v10946_v4  ;;  %9448 = vmatprep.mubr.f32.mxu0 %v1749_v43  ;;  %v11106_v43 = vsub.f32 %v1626_v33, %v11082_v48  ;;  %v11113_v6 = vand.u32 4294901760, %v1632_v21  ;;  %v1798_v33 = vsub.f32 %v11069_v53, %v13412_v0  ;;  %v11126_v2 = vsub.f32 %v1629_v39, %v11100_v47 }
 0x148   :  { %9483 = vmatpush3.msra.mxu1 %v1961_v49  ;;  %9518 = vmatpush3.msra.mxu0 %v10946_v4  ;;  %v1779_v49 = vand.u32 4294901760, %v1778_v16  ;;  %v1788_v4 = vsub.f32 %v11059_v56, %v13522_v35  ;;  %v1638_v16 = vsel %vm1597_vm1, %v8498_v44, 0  ;;  %v8501_v44 = vld [vmem:[%s13355_s1 + $0x110] sm:$0xff] }
 0x149   :  { %9449 = vmatmul.mubr.f32.gmra.mxu0 %v1759_v9  ;;  %9484 = vmatprep.subr.mxu1 %v1968_v40  ;;  %v8499_v9 = vld [vmem:[%s13355_s1 + $0x100] sm:$0xff]  ;;  %v11143_v5 = vand.u32 4294901760, %v1638_v16 }
 0x14a   :  { %9519 = vmatprep.subr.mxu0 %v10914_v32  ;;  %9485 = vmatpush3.msra.mxu1 %v1968_v40  ;;  %v11128_v40 = vand.u32 4294901760, %v1635_v14  ;;  %v1641_v0 = vsel %vm1597_vm1, %v8499_v9, 0  ;;  %v1789_v39 = vand.u32 4294901760, %v1788_v4 }
 0x14b   :  { %9520 = vmatpush3.msra.mxu0 %v10914_v32  ;;  %9486 = vmatprep.subr.mxu1 %v1975_v36  ;;  %v8500_v32 = vld [vmem:[%s13355_s1 + $0x108] sm:$0xff]  ;;  %v11157_v4 = vand.u32 4294901760, %v1641_v0 }
 0x14c   :  { %9521 = vmatprep.subr.mxu0 %v10928_v25  ;;  %9451 = vmatprep.mubr.f32.mxu0 %v1769_v28  ;;  %v11141_v28 = vsub.f32 %v1632_v21, %v11113_v6  ;;  %v1644_v35 = vsel %vm1597_vm1, %v8500_v32, 0 }
 0x14d   :  { %9487 = vmatpush3.msra.mxu1 %v1975_v36  ;;  %9522 = vmatpush3.msra.mxu0 %v10928_v25  ;;  %v1799_v25 = vand.u32 4294901760, %v1798_v33  ;;  %v13523_v36 = vand.u32 4294901760, %v11096_v52  ;;  %v8502_v33 = vld [vmem:[%s13355_s1 + $0x118] sm:$0xff] }
 0x14e   :  { %9452 = vmatmul.mubr.f32.gmra.mxu0 %v1779_v49  ;;  %9489 = vmatmul.mubr.f32.vlgmr.msra.gmra.mxu1 %v10893_v58  ;;  %v11155_v49 = vsub.f32 %v1635_v14, %v11128_v40  ;;  %v1647_v58 = vsel %vm1597_vm1, %v8501_v44, 0  ;;  %v11173_v44 = vand.u32 4294901760, %v1644_v35  ;;  %v1650_v42 = vsel %vm1597_vm1, %v8502_v33, 0 }
 0x14f   :  { %9523 = vmatprep.subr.mxu0 %v10943_v10  ;;  %9558 = vmatprep.subr.mxu1 %v10916_v51  ;;  %v1808_v9 = vsub.f32 %v11096_v52, %v13523_v36  ;;  %v11171_v36 = vsub.f32 %v1638_v16, %v11143_v5  ;;  %v11177_v21 = vand.u32 4294901760, %v1647_v58 }
 0x150   :  { %9524 = vmatpush3.msra.mxu0 %v10943_v10  ;;  %9559 = vmatpush3.msra.mxu1 %v10916_v51  ;;  %v13524_v10 = vand.u32 4294901760, %v11106_v43  ;;  %v13419_v16 = vand.u32 4294901760, %v11155_v49 }
 0x151   :  { %9525 = vmatprep.subr.mxu0 %v10964_v24  ;;  %9560 = vmatprep.subr.mxu1 %v10933_v15 }
 0x152   :  { %v1818_v32 = vsub.f32 %v11106_v43, %v13524_v10  ;;  %9454 = vmatprep.mubr.f32.mxu0 %v1789_v39  ;;  %9491 = vmatprep.mubr.f32.mxu1 %v10922_v17  ;;  %v1809_v39 = vand.u32 4294901760, %v1808_v9  ;;  %v13525_v10 = vand.u32 4294901760, %v11126_v2  ;;  %v11186_v17 = vsub.f32 %v1641_v0, %v11157_v4 }
 0x153   :  { %9526 = vmatpush3.msra.mxu0 %v10964_v24  ;;  %9561 = vmatpush3.msra.mxu1 %v10933_v15  ;;  %v11199_v0 = vand.u32 4294901760, %v1650_v42 }
 0x154   :  { %9455 = vmatmul.mubr.f32.gmra.mxu0 %v1799_v25  ;;  %9492 = vmatmul.mubr.f32.gmra.mxu1 %v10939_v38  ;;  %v1828_v14 = vsub.f32 %v11126_v2, %v13525_v10  ;;  %v1819_v24 = vand.u32 4294901760, %v1818_v32  ;;  %v13526_v25 = vand.u32 4294901760, %v11141_v28  ;;  %v11197_v10 = vsub.f32 %v1644_v35, %v11173_v44 }
 0x155   :  { %9527 = vmatprep.subr.mxu0 %v11001_v22  ;;  %9562 = vmatprep.subr.mxu1 %v10895_v62  ;;  %v11204_v32 = vsub.f32 %v1647_v58, %v11177_v21  ;;  %v1867_v35 = vand.u32 4294901760, %v11186_v17  ;;  %v13527_v58 = vand.u32 4294901760, %v11171_v36 }
 0x156   :  { %9528 = vmatpush3.msra.mxu0 %v11001_v22  ;;  %9563 = vmatpush3.msra.mxu1 %v10895_v62  ;;  %v1838_v9 = vsub.f32 %v11141_v28, %v13526_v25  ;;  %v1829_v22 = vand.u32 4294901760, %v1828_v14  ;;  %v1848_v25 = vsub.f32 %v11155_v49, %v13419_v16  ;;  %v1877_v14 = vand.u32 4294901760, %v11197_v10 }
 0x157   :  { %9529 = vmatprep.subr.mxu0 %v11017_v23  ;;  %9564 = vmatprep.subr.mxu1 %v10902_v13 }
 0x158   :  { %9457 = vmatprep.mubr.f32.mxu0 %v1809_v39  ;;  %9494 = vmatprep.mubr.f32.mxu1 %v10961_v37  ;;  %v1839_v33 = vand.u32 4294901760, %v1838_v9  ;;  %v1858_v39 = vsub.f32 %v11171_v36, %v13527_v58  ;;  %v11219_v37 = vsub.f32 %v1650_v42, %v11199_v0  ;;  %v1868_v9 = vsub.f32 %v11186_v17, %v1867_v35 }
 0x159   :  { %9530 = vmatpush3.msra.mxu0 %v11017_v23  ;;  %9565 = vmatpush3.msra.mxu1 %v10902_v13  ;;  %v13420_v23 = vand.u32 4294901760, %v11204_v32  ;;  %v1878_v58 = vsub.f32 %v11197_v10, %v1877_v14 }
 0x15a   :  { %9458 = vmatmul.mubr.f32.gmra.mxu0 %v1819_v24  ;;  %9495 = vmatmul.mubr.f32.gmra.mxu1 %v10987_v54  ;;  %v1849_v24 = vand.u32 4294901760, %v1848_v25  ;;  %v1859_v42 = vand.u32 4294901760, %v1858_v39  ;;  %v1897_v16 = vand.u32 4294901760, %v11219_v37  ;;  %v1869_v25 = vand.u32 4294901760, %v1868_v9  ;;  %v13543_v9 = vld [vmem:[#allocation41_spill] sm:$0xff] }
 0x15b   :  { %9566 = vmatprep.subr.mxu1 %v10911_v46  ;;  %9601 = vmatprep.subr.mxu0 %v10950_v11 }
 0x15c   :  { %9567 = vmatpush3.msra.mxu1 %v10911_v46  ;;  %9460 = vmatprep.mubr.f32.mxu0 %v1829_v22  ;;  %v1888_v22 = vsub.f32 %v11204_v32, %v13420_v23  ;;  %v1898_v39 = vsub.f32 %v11219_v37, %v1897_v16 }
 0x15d   :  { %9568 = vmatprep.subr.mxu1 %v10925_v27  ;;  %9497 = vmatprep.mubr.f32.mxu1 %v11030_v29 }
 0x15e   :  { %9569 = vmatpush3.msra.mxu1 %v10925_v27  ;;  %9461 = vmatmul.mubr.f32.gmra.mxu0 %v1839_v33  ;;  %v1879_v33 = vand.u32 4294901760, %v1878_v58  ;;  %v1889_v23 = vand.u32 4294901760, %v1888_v22  ;;  %v13545_v22 = vld [vmem:[#allocation61_spill] sm:$0xff] }
 0x15f   :  { %9498 = vmatmul.mubr.f32.gmra.mxu1 %v11039_v1  ;;  %9570 = vmatprep.subr.mxu1 %v10955_v12 }
 0x160   :  { %9571 = vmatpush3.msra.mxu1 %v10955_v12  ;;  %9463 = vmatprep.mubr.f32.mxu0 %v1849_v24  ;;  %v1899_v24 = vand.u32 4294901760, %v1898_v39  ;;  %v13549_v39 = vld [vmem:[#allocation57_spill] sm:$0xff] }
 0x161   :  { %9572 = vmatprep.subr.mxu1 %v10978_v26  ;;  %9500 = vmatprep.mubr.f32.mxu1 %v11071_v50 }
 0x162   :  { %9573 = vmatpush3.msra.mxu1 %v10978_v26  ;;  %9464 = vmatmul.mubr.f32.gmra.mxu0 %v1859_v42 }
 0x163   :  { %9501 = vmatmul.mubr.f32.gmra.mxu1 %v11082_v48  ;;  %9644 = vmatprep.subr.mxu1 %v10916_v51 }
 0x164   :  { %9466 = vmatprep.mubr.f32.mxu0 %v1869_v25  ;;  %9503 = vmatprep.mubr.f32.mxu1 %v11100_v47  ;;  %v13546_v25 = vand.u32 4294901760, %v11106_v43 }
 0x166   :  { %9467 = vmatmul.mubr.f32.gmra.mxu0 %v1879_v33 }
 0x167   :  { %9504 = vmatmul.mubr.f32.gmra.mxu1 %v11113_v6  ;;  %9469 = vmatprep.mubr.f32.mxu0 %v1889_v23  ;;  %v13542_v23 = vld [vmem:[#allocation40_spill] sm:$0xff] }
 0x168   :  { %9506 = vmatprep.mubr.f32.mxu1 %v11128_v40  ;;  %v295_v42 = vadd.f32 %v13543_v9, %v13542_v23  ;;  %v13564_v9 = vld [vmem:[#allocation56_spill] sm:$0xff] }
 0x16a   :  { %9470 = vmatmul.mubr.f32.gmra.mxu0 %v1899_v24 }
 0x16b   :  { %9507 = vmatmul.mubr.f32.gmra.mxu1 %v11143_v5  ;;  %9531 = vmatprep.mubr.f32.mxu0 %v10817_v7 }
 0x16c   :  { %9509 = vmatprep.mubr.f32.mxu1 %v11157_v4 }
 0x16e   :  { %9532 = vmatmul.mubr.f32.vlgmr.msra.gmra.mxu0 %v10908_v31 }
 0x16f   :  { %9510 = vmatmul.mubr.f32.gmra.mxu1 %v11173_v44  ;;  %9602 = vmatpush3.msra.mxu0 %v10950_v11  ;;  %v13528_v11 = vand.u32 4294901760, %v10817_v7  ;;  %v13530_v7 = vand.u32 4294901760, %v10959_v41 }
 0x170   :  { %9603 = vmatprep.subr.mxu0 %v10970_v8  ;;  %9512 = vmatprep.mubr.f32.mxu1 %v11177_v21 }
 0x171   :  { %9604 = vmatpush3.msra.mxu0 %v10970_v8  ;;  %9534 = vmatprep.mubr.f32.mxu0 %v10959_v41  ;;  %v13529_v8 = vand.u32 4294901760, %v10908_v31  ;;  %v13532_v41 = vand.u32 4294901760, %v11006_v20 }
 0x172   :  { %9605 = vmatprep.subr.mxu0 %v10953_v60  ;;  %9535 = vmatmul.mubr.f32.gmra.mxu0 %v10985_v34 }
 0x173   :  { %9513 = vmatmul.mubr.f32.gmra.mxu1 %v11199_v0  ;;  %9606 = vmatpush3.msra.mxu0 %v10953_v60  ;;  %v11279_v60 = vand.u32 4294901760, %v10878_v30 }
 0x174   :  { %9607 = vmatprep.subr.mxu0 %v10973_v19  ;;  %9537 = vmatprep.mubr.f32.mxu0 %v11006_v20  ;;  %v13538_v20 = vld [vmem:[#allocation48_spill] sm:$0xff] }
 0x175   :  { %9608 = vmatpush3.msra.mxu0 %v10973_v19  ;;  %9574 = vmatprep.mubr.f32.mxu1 %v13528_v11  ;;  %v11292_v31 = vsub.f32 %v10878_v30, %v11279_v60  ;;  %v13537_v19 = vld [vmem:[#allocation50_spill] sm:$0xff] }
 0x176   :  { %9609 = vmatprep.subr.mxu0 %v10998_v18  ;;  %9538 = vmatmul.mubr.f32.gmra.mxu0 %v11028_v59  ;;  %v13550_v11 = vld [vmem:[#allocation38_spill] sm:$0xff] }
 0x177   :  { %9575 = vmatmul.mubr.f32.vlgmr.msra.gmra.mxu1 %v13529_v8  ;;  %9610 = vmatpush3.msra.mxu0 %v10998_v18  ;;  %v13551_v8 = vld [vmem:[#allocation39_spill] sm:$0xff] }
 0x178   :  { %9645 = vmatpush3.msra.mxu1 %v10916_v51  ;;  %9611 = vmatprep.subr.mxu0 %v11013_v3  ;;  %v13531_v51 = vand.u32 4294901760, %v10985_v34 }
 0x179   :  { %9646 = vmatprep.subr.mxu1 %v10933_v15  ;;  %9612 = vmatpush3.msra.mxu0 %v11013_v3 }
 0x17a   :  { %9647 = vmatpush3.msra.mxu1 %v10933_v15  ;;  %9540 = vmatprep.mubr.f32.mxu0 %v11059_v56  ;;  %v319_v15 = vadd.f32 %v10838_v57, %v10836_v55  ;;  %v13533_v55 = vand.u32 4294901760, %v11028_v59  ;;  %v13534_v57 = vand.u32 4294901760, %v11059_v56  ;;  %v13541_v56 = vand.u32 4294901760, %v11096_v52 }
 0x17b   :  { %9577 = vmatprep.mubr.f32.mxu1 %v13530_v7  ;;  %9613 = vmatprep.subr.mxu0 %v11037_v61  ;;  %v283_v7 = vadd.f32 %v13551_v8, %v13550_v11 }
 0x17c   :  { %9648 = vmatprep.subr.mxu1 %v10895_v62  ;;  %9541 = vmatmul.mubr.f32.gmra.mxu0 %v11069_v53  ;;  %v441_v30 = vadd.f32 %v10852_v63, %v319_v15  ;;  %v13535_v63 = vld [vmem:[#allocation42_spill] sm:$0xff]  ;;  %v13552_v15 = vand.u32 4294901760, %v11141_v28 }
 0x17d   :  { %9578 = vmatmul.mubr.f32.gmra.mxu1 %v13531_v51  ;;  %9614 = vmatpush3.msra.mxu0 %v11037_v61  ;;  %v13540_v61 = vand.u32 4294901760, %v11069_v53  ;;  %v13544_v53 = vld [vmem:[#allocation49_spill] sm:$0xff] }
 0x17e   :  { %9649 = vmatpush3.msra.mxu1 %v10895_v62  ;;  %9615 = vmatprep.subr.mxu0 %v11054_v45  ;;  %v11310_v62 = vand.u32 4294901760, %v11292_v31  ;;  %v570_v34 = vadd.f32 %v13537_v19, %v441_v30  ;;  %v13558_v19 = vld [vmem:[#allocation54_spill] sm:$0xff] }
 0x17f   :  { %9650 = vmatprep.subr.mxu1 %v10902_v13  ;;  %9616 = vmatpush3.msra.mxu0 %v11054_v45 }
 0x180   :  { %9651 = vmatpush3.msra.mxu1 %v10902_v13  ;;  %9543 = vmatprep.mubr.f32.mxu0 %v11096_v52  ;;  %v13536_v13 = vld [vmem:[#allocation43_spill] sm:$0xff]  ;;  %v3247_v18 = vsub.f32 %v11292_v31, %v11310_v62  ;;  %v13547_v52 = vand.u32 4294901760, %v11126_v2 }
 0x181   :  { %9580 = vmatprep.mubr.f32.mxu1 %v13532_v41  ;;  %9652 = vmatprep.subr.mxu1 %v10911_v46  ;;  %v307_v45 = vadd.f32 %v13536_v13, %v13535_v63  ;;  %v13555_v41 = vld [vmem:[#allocation47_spill] sm:$0xff] }
 0x182   :  { %9687 = vmatprep.subr.mxu0 %v11279_v60  ;;  %9544 = vmatmul.mubr.f32.gmra.mxu0 %v11106_v43  ;;  %v13553_v43 = vand.u32 4294901760, %v11155_v49  ;;  %v13557_v13 = vld [vmem:[#allocation59_spill] sm:$0xff] }
 0x183   :  { %9581 = vmatmul.mubr.f32.gmra.mxu1 %v13533_v55  ;;  %9546 = vmatprep.mubr.f32.mxu0 %v11126_v2  ;;  %v427_v3 = vadd.f32 %v13538_v20, %v307_v45  ;;  %v13554_v2 = vld [vmem:[#allocation44_spill] sm:$0xff]  ;;  %v11368_v45 = vand.u32 4294901760, %v13557_v13  ;;  %v13561_v20 = vld [vmem:[#allocation45_spill] sm:$0xff] }
 0x184   :  { %9653 = vmatpush3.msra.mxu1 %v10911_v46  ;;  %9583 = vmatprep.mubr.f32.mxu1 %v13534_v57  ;;  %v13539_v46 = vld [vmem:[#allocation60_spill] sm:$0xff]  ;;  %v399_v30 = vadd.f32 %v13554_v2, %v283_v7  ;;  %v13556_v57 = vld [vmem:[#allocation58_spill] sm:$0xff] }
 0x185   :  { %9654 = vmatprep.subr.mxu1 %v10925_v27  ;;  %v688_v59 = vadd.f32 %v13539_v46, %v570_v34  ;;  %v554_v58 = vadd.f32 %v13544_v53, %v427_v3  ;;  %v811_v2 = vld [vmem:[%s13355_s1] sm:$0xff] }
 0x186   :  { %9655 = vmatpush3.msra.mxu1 %v10925_v27  ;;  %9547 = vmatmul.mubr.f32.gmra.mxu0 %v11141_v28  ;;  %v11338_v27 = vand.u32 4294901760, %v3247_v18  ;;  %v13559_v18 = vand.u32 4294901760, %v11171_v36  ;;  %v522_v3 = vadd.f32 %v13561_v20, %v399_v30 }
 0x187   :  { %9656 = vmatprep.subr.mxu1 %v10955_v12  ;;  %9584 = vmatmul.mubr.f32.gmra.mxu1 %v13540_v61  ;;  %v676_v24 = vadd.f32 %v13549_v39, %v554_v58  ;;  %v13562_v61 = vld [vmem:[#allocation62_spill] sm:$0xff] }
 0x188   :  { %9657 = vmatpush3.msra.mxu1 %v10955_v12  ;;  %9549 = vmatprep.mubr.f32.mxu0 %v11155_v49  ;;  %v802_v12 = vadd.f32 %v13545_v22, %v688_v59  ;;  %v13560_v49 = vld [vmem:[#allocation37_spill] sm:$0xff]  ;;  %v11385_v59 = vsub.f32 %v13557_v13, %v11368_v45  ;;  %v13567_v22 = vld [vmem:[#allocation63_spill] sm:$0xff] }
 0x189   :  { %9658 = vmatprep.subr.mxu1 %v10978_v26  ;;  %9586 = vmatprep.mubr.f32.mxu1 %v13541_v56  ;;  %v790_v63 = vadd.f32 %v13556_v57, %v676_v24  ;;  %v13563_v56 = vld [vmem:[#allocation51_spill] sm:$0xff]  ;;  %v812_v57 = vld [vmem:[%s13355_s1 + $0x8] sm:$0xff] }
 0x18a   :  { %9659 = vmatpush3.msra.mxu1 %v10978_v26  ;;  %9550 = vmatmul.mubr.f32.gmra.mxu0 %v11171_v36  ;;  %v13548_v26 = vld [vmem:[#allocation46_spill] sm:$0xff]  ;;  %v11357_v51 = vand.u32 4294901760, %v802_v12  ;;  %v652_v23 = vadd.f32 %v13563_v56, %v522_v3  ;;  %v11390_v36 = vand.u32 4294901760, %v13564_v9 }
 0x18b   :  { %9730 = vmatprep.subr.mxu1 %v11338_v27  ;;  %9587 = vmatmul.mubr.f32.gmra.mxu1 %v13546_v25  ;;  %v413_v33 = vadd.f32 %v13548_v26, %v295_v42  ;;  %v11381_v46 = vand.u32 4294901760, %v790_v63  ;;  %v13565_v42 = vld [vmem:[#allocation55_spill] sm:$0xff]  ;;  %v13569_v26 = vld [vmem:[#allocation64_spill] sm:$0xff] }
 0x18c   :  { %9552 = vmatprep.mubr.f32.mxu0 %v11186_v17  ;;  %9589 = vmatprep.mubr.f32.mxu1 %v13547_v52  ;;  %v11373_v28 = vsub.f32 %v802_v12, %v11357_v51  ;;  %v813_v3 = vld [vmem:[%s13355_s1 + $0x10] sm:$0xff] }
 0x18d   :  { %v538_v55 = vadd.f32 %v13555_v41, %v413_v33  ;;  %v11403_v58 = vsub.f32 %v790_v63, %v11381_v46  ;;  %v13570_v33 = vld [vmem:[#allocation53_spill] sm:$0xff]  ;;  %v2921_v63 = vsel %vm1597_vm1, %v811_v2, 0 }
 0x18e   :  { %9553 = vmatmul.mubr.f32.gmra.mxu0 %v11197_v10  ;;  %v11397_v17 = vand.u32 4294901760, %v11373_v28  ;;  %v11410_v10 = vand.u32 4294901760, %v11385_v59  ;;  %v11427_v39 = vand.u32 4294901760, %v13570_v33  ;;  %v11489_v20 = vand.u32 4294901760, %v2921_v63 }
 0x18f   :  { %9590 = vmatmul.mubr.f32.gmra.mxu1 %v13552_v15  ;;  %9555 = vmatprep.mubr.f32.mxu0 %v11204_v32  ;;  %v664_v34 = vadd.f32 %v13558_v19, %v538_v55  ;;  %v11432_v24 = vand.u32 4294901760, %v11403_v58 }
 0x190   :  { %9592 = vmatprep.mubr.f32.mxu1 %v13553_v43  ;;  %v3254_v52 = vsub.f32 %v11373_v28, %v11397_v17  ;;  %v11452_v15 = vsub.f32 %v13570_v33, %v11427_v39 }
 0x191   :  { %v778_v53 = vadd.f32 %v13565_v42, %v664_v34  ;;  %v3268_v43 = vsub.f32 %v11403_v58, %v11432_v24  ;;  %v2924_v34 = vsel %vm1597_vm1, %v812_v57, 0  ;;  %v815_v42 = vld [vmem:[%s13355_s1 + $0x20] sm:$0xff]  ;;  %v818_v57 = vld [vmem:[%s13355_s1 + $0x38] sm:$0xff] }
 0x192   :  { %9556 = vmatmul.mubr.f32.gmra.mxu0 %v11219_v37  ;;  %v3261_v37 = vsub.f32 %v11385_v59, %v11410_v10  ;;  %v3255_v8 = vand.u32 4294901760, %v3254_v52  ;;  %v11479_v19 = vand.u32 4294901760, %v11452_v15  ;;  %v2933_v33 = vsel %vm1597_vm1, %v815_v42, 0 }
 0x193   :  { %9593 = vmatmul.mubr.f32.gmra.mxu1 %v13559_v18  ;;  %9617 = vmatprep.mubr.f32.mxu0 %v13560_v49  ;;  %v11417_v25 = vand.u32 4294901760, %v778_v53  ;;  %v3269_v13 = vand.u32 4294901760, %v3268_v43  ;;  %v11534_v2 = vand.u32 4294901760, %v2933_v33 }
 0x194   :  { %9595 = vmatprep.mubr.f32.mxu1 %v1867_v35  ;;  %v13566_v35 = vand.u32 4294901760, %v11204_v32  ;;  %v11415_v32 = vsub.f32 %v13564_v9, %v11390_v36  ;;  %v3289_v56 = vsub.f32 %v11452_v15, %v11479_v19  ;;  %v2927_v9 = vsel %vm1597_vm1, %v813_v3, 0 }
 0x195   :  { %v11441_v11 = vsub.f32 %v778_v53, %v11417_v25 }
 0x196   :  { %9618 = vmatmul.mubr.f32.vlgmr.msra.gmra.mxu0 %v13562_v61  ;;  %v11446_v7 = vand.u32 4294901760, %v11415_v32 }
 0x197   :  { %9596 = vmatmul.mubr.f32.gmra.mxu1 %v1877_v14  ;;  %9688 = vmatpush3.msra.mxu0 %v11279_v60  ;;  %v13568_v14 = vld [vmem:[#allocation52_spill] sm:$0xff]  ;;  %v11469_v55 = vand.u32 4294901760, %v11441_v11 }
 0x198   :  { %9689 = vmatprep.subr.mxu0 %v11357_v51  ;;  %9598 = vmatprep.mubr.f32.mxu1 %v13566_v35  ;;  %v766_v12 = vadd.f32 %v13568_v14, %v652_v23  ;;  %v3275_v41 = vsub.f32 %v11415_v32, %v11446_v7  ;;  %v11501_v23 = vand.u32 4294901760, %v2924_v34 }
 0x199   :  { %9690 = vmatpush3.msra.mxu0 %v11357_v51  ;;  %9620 = vmatprep.mubr.f32.mxu0 %v13567_v22 }
 0x19a   :  { %9691 = vmatprep.subr.mxu0 %v11368_v45  ;;  %9621 = vmatmul.mubr.f32.gmra.mxu0 %v10939_v38  ;;  %v3276_v18 = vand.u32 4294901760, %v3275_v41  ;;  %v11522_v52 = vsub.f32 %v2924_v34, %v11501_v23 }
 0x19b   :  { %9599 = vmatmul.mubr.f32.gmra.mxu1 %v1897_v16  ;;  %9692 = vmatpush3.msra.mxu0 %v11368_v45  ;;  %v11438_v16 = vand.u32 4294901760, %v766_v12 }
 0x19c   :  { %9693 = vmatprep.subr.mxu0 %v11381_v46  ;;  %9623 = vmatprep.mubr.f32.mxu0 %v13569_v26  ;;  %v13429_v41 = vand.u32 4294901760, %v11522_v52 }
 0x19d   :  { %9694 = vmatpush3.msra.mxu0 %v11381_v46  ;;  %9660 = vmatprep.mubr.f32.mxu1 %v13560_v49  ;;  %v11462_v30 = vsub.f32 %v766_v12, %v11438_v16  ;;  %v3282_v49 = vsub.f32 %v11441_v11, %v11469_v55  ;;  %v816_v12 = vld [vmem:[%s13355_s1 + $0x28] sm:$0xff] }
 0x19e   :  { %9695 = vmatprep.subr.mxu0 %v11390_v36  ;;  %9624 = vmatmul.mubr.f32.gmra.mxu0 %v10987_v54  ;;  %v2936_v43 = vsel %vm1597_vm1, %v816_v12, 0  ;;  %v3060_v3 = vsub.f32 %v11522_v52, %v13429_v41 }
 0x19f   :  { %9661 = vmatmul.mubr.f32.vlgmr.msra.gmra.mxu1 %v13562_v61  ;;  %9696 = vmatpush3.msra.mxu0 %v11390_v36  ;;  %v814_v61 = vld [vmem:[%s13355_s1 + $0x18] sm:$0xff]  ;;  %v3283_v53 = vand.u32 4294901760, %v3282_v49  ;;  %v2942_v49 = vsel %vm1597_vm1, %v818_v57, 0 }
 0x1a0   :  { %9731 = vmatpush3.msra.mxu1 %v11338_v27  ;;  %9697 = vmatprep.subr.mxu0 %v11417_v25  ;;  %v3262_v27 = vand.u32 4294901760, %v3261_v37  ;;  %v2930_v14 = vsel %vm1597_vm1, %v814_v61, 0  ;;  %v3061_v12 = vand.u32 4294901760, %v3060_v3 }
 0x1a1   :  { %9732 = vmatprep.subr.mxu1 %v3255_v8  ;;  %9698 = vmatpush3.msra.mxu0 %v11417_v25  ;;  %v11528_v37 = vand.u32 4294901760, %v2930_v14 }
 0x1a2   :  { %9733 = vmatpush3.msra.mxu1 %v3255_v8  ;;  %9626 = vmatprep.mubr.f32.mxu0 %v11030_v29 }
 0x1a3   :  { %9663 = vmatprep.mubr.f32.mxu1 %v13567_v22  ;;  %9699 = vmatprep.subr.mxu0 %v11427_v39  ;;  %v11514_v22 = vsub.f32 %v2921_v63, %v11489_v20  ;;  %v11549_v63 = vsub.f32 %v2930_v14, %v11528_v37 }
 0x1a4   :  { %9734 = vmatprep.subr.mxu1 %v3262_v27  ;;  %9627 = vmatmul.mubr.f32.gmra.mxu0 %v11039_v1 }
 0x1a5   :  { %9664 = vmatmul.mubr.f32.gmra.mxu1 %v10939_v38  ;;  %9700 = vmatpush3.msra.mxu0 %v11427_v39  ;;  %v11487_v38 = vand.u32 4294901760, %v11462_v30  ;;  %v13430_v8 = vand.u32 4294901760, %v11514_v22  ;;  %v13425_v61 = vand.u32 4294901760, %v11549_v63 }
 0x1a6   :  { %9735 = vmatpush3.msra.mxu1 %v3262_v27  ;;  %9701 = vmatprep.subr.mxu0 %v11438_v16  ;;  %v817_v27 = vld [vmem:[%s13355_s1 + $0x30] sm:$0xff] }
 0x1a7   :  { %9736 = vmatprep.subr.mxu1 %v3269_v13  ;;  %9702 = vmatpush3.msra.mxu0 %v11438_v16  ;;  %v3296_v35 = vsub.f32 %v11462_v30, %v11487_v38  ;;  %v2939_v34 = vsel %vm1597_vm1, %v817_v27, 0 }
 0x1a8   :  { %9737 = vmatpush3.msra.mxu1 %v3269_v13  ;;  %9629 = vmatprep.mubr.f32.mxu0 %v11071_v50  ;;  %v11551_v13 = vand.u32 4294901760, %v2936_v43 }
 0x1a9   :  { %9666 = vmatprep.mubr.f32.mxu1 %v13569_v26  ;;  %9738 = vmatprep.subr.mxu1 %v3276_v18  ;;  %v11524_v26 = vand.u32 4294901760, %v2927_v9 }
 0x1aa   :  { %9773 = vmatprep.subr.mxu0 %v11292_v31  ;;  %9630 = vmatmul.mubr.f32.gmra.mxu0 %v11082_v48 }
 0x1ab   :  { %9667 = vmatmul.mubr.f32.gmra.mxu1 %v10987_v54  ;;  %9632 = vmatprep.mubr.f32.mxu0 %v11100_v47  ;;  %v3290_v54 = vand.u32 4294901760, %v3289_v56  ;;  %v11572_v56 = vsub.f32 %v2936_v43, %v11551_v13 }
 0x1ac   :  { %9739 = vmatpush3.msra.mxu1 %v3276_v18  ;;  %9669 = vmatprep.mubr.f32.mxu1 %v11030_v29  ;;  %v3297_v29 = vand.u32 4294901760, %v3296_v35  ;;  %v11562_v18 = vsub.f32 %v2933_v33, %v11534_v2  ;;  %v820_v35 = vld [vmem:[%s13355_s1 + $0x48] sm:$0xff]  ;;  %v821_v33 = vld [vmem:[%s13355_s1 + $0x50] sm:$0xff] }
 0x1ad   :  { %9740 = vmatprep.subr.mxu1 %v3283_v53  ;;  %v2948_v27 = vsel %vm1597_vm1, %v820_v35, 0 }
 0x1ae   :  { %9741 = vmatpush3.msra.mxu1 %v3283_v53  ;;  %9633 = vmatmul.mubr.f32.gmra.mxu0 %v11113_v6  ;;  %v11581_v53 = vand.u32 4294901760, %v2942_v49  ;;  %v13421_v14 = vand.u32 4294901760, %v11562_v18 }
 0x1af   :  { %9742 = vmatprep.subr.mxu1 %v3290_v54  ;;  %9670 = vmatmul.mubr.f32.gmra.mxu1 %v11039_v1  ;;  %v11542_v1 = vsub.f32 %v2927_v9, %v11524_v26  ;;  %v11574_v9 = vand.u32 4294901760, %v2939_v34 }
 0x1b0   :  { %9743 = vmatpush3.msra.mxu1 %v3290_v54  ;;  %9635 = vmatprep.mubr.f32.mxu0 %v11128_v40  ;;  %v11606_v57 = vsub.f32 %v2942_v49, %v11581_v53 }
 0x1b1   :  { %9744 = vmatprep.subr.mxu1 %v3297_v29  ;;  %9672 = vmatprep.mubr.f32.mxu1 %v11071_v50  ;;  %v3050_v50 = vsub.f32 %v11514_v22, %v13430_v8  ;;  %v11601_v43 = vsub.f32 %v2939_v34, %v11574_v9  ;;  %v822_v34 = vld [vmem:[%s13355_s1 + $0x58] sm:$0xff] }
 0x1b2   :  { %9745 = vmatpush3.msra.mxu1 %v3297_v29  ;;  %9636 = vmatmul.mubr.f32.gmra.mxu0 %v11143_v5  ;;  %v3080_v29 = vsub.f32 %v11549_v63, %v13425_v61 }
 0x1b3   :  { %9816 = vmatprep.subr.mxu1 %v11279_v60  ;;  %9673 = vmatmul.mubr.f32.gmra.mxu1 %v11082_v48  ;;  %v13427_v48 = vand.u32 4294901760, %v11542_v1  ;;  %v3051_v42 = vand.u32 4294901760, %v3050_v50  ;;  %v3090_v50 = vsub.f32 %v11562_v18, %v13421_v14  ;;  %v823_v14 = vld [vmem:[%s13355_s1 + $0x60] sm:$0xff] }
 0x1b4   :  { %9638 = vmatprep.mubr.f32.mxu0 %v11157_v4  ;;  %9675 = vmatprep.mubr.f32.mxu1 %v11100_v47  ;;  %v819_v47 = vld [vmem:[%s13355_s1 + $0x40] sm:$0xff]  ;;  %v3081_v49 = vand.u32 4294901760, %v3080_v29 }
 0x1b5   :  { %v3070_v54 = vsub.f32 %v11542_v1, %v13427_v48  ;;  %v3091_v29 = vand.u32 4294901760, %v3090_v50 }
 0x1b6   :  { %9639 = vmatmul.mubr.f32.gmra.mxu0 %v11173_v44 }
 0x1b7   :  { %9676 = vmatmul.mubr.f32.gmra.mxu1 %v11113_v6  ;;  %9641 = vmatprep.mubr.f32.mxu0 %v11177_v21  ;;  %v2945_v6 = vsel %vm1597_vm1, %v819_v47, 0  ;;  %v2951_v47 = vsel %vm1597_vm1, %v821_v33, 0  ;;  %v3071_v35 = vand.u32 4294901760, %v3070_v54  ;;  %v13423_v54 = vand.u32 4294901760, %v11606_v57 }
 0x1b8   :  { %9678 = vmatprep.mubr.f32.mxu1 %v11128_v40  ;;  %v13422_v40 = vand.u32 4294901760, %v11572_v56  ;;  %v11612_v3 = vand.u32 4294901760, %v2945_v6  ;;  %v11630_v33 = vand.u32 4294901760, %v2951_v47 }
 0x1ba   :  { %9642 = vmatmul.mubr.f32.gmra.mxu0 %v11199_v0 }
 0x1bb   :  { %9679 = vmatmul.mubr.f32.gmra.mxu1 %v11143_v5  ;;  %9703 = vmatprep.mubr.f32.mxu0 %v3051_v42  ;;  %v11618_v5 = vand.u32 4294901760, %v2948_v27  ;;  %v13424_v42 = vand.u32 4294901760, %v11601_v43 }
 0x1bc   :  { %9681 = vmatprep.mubr.f32.mxu1 %v11157_v4  ;;  %v3100_v4 = vsub.f32 %v11572_v56, %v13422_v40  ;;  %v11636_v40 = vsub.f32 %v2945_v6, %v11612_v3 }
 0x1bd   :  { %v3110_v6 = vsub.f32 %v11601_v43, %v13424_v42 }
 0x1be   :  { %9704 = vmatmul.mubr.f32.vlgmr.msra.gmra.mxu0 %v3061_v12  ;;  %v2954_v12 = vsel %vm1597_vm1, %v822_v34, 0  ;;  %v2957_v34 = vsel %vm1597_vm1, %v823_v14, 0  ;;  %v3120_v14 = vsub.f32 %v11606_v57, %v13423_v54 }
 0x1bf   :  { %9682 = vmatmul.mubr.f32.gmra.mxu1 %v11173_v44  ;;  %9774 = vmatpush3.msra.mxu0 %v11292_v31  ;;  %v824_v44 = vld [vmem:[%s13355_s1 + $0x68] sm:$0xff]  ;;  %v11643_v31 = vsub.f32 %v2948_v27, %v11618_v5  ;;  %v11650_v50 = vand.u32 4294901760, %v2954_v12  ;;  %v11661_v27 = vsub.f32 %v2951_v47, %v11630_v33 }
 0x1c0   :  { %9775 = vmatprep.subr.mxu0 %v11373_v28  ;;  %9684 = vmatprep.mubr.f32.mxu1 %v11177_v21  ;;  %v3101_v21 = vand.u32 4294901760, %v3100_v4  ;;  %v11666_v4 = vand.u32 4294901760, %v2957_v34 }
 0x1c1   :  { %9776 = vmatpush3.msra.mxu0 %v11373_v28  ;;  %9706 = vmatprep.mubr.f32.mxu0 %v3071_v35  ;;  %v825_v28 = vld [vmem:[%s13355_s1 + $0x70] sm:$0xff]  ;;  %v2960_v35 = vsel %vm1597_vm1, %v824_v44, 0  ;;  %v3111_v44 = vand.u32 4294901760, %v3110_v6  ;;  %v11680_v54 = vsub.f32 %v2954_v12, %v11650_v50 }
 0x1c2   :  { %9777 = vmatprep.subr.mxu0 %v11385_v59  ;;  %9707 = vmatmul.mubr.f32.gmra.mxu0 %v3081_v49  ;;  %v13426_v49 = vand.u32 4294901760, %v11636_v40  ;;  %v2963_v47 = vsel %vm1597_vm1, %v825_v28, 0  ;;  %v11682_v42 = vand.u32 4294901760, %v2960_v35  ;;  %v3149_v28 = vand.u32 4294901760, %v11661_v27 }
 0x1c3   :  { %9685 = vmatmul.mubr.f32.gmra.mxu1 %v11199_v0  ;;  %9778 = vmatpush3.msra.mxu0 %v11385_v59  ;;  %v826_v0 = vld [vmem:[%s13355_s1 + $0x78] sm:$0xff]  ;;  %v13428_v59 = vand.u32 4294901760, %v11643_v31  ;;  %v11696_v6 = vand.u32 4294901760, %v2963_v47 }
 0x1c4   :  { %9779 = vmatprep.subr.mxu0 %v11403_v58  ;;  %9709 = vmatprep.mubr.f32.mxu0 %v3091_v29  ;;  %v827_v29 = vld [vmem:[%s13355_s1 + $0x80] sm:$0xff]  ;;  %v2966_v61 = vsel %vm1597_vm1, %v826_v0, 0  ;;  %v3130_v12 = vsub.f32 %v11636_v40, %v13426_v49  ;;  %v11710_v49 = vsub.f32 %v2960_v35, %v11682_v42 }
 0x1c5   :  { %9780 = vmatpush3.msra.mxu0 %v11403_v58  ;;  %9746 = vmatprep.mubr.f32.mxu1 %v11489_v20  ;;  %v3121_v58 = vand.u32 4294901760, %v3120_v14  ;;  %v828_v14 = vld [vmem:[%s13355_s1 + $0x88] sm:$0xff]  ;;  %v3140_v0 = vsub.f32 %v11643_v31, %v13428_v59  ;;  %v11725_v41 = vsub.f32 %v2963_v47, %v11696_v6 }
 0x1c6   :  { %9781 = vmatprep.subr.mxu0 %v11415_v32  ;;  %9710 = vmatmul.mubr.f32.gmra.mxu0 %v3101_v21  ;;  %v11694_v21 = vsub.f32 %v2957_v34, %v11666_v4  ;;  %v13431_v34 = vand.u32 4294901760, %v11680_v54  ;;  %v2972_v59 = vsel %vm1597_vm1, %v828_v14, 0 }
 0x1c7   :  { %9747 = vmatmul.mubr.f32.vlgmr.msra.gmra.mxu1 %v11501_v23  ;;  %9782 = vmatpush3.msra.mxu0 %v11415_v32  ;;  %v2969_v32 = vsel %vm1597_vm1, %v827_v29, 0  ;;  %v11712_v29 = vand.u32 4294901760, %v2966_v61  ;;  %v3141_v8 = vand.u32 4294901760, %v3140_v0  ;;  %v11738_v47 = vand.u32 4294901760, %v2972_v59 }
 0x1c8   :  { %9817 = vmatpush3.msra.mxu1 %v11279_v60  ;;  %9783 = vmatprep.subr.mxu0 %v11441_v11  ;;  %v11719_v48 = vand.u32 4294901760, %v2969_v32  ;;  %v13432_v35 = vand.u32 4294901760, %v11694_v21  ;;  %v3160_v14 = vsub.f32 %v11680_v54, %v13431_v34 }
 0x1c9   :  { %9818 = vmatprep.subr.mxu1 %v11357_v51  ;;  %9784 = vmatpush3.msra.mxu0 %v11441_v11  ;;  %v3150_v11 = vsub.f32 %v11661_v27, %v3149_v28 }
 0x1ca   :  { %9819 = vmatpush3.msra.mxu1 %v11357_v51  ;;  %9712 = vmatprep.mubr.f32.mxu0 %v3111_v44  ;;  %v3131_v44 = vand.u32 4294901760, %v3130_v12  ;;  %v11736_v12 = vsub.f32 %v2966_v61, %v11712_v29  ;;  %v11743_v0 = vsub.f32 %v2969_v32, %v11719_v48  ;;  %v3170_v34 = vsub.f32 %v11694_v21, %v13432_v35 }
 0x1cb   :  { %9749 = vmatprep.mubr.f32.mxu1 %v11524_v26  ;;  %9785 = vmatprep.subr.mxu0 %v11452_v15  ;;  %v13434_v61 = vand.u32 4294901760, %v11725_v41 }
 0x1cc   :  { %9820 = vmatprep.subr.mxu1 %v11368_v45  ;;  %9713 = vmatmul.mubr.f32.gmra.mxu0 %v3121_v58  ;;  %v13433_v58 = vand.u32 4294901760, %v11710_v49  ;;  %v13435_v35 = vand.u32 4294901760, %v11743_v0 }
 0x1cd   :  { %9750 = vmatmul.mubr.f32.gmra.mxu1 %v11528_v37  ;;  %9786 = vmatpush3.msra.mxu0 %v11452_v15  ;;  %v3151_v15 = vand.u32 4294901760, %v3150_v11  ;;  %v3199_v11 = vand.u32 4294901760, %v11736_v12 }
 0x1ce   :  { %9821 = vmatpush3.msra.mxu1 %v11368_v45  ;;  %9787 = vmatprep.subr.mxu0 %v11462_v30  ;;  %v3180_v32 = vsub.f32 %v11710_v49, %v13433_v58 }
 0x1cf   :  { %9822 = vmatprep.subr.mxu1 %v11381_v46  ;;  %9788 = vmatpush3.msra.mxu0 %v11462_v30  ;;  %v3161_v30 = vand.u32 4294901760, %v3160_v14  ;;  %v3190_v14 = vsub.f32 %v11725_v41, %v13434_v61 }
 0x1d0   :  { %9823 = vmatpush3.msra.mxu1 %v11381_v46  ;;  %9715 = vmatprep.mubr.f32.mxu0 %v3131_v44  ;;  %v11758_v44 = vsub.f32 %v2972_v59, %v11738_v47  ;;  %v3181_v59 = vand.u32 4294901760, %v3180_v32 }
 0x1d1   :  { %9752 = vmatprep.mubr.f32.mxu1 %v11534_v2  ;;  %9824 = vmatprep.subr.mxu1 %v11390_v36  ;;  %v3191_v61 = vand.u32 4294901760, %v3190_v14 }
 0x1d2   :  { %9859 = vmatprep.subr.mxu0 %v11310_v62  ;;  %9716 = vmatmul.mubr.f32.gmra.mxu0 %v3141_v8  ;;  %v3171_v8 = vand.u32 4294901760, %v3170_v34  ;;  %v3219_v58 = vand.u32 4294901760, %v11758_v44  ;;  %v3210_v34 = vsub.f32 %v11743_v0, %v13435_v35 }
 0x1d3   :  { %9753 = vmatmul.mubr.f32.gmra.mxu1 %v11551_v13  ;;  %9718 = vmatprep.mubr.f32.mxu0 %v3151_v15  ;;  %v3200_v15 = vsub.f32 %v11736_v12, %v3199_v11 }
 0x1d4   :  { %9825 = vmatpush3.msra.mxu1 %v11390_v36  ;;  %9755 = vmatprep.mubr.f32.mxu1 %v11574_v9  ;;  %v3220_v32 = vsub.f32 %v11758_v44, %v3219_v58  ;;  %v3211_v35 = vand.u32 4294901760, %v3210_v34 }
 0x1d5   :  { %9826 = vmatprep.subr.mxu1 %v11417_v25 }
 0x1d6   :  { %9827 = vmatpush3.msra.mxu1 %v11417_v25  ;;  %9719 = vmatmul.mubr.f32.gmra.mxu0 %v3161_v30  ;;  %v3201_v30 = vand.u32 4294901760, %v3200_v15 }
 0x1d7   :  { %9828 = vmatprep.subr.mxu1 %v11427_v39  ;;  %9756 = vmatmul.mubr.f32.gmra.mxu1 %v11581_v53 }
 0x1d8   :  { %9829 = vmatpush3.msra.mxu1 %v11427_v39  ;;  %9721 = vmatprep.mubr.f32.mxu0 %v3171_v8  ;;  %v3221_v8 = vand.u32 4294901760, %v3220_v32 }
 0x1d9   :  { %9830 = vmatprep.subr.mxu1 %v11438_v16  ;;  %9758 = vmatprep.mubr.f32.mxu1 %v11612_v3 }
 0x1da   :  { %9831 = vmatpush3.msra.mxu1 %v11438_v16  ;;  %9722 = vmatmul.mubr.f32.gmra.mxu0 %v3181_v59 }
 0x1db   :  { %9902 = vmatprep.subr.mxu1 %v11279_v60  ;;  %9759 = vmatmul.mubr.f32.gmra.mxu1 %v11618_v5 }
 0x1dc   :  { %9724 = vmatprep.mubr.f32.mxu0 %v3191_v61  ;;  %9761 = vmatprep.mubr.f32.mxu1 %v11630_v33 }
 0x1de   :  { %9725 = vmatmul.mubr.f32.gmra.mxu0 %v3201_v30 }
 0x1df   :  { %9762 = vmatmul.mubr.f32.gmra.mxu1 %v11650_v50  ;;  %9727 = vmatprep.mubr.f32.mxu0 %v3211_v35  ;;  %v13572_v35 = vand.u32 4294901760, %v11522_v52 }
 0x1e0   :  { %9764 = vmatprep.mubr.f32.mxu1 %v11666_v4 }
 0x1e2   :  { %9728 = vmatmul.mubr.f32.gmra.mxu0 %v3221_v8 }
 0x1e3   :  { %9765 = vmatmul.mubr.f32.gmra.mxu1 %v11682_v42  ;;  %9789 = vmatprep.mubr.f32.mxu0 %v11514_v22 }
 0x1e4   :  { %9767 = vmatprep.mubr.f32.mxu1 %v11696_v6 }
 0x1e6   :  { %9790 = vmatmul.mubr.f32.vlgmr.msra.gmra.mxu0 %v11522_v52 }
 0x1e7   :  { %9768 = vmatmul.mubr.f32.gmra.mxu1 %v11712_v29  ;;  %9860 = vmatpush3.msra.mxu0 %v11310_v62  ;;  %v13571_v62 = vand.u32 4294901760, %v11514_v22 }
 0x1e8   :  { %9861 = vmatprep.subr.mxu0 %v11397_v17  ;;  %9770 = vmatprep.mubr.f32.mxu1 %v11719_v48 }
 0x1e9   :  { %9862 = vmatpush3.msra.mxu0 %v11397_v17  ;;  %9792 = vmatprep.mubr.f32.mxu0 %v11542_v1  ;;  %v8503_v17 = vld [vmem:[%s13356_s2 + $0x10] sm:$0xff] }
 0x1ea   :  { %9863 = vmatprep.subr.mxu0 %v11410_v10  ;;  %9793 = vmatmul.mubr.f32.gmra.mxu0 %v11549_v63 }
 0x1eb   :  { %9771 = vmatmul.mubr.f32.gmra.mxu1 %v11738_v47  ;;  %9864 = vmatpush3.msra.mxu0 %v11410_v10  ;;  %v11819_v10 = vand.u32 4294901760, %v8503_v17 }
 0x1ec   :  { %9865 = vmatprep.subr.mxu0 %v11432_v24  ;;  %9795 = vmatprep.mubr.f32.mxu0 %v11562_v18 }
 0x1ed   :  { %9866 = vmatpush3.msra.mxu0 %v11432_v24  ;;  %9832 = vmatprep.mubr.f32.mxu1 %v13571_v62  ;;  %v13573_v24 = vand.u32 4294901760, %v11542_v1  ;;  %v13581_v1 = vand.u32 4294901760, %v11680_v54 }
 0x1ee   :  { %9867 = vmatprep.subr.mxu0 %v11446_v7  ;;  %9796 = vmatmul.mubr.f32.gmra.mxu0 %v11572_v56 }
 0x1ef   :  { %9833 = vmatmul.mubr.f32.vlgmr.msra.gmra.mxu1 %v13572_v35  ;;  %9868 = vmatpush3.msra.mxu0 %v11446_v7  ;;  %v13574_v7 = vand.u32 4294901760, %v11549_v63 }
 0x1f0   :  { %9903 = vmatpush3.msra.mxu1 %v11279_v60  ;;  %9869 = vmatprep.subr.mxu0 %v11469_v55  ;;  %v11831_v60 = vsub.f32 %v8503_v17, %v11819_v10 }
 0x1f1   :  { %9904 = vmatprep.subr.mxu1 %v11357_v51  ;;  %9870 = vmatpush3.msra.mxu0 %v11469_v55  ;;  %v13575_v55 = vand.u32 4294901760, %v11562_v18  ;;  %v13583_v18 = vand.u32 4294901760, %v11710_v49 }
 0x1f2   :  { %9905 = vmatpush3.msra.mxu1 %v11357_v51  ;;  %9798 = vmatprep.mubr.f32.mxu0 %v11601_v43  ;;  %v11843_v51 = vand.u32 4294901760, %v11831_v60 }
 0x1f3   :  { %9835 = vmatprep.mubr.f32.mxu1 %v13573_v24  ;;  %9871 = vmatprep.subr.mxu0 %v11479_v19 }
 0x1f4   :  { %9906 = vmatprep.subr.mxu1 %v11368_v45  ;;  %9799 = vmatmul.mubr.f32.gmra.mxu0 %v11606_v57 }
 0x1f5   :  { %9836 = vmatmul.mubr.f32.gmra.mxu1 %v13574_v7  ;;  %9872 = vmatpush3.msra.mxu0 %v11479_v19  ;;  %v4424_v19 = vsub.f32 %v11831_v60, %v11843_v51 }
 0x1f6   :  { %9907 = vmatpush3.msra.mxu1 %v11368_v45  ;;  %9873 = vmatprep.subr.mxu0 %v11487_v38  ;;  %v13576_v45 = vand.u32 4294901760, %v11572_v56 }
 0x1f7   :  { %9908 = vmatprep.subr.mxu1 %v11381_v46  ;;  %9874 = vmatpush3.msra.mxu0 %v11487_v38  ;;  %v13579_v38 = vand.u32 4294901760, %v11636_v40  ;;  %v4425_v22 = vand.u32 4294901760, %v4424_v19 }
 0x1f8   :  { %9909 = vmatpush3.msra.mxu1 %v11381_v46  ;;  %9801 = vmatprep.mubr.f32.mxu0 %v11636_v40  ;;  %v13577_v46 = vand.u32 4294901760, %v11601_v43  ;;  %v13584_v40 = vand.u32 4294901760, %v11725_v41 }
 0x1f9   :  { %9838 = vmatprep.mubr.f32.mxu1 %v13575_v55  ;;  %9910 = vmatprep.subr.mxu1 %v11390_v36 }
 0x1fa   :  { %9802 = vmatmul.mubr.f32.gmra.mxu0 %v11643_v31  ;;  %9839 = vmatmul.mubr.f32.gmra.mxu1 %v13576_v45 }
 0x1fb   :  { %9911 = vmatpush3.msra.mxu1 %v11390_v36  ;;  %9804 = vmatprep.mubr.f32.mxu0 %v11661_v27  ;;  %v13578_v36 = vand.u32 4294901760, %v11606_v57 }
 0x1fc   :  { %9912 = vmatprep.subr.mxu1 %v11417_v25  ;;  %9841 = vmatprep.mubr.f32.mxu1 %v13577_v46 }
 0x1fd   :  { %9913 = vmatpush3.msra.mxu1 %v11417_v25  ;;  %9945 = vmatprep.subr.mxu0 %v11819_v10  ;;  %v13580_v25 = vand.u32 4294901760, %v11643_v31  ;;  %v13585_v31 = vand.u32 4294901760, %v11743_v0 }
 0x1fe   :  { %9914 = vmatprep.subr.mxu1 %v11427_v39  ;;  %9805 = vmatmul.mubr.f32.gmra.mxu0 %v11680_v54 }
 0x1ff   :  { %9842 = vmatmul.mubr.f32.gmra.mxu1 %v13578_v36  ;;  %9807 = vmatprep.mubr.f32.mxu0 %v11694_v21 }
 0x200   :  { %9915 = vmatpush3.msra.mxu1 %v11427_v39  ;;  %9844 = vmatprep.mubr.f32.mxu1 %v13579_v38 }
 0x201   :  { %9916 = vmatprep.subr.mxu1 %v11438_v16 }
 0x202   :  { %9917 = vmatpush3.msra.mxu1 %v11438_v16  ;;  %9808 = vmatmul.mubr.f32.gmra.mxu0 %v11710_v49  ;;  %v13582_v16 = vand.u32 4294901760, %v11694_v21 }
 0x203   :  { %9845 = vmatmul.mubr.f32.gmra.mxu1 %v13580_v25  ;;  %9810 = vmatprep.mubr.f32.mxu0 %v11725_v41 }
 0x204   :  { %9847 = vmatprep.mubr.f32.mxu1 %v3149_v28  ;;  %9959 = vmatprep.subr.mxu1 %v4425_v22  ;;  %v9447_v39 = vpop.f32.mrf.mxu0 }
 0x206   :  { %9811 = vmatmul.mubr.f32.gmra.mxu0 %v11736_v12  ;;  %v1731_v52 = vpop.f32.mrf.mxu0 }
 0x207   :  { %9848 = vmatmul.mubr.f32.gmra.mxu1 %v13581_v1  ;;  %9813 = vmatprep.mubr.f32.mxu0 %v11743_v0 }
 0x208   :  { %9850 = vmatprep.mubr.f32.mxu1 %v13582_v16  ;;  %v13590_v16 = vld [vmem:[#allocation25_spill] sm:$0xff] }
 0x209   :  { %v9450_v63 = vpop.f32.mrf.mxu0 }
 0x20a   :  { %9814 = vmatmul.mubr.f32.gmra.mxu0 %v11758_v44 }
 0x20b   :  { %9851 = vmatmul.mubr.f32.gmra.mxu1 %v13583_v18  ;;  %9875 = vmatprep.mubr.f32.mxu0 %v11489_v20  ;;  %v1751_v56 = vpop.f32.mrf.mxu0 }
 0x20c   :  { %9853 = vmatprep.mubr.f32.mxu1 %v13584_v40 }
 0x20e   :  { %9876 = vmatmul.mubr.f32.vlgmr.msra.gmra.mxu0 %v11501_v23  ;;  %v9453_v43 = vpop.f32.mrf.mxu0  ;;  %v9490_v57 = vpop.f32.mrf.mxu1 }
 0x20f   :  { %9854 = vmatmul.mubr.f32.gmra.mxu1 %v3199_v11  ;;  %9878 = vmatprep.mubr.f32.mxu0 %v11524_v26  ;;  %v11892_v54 = vadd.f32 %v9490_v57, %v9447_v39 }
 0x210   :  { %9856 = vmatprep.mubr.f32.mxu1 %v13585_v31  ;;  %9946 = vmatpush3.msra.mxu0 %v11819_v10  ;;  %v1771_v27 = vpop.f32.mrf.mxu0  ;;  %v2012_v49 = vpop.f32.mrf.mxu1 }
 0x211   :  { %v11897_v41 = vadd.f32 %v2012_v49, %v1731_v52  ;;  %9973 = vmatprep.subr.mxu0 %v11831_v60 }
 0x212   :  { %9879 = vmatmul.mubr.f32.gmra.mxu0 %v11528_v37 }
 0x213   :  { %9857 = vmatmul.mubr.f32.gmra.mxu1 %v3219_v58  ;;  %9881 = vmatprep.mubr.f32.mxu0 %v11534_v2 }
 0x214   :  { %9918 = vmatprep.mubr.f32.mxu1 %v11489_v20  ;;  %v9456_v28 = vpop.f32.mrf.mxu0  ;;  %v9493_v21 = vpop.f32.mrf.mxu1 }
 0x215   :  { %v11905_v12 = vadd.f32 %v9493_v21, %v9450_v63 }
 0x216   :  { %9882 = vmatmul.mubr.f32.gmra.mxu0 %v11551_v13  ;;  %v1791_v0 = vpop.f32.mrf.mxu0  ;;  %v2024_v61 = vpop.f32.mrf.mxu1 }
 0x217   :  { %9919 = vmatmul.mubr.f32.vlgmr.msra.gmra.mxu1 %v11501_v23  ;;  %9884 = vmatprep.mubr.f32.mxu0 %v11574_v9  ;;  %v11910_v11 = vadd.f32 %v2024_v61, %v1751_v56  ;;  %v13599_v61 = vld [vmem:[#allocation6_spill] sm:$0xff] }
 0x218   :  { %9960 = vmatpush3.msra.mxu1 %v4425_v22  ;;  %9921 = vmatprep.mubr.f32.mxu1 %v11524_v26  ;;  %v13589_v22 = vld [vmem:[#allocation24_spill] sm:$0xff] }
 0x219   :  { %13586 = vst [vmem:[#allocation42_spill] sm:$0xff] %v11910_v11  ;;  %9987 = vmatprep.subr.mxu1 %v11819_v10 }
 0x21a   :  { %9885 = vmatmul.mubr.f32.gmra.mxu0 %v11581_v53  ;;  %v9459_v20 = vpop.f32.mrf.mxu0  ;;  %v9496_v58 = vpop.f32.mrf.mxu1 }
 0x21b   :  { %9922 = vmatmul.mubr.f32.gmra.mxu1 %v11528_v37  ;;  %9887 = vmatprep.mubr.f32.mxu0 %v11612_v3  ;;  %v11917_v44 = vadd.f32 %v9496_v58, %v9453_v43 }
 0x21c   :  { %9924 = vmatprep.mubr.f32.mxu1 %v11534_v2  ;;  %v1811_v23 = vpop.f32.mrf.mxu0  ;;  %v2036_v14 = vpop.f32.mrf.mxu1 }
 0x21d   :  { %v11920_v59 = vadd.f32 %v2036_v14, %v1771_v27  ;;  %v13594_v27 = vld [vmem:[#allocation31_spill] sm:$0xff]  ;;  %v13602_v14 = vld [vmem:[#allocation36_spill] sm:$0xff] }
 0x21e   :  { %9888 = vmatmul.mubr.f32.gmra.mxu0 %v11618_v5  ;;  %v9462_v26 = vpop.f32.mrf.mxu0 }
 0x21f   :  { %13587 = vst [vmem:[#allocation43_spill] sm:$0xff] %v11920_v59  ;;  %9925 = vmatmul.mubr.f32.gmra.mxu1 %v11551_v13  ;;  %9890 = vmatprep.mubr.f32.mxu0 %v11630_v33  ;;  %v9499_v15 = vpop.f32.mrf.mxu1 }
 0x220   :  { %9927 = vmatprep.mubr.f32.mxu1 %v11574_v9  ;;  %v11926_v37 = vadd.f32 %v9499_v15, %v9456_v28  ;;  %v1831_v34 = vpop.f32.mrf.mxu0 }
 0x221   :  { %v2048_v30 = vpop.f32.mrf.mxu1 }
 0x222   :  { %9891 = vmatmul.mubr.f32.gmra.mxu0 %v11650_v50  ;;  %v11929_v2 = vadd.f32 %v2048_v30, %v1791_v0  ;;  %v9465_v32 = vpop.f32.mrf.mxu0  ;;  %v13605_v30 = vld [vmem:[#allocation9_spill] sm:$0xff] }
 0x223   :  { %9928 = vmatmul.mubr.f32.gmra.mxu1 %v11581_v53  ;;  %9893 = vmatprep.mubr.f32.mxu0 %v11666_v4  ;;  %v9502_v8 = vpop.f32.mrf.mxu1 }
 0x224   :  { %13588 = vst [vmem:[#allocation50_spill] sm:$0xff] %v11929_v2  ;;  %9930 = vmatprep.mubr.f32.mxu1 %v11612_v3  ;;  %v11934_v13 = vadd.f32 %v9502_v8, %v9459_v20  ;;  %v1851_v62 = vpop.f32.mrf.mxu0  ;;  %v13600_v20 = vld [vmem:[#allocation35_spill] sm:$0xff] }
 0x225   :  { %v2060_v9 = vpop.f32.mrf.mxu1  ;;  %v13607_v8 = vld [vmem:[#allocation11_spill] sm:$0xff] }
 0x226   :  { %9894 = vmatmul.mubr.f32.gmra.mxu0 %v11682_v42  ;;  %v11937_v17 = vadd.f32 %v2060_v9, %v1811_v23  ;;  %v9468_v35 = vpop.f32.mrf.mxu0  ;;  %v13609_v9 = vld [vmem:[#allocation14_spill] sm:$0xff] }
 0x227   :  { %9931 = vmatmul.mubr.f32.gmra.mxu1 %v11618_v5  ;;  %9896 = vmatprep.mubr.f32.mxu0 %v11696_v6  ;;  %v9505_v24 = vpop.f32.mrf.mxu1 }
 0x228   :  { %9933 = vmatprep.mubr.f32.mxu1 %v11630_v33  ;;  %v11942_v53 = vadd.f32 %v9505_v24, %v9462_v26  ;;  %v1871_v7 = vpop.f32.mrf.mxu0 }
 0x229   :  { %v2072_v3 = vpop.f32.mrf.mxu1 }
 0x22a   :  { %9897 = vmatmul.mubr.f32.gmra.mxu0 %v11712_v29  ;;  %v11945_v55 = vadd.f32 %v2072_v3, %v1831_v34  ;;  %v9471_v45 = vpop.f32.mrf.mxu0  ;;  %v13604_v34 = vld [vmem:[#allocation8_spill] sm:$0xff]  ;;  %v13611_v3 = vld [vmem:[#allocation22_spill] sm:$0xff] }
 0x22b   :  { %9934 = vmatmul.mubr.f32.gmra.mxu1 %v11650_v50  ;;  %9899 = vmatprep.mubr.f32.mxu0 %v11719_v48  ;;  %v9508_v46 = vpop.f32.mrf.mxu1 }
 0x22c   :  { %9936 = vmatprep.mubr.f32.mxu1 %v11666_v4  ;;  %v11950_v5 = vadd.f32 %v9508_v46, %v9465_v32  ;;  %v1891_v19 = vpop.f32.mrf.mxu0 }
 0x22d   :  { %v2084_v33 = vpop.f32.mrf.mxu1 }
 0x22e   :  { %9900 = vmatmul.mubr.f32.gmra.mxu0 %v11738_v47  ;;  %v11953_v36 = vadd.f32 %v2084_v33, %v1851_v62  ;;  %v9533_v38 = vpop.f32.mrf.mxu0  ;;  %v13608_v62 = vld [vmem:[#allocation10_spill] sm:$0xff]  ;;  %v13613_v33 = vld [vmem:[#allocation13_spill] sm:$0xff] }
 0x22f   :  { %9937 = vmatmul.mubr.f32.gmra.mxu1 %v11682_v42  ;;  %9947 = vmatprep.mubr.f32.mxu0 %v13589_v22  ;;  %v9511_v25 = vpop.f32.mrf.mxu1  ;;  %v2210_v50 = vadd.f32 %v9533_v38, %v11892_v54  ;;  %v13591_v42 = vld [vmem:[#allocation27_spill] sm:$0xff]  ;;  %v13593_v54 = vld [vmem:[#allocation30_spill] sm:$0xff]  ;;  %v13614_v22 = vld [vmem:[#allocation29_spill] sm:$0xff] }
 0x230   :  { %9939 = vmatprep.mubr.f32.mxu1 %v11696_v6  ;;  %v11959_v39 = vadd.f32 %v9511_v25, %v9468_v35  ;;  %v2202_v4 = vpop.f32.mrf.mxu0  ;;  %v13610_v35 = vld [vmem:[#allocation12_spill] sm:$0xff]  ;;  %v13615_v25 = vld [vmem:[#allocation17_spill] sm:$0xff] }
 0x231   :  { %v2096_v52 = vpop.f32.mrf.mxu1  ;;  %v2203_v1 = vadd.f32 %v2202_v4, %v11897_v41  ;;  %v13616_v4 = vld [vmem:[#allocation15_spill] sm:$0xff] }
 0x232   :  { %9948 = vmatmul.mubr.f32.vlgmr.msra.gmra.mxu0 %v13590_v16  ;;  %v11963_v63 = vadd.f32 %v2096_v52, %v1871_v7  ;;  %v9536_v18 = vpop.f32.mrf.mxu0  ;;  %v13618_v16 = vld [vmem:[#allocation20_spill] sm:$0xff] }
 0x233   :  { %9940 = vmatmul.mubr.f32.gmra.mxu1 %v11712_v29  ;;  %9950 = vmatprep.mubr.f32.mxu0 %v13591_v42  ;;  %v9514_v56 = vpop.f32.mrf.mxu1  ;;  %v2224_v40 = vadd.f32 %v9536_v18, %v11905_v12  ;;  %v13597_v12 = vld [vmem:[#allocation34_spill] sm:$0xff]  ;;  %v13619_v42 = vld [vmem:[#allocation16_spill] sm:$0xff] }
 0x234   :  { %9942 = vmatprep.mubr.f32.mxu1 %v11719_v48  ;;  %9974 = vmatpush3.msra.mxu0 %v11831_v60  ;;  %v11970_v6 = vadd.f32 %v9514_v56, %v9471_v45  ;;  %v11972_v43 = vpop.f32.mrf.mxu0  ;;  %v13595_v60 = vld [vmem:[#allocation5_spill] sm:$0xff]  ;;  %v13620_v56 = vld [vmem:[#allocation26_spill] sm:$0xff] }
 0x235   :  { %13592 = vst [vmem:[#allocation48_spill] sm:$0xff] %v11972_v43  ;;  %v2108_v57 = vpop.f32.mrf.mxu1  ;;  %10001 = vmatprep.subr.mxu0 %v11843_v51 }
 0x236   :  { %9951 = vmatmul.mubr.f32.gmra.mxu0 %v13593_v54  ;;  %v11976_v31 = vadd.f32 %v2108_v57, %v1891_v19  ;;  %v9539_v29 = vpop.f32.mrf.mxu0 }
 0x237   :  { %9943 = vmatmul.mubr.f32.gmra.mxu1 %v11738_v47  ;;  %9953 = vmatprep.mubr.f32.mxu0 %v13594_v27  ;;  %v2238_v48 = vadd.f32 %v9539_v29, %v11917_v44  ;;  %v9576_v49 = vpop.f32.mrf.mxu1  ;;  %v13601_v47 = vld [vmem:[#allocation7_spill] sm:$0xff] }
 0x238   :  { %9961 = vmatprep.mubr.f32.mxu1 %v13595_v60  ;;  %v11982_v41 = vadd.f32 %v9576_v49, %v2210_v50  ;;  %v11984_v28 = vpop.f32.mrf.mxu0 }
 0x239   :  { %13596 = vst [vmem:[#allocation60_spill] sm:$0xff] %v11984_v28  ;;  %v2402_v21 = vpop.f32.mrf.mxu1 }
 0x23a   :  { %9954 = vmatmul.mubr.f32.gmra.mxu0 %v13597_v12  ;;  %v11987_v0 = vadd.f32 %v2402_v21, %v2203_v1  ;;  %v13623_v21 = vld [vmem:[#allocation19_spill] sm:$0xff] }
 0x23b   :  { %9962 = vmatmul.mubr.f32.vlgmr.msra.gmra.mxu1 %v13599_v61  ;;  %9956 = vmatprep.mubr.f32.mxu0 %v13600_v20  ;;  %v13624_v20 = vld [vmem:[#allocation21_spill] sm:$0xff] }
 0x23c   :  { %13598 = vst [vmem:[#allocation40_spill] sm:$0xff] %v11987_v0  ;;  %9988 = vmatpush3.msra.mxu1 %v11819_v10  ;;  %9964 = vmatprep.mubr.f32.mxu1 %v13601_v47  ;;  %v9542_v58 = vpop.f32.mrf.mxu0 }
 0x23d   :  { %v2252_v44 = vadd.f32 %v9542_v58, %v11926_v37  ;;  %v9579_v23 = vpop.f32.mrf.mxu1  ;;  %10015 = vmatprep.subr.mxu1 %v11819_v10 }
 0x23e   :  { %9957 = vmatmul.mubr.f32.gmra.mxu0 %v13602_v14  ;;  %v11996_v26 = vadd.f32 %v9579_v23, %v2224_v40  ;;  %v11998_v15 = vpop.f32.mrf.mxu0  ;;  %v13625_v14 = vld [vmem:[#allocation23_spill] sm:$0xff] }
 0x23f   :  { %13603 = vst [vmem:[#allocation41_spill] sm:$0xff] %v11998_v15  ;;  %9965 = vmatmul.mubr.f32.gmra.mxu1 %v13604_v34  ;;  %9975 = vmatprep.mubr.f32.mxu0 %v13605_v30  ;;  %v12002_v32 = vpop.f32.mrf.mxu1 }
 0x240   :  { %13606 = vst [vmem:[#allocation49_spill] sm:$0xff] %v12002_v32  ;;  %9967 = vmatprep.mubr.f32.mxu1 %v13607_v8 }
 0x242   :  { %9976 = vmatmul.mubr.f32.vlgmr.msra.gmra.mxu0 %v13608_v62  ;;  %v9545_v37 = vpop.f32.mrf.mxu0 }
 0x243   :  { %9968 = vmatmul.mubr.f32.gmra.mxu1 %v13609_v9  ;;  %9978 = vmatprep.mubr.f32.mxu0 %v13610_v35  ;;  %v2266_v24 = vadd.f32 %v9545_v37, %v11934_v13  ;;  %v9582_v7 = vpop.f32.mrf.mxu1  ;;  %v13626_v37 = vld [vmem:[#allocation28_spill] sm:$0xff] }
 0x244   :  { %9970 = vmatprep.mubr.f32.mxu1 %v13611_v3  ;;  %10002 = vmatpush3.msra.mxu0 %v11843_v51  ;;  %v12011_v45 = vadd.f32 %v9582_v7, %v2238_v48  ;;  %v12013_v46 = vpop.f32.mrf.mxu0  ;;  %v13622_v48 = vld [vmem:[#allocation32_spill] sm:$0xff] }
 0x245   :  { %v12015_v19 = vpop.f32.mrf.mxu1 }
 0x246   :  { %13612 = vst [vmem:[#allocation61_spill] sm:$0xff] %v12015_v19  ;;  %9979 = vmatmul.mubr.f32.gmra.mxu0 %v13613_v33  ;;  %v9548_v38 = vpop.f32.mrf.mxu0  ;;  %v13627_v33 = vld [vmem:[#allocation33_spill] sm:$0xff] }
 0x247   :  { %9971 = vmatmul.mubr.f32.gmra.mxu1 %v13614_v22  ;;  %9981 = vmatprep.mubr.f32.mxu0 %v13615_v25  ;;  %v2280_v13 = vadd.f32 %v9548_v38, %v11942_v53  ;;  %v9585_v50 = vpop.f32.mrf.mxu1  ;;  %v13621_v53 = vld [vmem:[#allocation18_spill] sm:$0xff] }
 0x248   :  { %9989 = vmatprep.mubr.f32.mxu1 %v13616_v4  ;;  %v12022_v52 = vadd.f32 %v9585_v50, %v2252_v44  ;;  %v12024_v51 = vpop.f32.mrf.mxu0 }
 0x249   :  { %v12026_v1 = vpop.f32.mrf.mxu1 }
 0x24a   :  { %13617 = vst [vmem:[#allocation46_spill] sm:$0xff] %v12026_v1  ;;  %9982 = vmatmul.mubr.f32.gmra.mxu0 %v13618_v16  ;;  %v9551_v18 = vpop.f32.mrf.mxu0 }
 0x24b   :  { %9990 = vmatmul.mubr.f32.vlgmr.msra.gmra.mxu1 %v13619_v42  ;;  %9984 = vmatprep.mubr.f32.mxu0 %v13620_v56  ;;  %v2294_v40 = vadd.f32 %v9551_v18, %v11950_v5  ;;  %v9588_v57 = vpop.f32.mrf.mxu1 }
 0x24c   :  { %10016 = vmatpush3.msra.mxu1 %v11819_v10  ;;  %9992 = vmatprep.mubr.f32.mxu1 %v13621_v53  ;;  %v2475_v54 = vadd.f32 %v9588_v57, %v2266_v24  ;;  %v12034_v29 = vpop.f32.mrf.mxu0 }
 0x24d   :  { %v12036_v27 = vpop.f32.mrf.mxu1 }
 0x24e   :  { %9985 = vmatmul.mubr.f32.gmra.mxu0 %v13622_v48  ;;  %v9554_v49 = vpop.f32.mrf.mxu0 }
 0x24f   :  { %9993 = vmatmul.mubr.f32.gmra.mxu1 %v13623_v21  ;;  %10003 = vmatprep.mubr.f32.mxu0 %v13595_v60  ;;  %v2308_v12 = vadd.f32 %v9554_v49, %v11959_v39  ;;  %v9591_v5 = vpop.f32.mrf.mxu1 }
 0x250   :  { %9995 = vmatprep.mubr.f32.mxu1 %v13624_v20  ;;  %v2491_v10 = vadd.f32 %v9591_v5, %v2280_v13  ;;  %v12043_v58 = vpop.f32.mrf.mxu0 }
 0x251   :  { %v12045_v44 = vpop.f32.mrf.mxu1 }
 0x252   :  { %10004 = vmatmul.mubr.f32.vlgmr.msra.gmra.mxu0 %v13599_v61  ;;  %v9557_v23 = vpop.f32.mrf.mxu0 }
 0x253   :  { %9996 = vmatmul.mubr.f32.gmra.mxu1 %v13625_v14  ;;  %10006 = vmatprep.mubr.f32.mxu0 %v13601_v47  ;;  %v2322_v30 = vadd.f32 %v9557_v23, %v11970_v6  ;;  %v9594_v62 = vpop.f32.mrf.mxu1 }
 0x254   :  { %9998 = vmatprep.mubr.f32.mxu1 %v13626_v37  ;;  %v2507_v39 = vadd.f32 %v9594_v62, %v2294_v40  ;;  %v12052_v35 = vpop.f32.mrf.mxu0 }
 0x255   :  { %v12054_v24 = vpop.f32.mrf.mxu1 }
 0x256   :  { %10007 = vmatmul.mubr.f32.gmra.mxu0 %v13604_v34  ;;  %v9619_v7 = vpop.f32.mrf.mxu0 }
 0x257   :  { %9999 = vmatmul.mubr.f32.gmra.mxu1 %v13627_v33  ;;  %10009 = vmatprep.mubr.f32.mxu0 %v13607_v8  ;;  %v9597_v38 = vpop.f32.mrf.mxu1  ;;  %v2640_v25 = vadd.f32 %v9619_v7, %v11982_v41 }
 0x258   :  { %10017 = vmatprep.mubr.f32.mxu1 %v13595_v60  ;;  %v2523_v6 = vadd.f32 %v9597_v38, %v2308_v12  ;;  %v12061_v13 = vpop.f32.mrf.mxu0 }
 0x259   :  { %13628 = vst [vmem:[#allocation57_spill] sm:$0xff] %v12061_v13  ;;  %v12063_v50 = vpop.f32.mrf.mxu1 }
 0x25a   :  { %10010 = vmatmul.mubr.f32.gmra.mxu0 %v13609_v9  ;;  %v9622_v4 = vpop.f32.mrf.mxu0 }
 0x25b   :  { %10018 = vmatmul.mubr.f32.vlgmr.msra.gmra.mxu1 %v13599_v61  ;;  %10012 = vmatprep.mubr.f32.mxu0 %v13611_v3  ;;  %v9600_v16 = vpop.f32.mrf.mxu1  ;;  %v2652_v18 = vadd.f32 %v9622_v4, %v11996_v26 }
 0x25c   :  { %10020 = vmatprep.mubr.f32.mxu1 %v13601_v47  ;;  %v2539_v41 = vadd.f32 %v9600_v16, %v2322_v30  ;;  %v12070_v42 = vpop.f32.mrf.mxu0 }
 0x25d   :  { %13629 = vst [vmem:[#allocation38_spill] sm:$0xff] %v12070_v42  ;;  %v12072_v60 = vpop.f32.mrf.mxu1 }
 0x25e   :  { %10013 = vmatmul.mubr.f32.gmra.mxu0 %v13614_v22  ;;  %v9625_v56 = vpop.f32.mrf.mxu0 }
 0x25f   :  { %10021 = vmatmul.mubr.f32.gmra.mxu1 %v13604_v34  ;;  %v2664_v40 = vadd.f32 %v9625_v56, %v12011_v45  ;;  %v9662_v61 = vpop.f32.mrf.mxu1 }
 0x260   :  { %10023 = vmatprep.mubr.f32.mxu1 %v13607_v8  ;;  %v2821_v57 = vadd.f32 %v9662_v61, %v2640_v25  ;;  %v12078_v53 = vpop.f32.mrf.mxu0 }
 0x261   :  { %13630 = vst [vmem:[#allocation39_spill] sm:$0xff] %v12078_v53  ;;  %v12080_v26 = vpop.f32.mrf.mxu1 }
 0x262   :  { %13631 = vst [vmem:[#allocation44_spill] sm:$0xff] %v12080_v26 }
 0x263   :  { %10024 = vmatmul.mubr.f32.gmra.mxu1 %v13609_v9 }
 0x264   :  { %10026 = vmatprep.mubr.f32.mxu1 %v13611_v3  ;;  %v9628_v47 = vpop.f32.mrf.mxu0 }
 0x265   :  { %v2676_v48 = vadd.f32 %v9628_v47, %v12022_v52  ;;  %v9665_v49 = vpop.f32.mrf.mxu1 }
 0x266   :  { %v2833_v21 = vadd.f32 %v9665_v49, %v2652_v18  ;;  %v12085_v34 = vpop.f32.mrf.mxu0 }
 0x267   :  { %13632 = vst [vmem:[#allocation47_spill] sm:$0xff] %v12085_v34  ;;  %10027 = vmatmul.mubr.f32.gmra.mxu1 %v13614_v22  ;;  %v12088_v45 = vpop.f32.mrf.mxu1 }
 0x268   :  { %13633 = vst [vmem:[#allocation58_spill] sm:$0xff] %v12088_v45 }
 0x26a   :  { %v9631_v8 = vpop.f32.mrf.mxu0 }
 0x26b   :  { %v2688_v12 = vadd.f32 %v9631_v8, %v2475_v54  ;;  %v9668_v5 = vpop.f32.mrf.mxu1 }
 0x26c   :  { %v2845_v20 = vadd.f32 %v9668_v5, %v2664_v40  ;;  %v12090_v23 = vpop.f32.mrf.mxu0 }
 0x26d   :  { %v12092_v9 = vpop.f32.mrf.mxu1 }
 0x26e   :  { %13634 = vst [vmem:[#allocation59_spill] sm:$0xff] %v12092_v9  ;;  %v9634_v3 = vpop.f32.mrf.mxu0 }
 0x26f   :  { %v2700_v14 = vadd.f32 %v9634_v3, %v2491_v10  ;;  %v9671_v30 = vpop.f32.mrf.mxu1 }
 0x270   :  { %v2857_v52 = vadd.f32 %v9671_v30, %v2676_v48  ;;  %v12094_v62 = vpop.f32.mrf.mxu0 }
 0x271   :  { %v12096_v37 = vpop.f32.mrf.mxu1 }
 0x272   :  { %13635 = vst [vmem:[#allocation54_spill] sm:$0xff] %v12096_v37  ;;  %v9637_v7 = vpop.f32.mrf.mxu0 }
 0x273   :  { %v2712_v22 = vadd.f32 %v9637_v7, %v2507_v39  ;;  %v9674_v33 = vpop.f32.mrf.mxu1 }
 0x274   :  { %v2869_v38 = vadd.f32 %v9674_v33, %v2688_v12  ;;  %v12098_v25 = vpop.f32.mrf.mxu0 }
 0x275   :  { %v12100_v54 = vpop.f32.mrf.mxu1 }
 0x276   :  { %v9640_v4 = vpop.f32.mrf.mxu0 }
 0x277   :  { %v2724_v16 = vadd.f32 %v9640_v4, %v2523_v6  ;;  %v9677_v18 = vpop.f32.mrf.mxu1 }
 0x278   :  { %v2881_v56 = vadd.f32 %v9677_v18, %v2700_v14  ;;  %v12102_v40 = vpop.f32.mrf.mxu0 }
 0x279   :  { %v12104_v10 = vpop.f32.mrf.mxu1 }
 0x27a   :  { %v9643_v61 = vpop.f32.mrf.mxu0 }
 0x27b   :  { %v2736_v47 = vadd.f32 %v9643_v61, %v2539_v41  ;;  %v9680_v48 = vpop.f32.mrf.mxu1 }
 0x27c   :  { %v2893_v49 = vadd.f32 %v9680_v48, %v2712_v22  ;;  %v12106_v8 = vpop.f32.mrf.mxu0 }
 0x27d   :  { %v12108_v39 = vpop.f32.mrf.mxu1 }
 0x27e   :  { %v9705_v12 = vpop.f32.mrf.mxu0 }
 0x27f   :  { %v9683_v5 = vpop.f32.mrf.mxu1  ;;  %v3064_v3 = vadd.f32 %v9705_v12, %v2821_v57 }
 0x280   :  { %v2905_v30 = vadd.f32 %v9683_v5, %v2724_v16  ;;  %v12110_v7 = vpop.f32.mrf.mxu0 }
 0x281   :  { %13636 = vst [vmem:[#allocation37_spill] sm:$0xff] %v12110_v7  ;;  %v12112_v6 = vpop.f32.mrf.mxu1 }
 0x282   :  { %v9708_v14 = vpop.f32.mrf.mxu0 }
 0x283   :  { %v9686_v33 = vpop.f32.mrf.mxu1  ;;  %v3084_v4 = vadd.f32 %v9708_v14, %v2833_v21 }
 0x284   :  { %v2917_v18 = vadd.f32 %v9686_v33, %v2736_v47  ;;  %v12114_v37 = vpop.f32.mrf.mxu0 }
 0x285   :  { %13637 = vst [vmem:[#allocation45_spill] sm:$0xff] %v12114_v37  ;;  %v12116_v41 = vpop.f32.mrf.mxu1 }
 0x286   :  { %v9711_v22 = vpop.f32.mrf.mxu0 }
 0x287   :  { %v3104_v61 = vadd.f32 %v9711_v22, %v2845_v20  ;;  %v9748_v48 = vpop.f32.mrf.mxu1 }
 0x288   :  { %v3341_v9 = vadd.f32 %v9748_v48, %v3064_v3  ;;  %v12118_v45 = vpop.f32.mrf.mxu0 }
 0x289   :  { %13638 = vst [vmem:[#allocation62_spill] sm:$0xff] %v12118_v45  ;;  %v12120_v57 = vpop.f32.mrf.mxu1 }
 0x28a   :  { %13639 = vst [vmem:[#allocation51_spill] sm:$0xff] %v12120_v57 }
 0x28c   :  { %v9714_v16 = vpop.f32.mrf.mxu0 }
 0x28d   :  { %v3124_v12 = vadd.f32 %v9714_v16, %v2857_v52  ;;  %v9751_v5 = vpop.f32.mrf.mxu1 }
 0x28e   :  { %v3353_v7 = vadd.f32 %v9751_v5, %v3084_v4  ;;  %v12122_v34 = vpop.f32.mrf.mxu0 }
 0x28f   :  { %13640 = vst [vmem:[#allocation56_spill] sm:$0xff] %v12122_v34  ;;  %v12124_v21 = vpop.f32.mrf.mxu1 }
 0x290   :  { %13641 = vst [vmem:[#allocation55_spill] sm:$0xff] %v12124_v21 }
 0x292   :  { %v9717_v47 = vpop.f32.mrf.mxu0 }
 0x293   :  { %v3144_v14 = vadd.f32 %v9717_v47, %v2869_v38  ;;  %v9754_v33 = vpop.f32.mrf.mxu1 }
 0x294   :  { %v3365_v37 = vadd.f32 %v9754_v33, %v3104_v61  ;;  %v12126_v53 = vpop.f32.mrf.mxu0 }
 0x295   :  { %v12128_v20 = vpop.f32.mrf.mxu1 }
 0x296   :  { %13642 = vst [vmem:[#allocation63_spill] sm:$0xff] %v12128_v20  ;;  %v9720_v3 = vpop.f32.mrf.mxu0 }
 0x297   :  { %v3164_v22 = vadd.f32 %v9720_v3, %v2881_v56  ;;  %v9757_v48 = vpop.f32.mrf.mxu1 }
 0x298   :  { %v3377_v45 = vadd.f32 %v9757_v48, %v3124_v12  ;;  %v12130_v57 = vpop.f32.mrf.mxu0 }
 0x299   :  { %v12132_v52 = vpop.f32.mrf.mxu1 }
 0x29a   :  { %13643 = vst [vmem:[#allocation52_spill] sm:$0xff] %v12132_v52  ;;  %v9723_v4 = vpop.f32.mrf.mxu0 }
 0x29b   :  { %v3184_v16 = vadd.f32 %v9723_v4, %v2893_v49  ;;  %v9760_v5 = vpop.f32.mrf.mxu1 }
 0x29c   :  { %v3389_v21 = vadd.f32 %v9760_v5, %v3144_v14  ;;  %v12134_v34 = vpop.f32.mrf.mxu0 }
 0x29d   :  { %v12136_v38 = vpop.f32.mrf.mxu1 }
 0x29e   :  { %v9726_v61 = vpop.f32.mrf.mxu0 }
 0x29f   :  { %v3204_v47 = vadd.f32 %v9726_v61, %v2905_v30  ;;  %v9763_v33 = vpop.f32.mrf.mxu1 }
 0x2a0   :  { %v3401_v20 = vadd.f32 %v9763_v33, %v3164_v22  ;;  %v12138_v26 = vpop.f32.mrf.mxu0 }
 0x2a1   :  { %v12140_v56 = vpop.f32.mrf.mxu1 }
 0x2a2   :  { %v9729_v12 = vpop.f32.mrf.mxu0 }
 0x2a3   :  { %v3224_v3 = vadd.f32 %v9729_v12, %v2917_v18  ;;  %v9766_v48 = vpop.f32.mrf.mxu1 }
 0x2a4   :  { %v3413_v52 = vadd.f32 %v9766_v48, %v3184_v16  ;;  %v12142_v42 = vpop.f32.mrf.mxu0 }
 0x2a5   :  { %v12144_v49 = vpop.f32.mrf.mxu1 }
 0x2a6   :  { %v9791_v14 = vpop.f32.mrf.mxu0 }
 0x2a7   :  { %v9769_v4 = vpop.f32.mrf.mxu1  ;;  %v3532_v5 = vadd.f32 %v9791_v14, %v3341_v9  ;;  %v8504_v9 = vld [vmem:[%s13355_s1 + $0x120] sm:$0xff] }
 0x2a8   :  { %v3425_v1 = vadd.f32 %v9769_v4, %v3204_v47  ;;  %v12146_v19 = vpop.f32.mrf.mxu0  ;;  %v5011_v14 = vsel %vm1597_vm1, %v8504_v9, 0 }
 0x2a9   :  { %13644 = vst [vmem:[#allocation64_spill] sm:$0xff] %v12146_v19  ;;  %v12148_v30 = vpop.f32.mrf.mxu1 }
 0x2aa   :  { %v9794_v22 = vpop.f32.mrf.mxu0 }
 0x2ab   :  { %v9772_v61 = vpop.f32.mrf.mxu1  ;;  %v3546_v33 = vadd.f32 %v9794_v22, %v3353_v7  ;;  %v12162_v7 = vand.u32 4294901760, %v5011_v14 }
 0x2ac   :  { %v3437_v13 = vadd.f32 %v9772_v61, %v3224_v3  ;;  %v12150_v0 = vpop.f32.mrf.mxu0 }
 0x2ad   :  { %13645 = vst [vmem:[#allocation53_spill] sm:$0xff] %v12150_v0  ;;  %v12152_v18 = vpop.f32.mrf.mxu1  ;;  %13648 = vst [vmem:[#allocation27_spill] sm:$0xff] %v12162_v7  ;;  %v12165_v4 = vsub.f32 %v5011_v14, %v12162_v7  ;;  %10088 = vmatprep.mubr.f32.mxu1 %v12162_v7 }
 0x2ae   :  { %v9797_v16 = vpop.f32.mrf.mxu0 }
 0x2af   :  { %v3560_v12 = vadd.f32 %v9797_v16, %v3365_v37  ;;  %v9834_v48 = vpop.f32.mrf.mxu1  ;;  %13649 = vst [vmem:[#allocation30_spill] sm:$0xff] %v12165_v4  ;;  %v13436_v16 = vand.u32 4294901760, %v12165_v4 }
 0x2b0   :  { %v3733_v32 = vadd.f32 %v9834_v48, %v3532_v5  ;;  %v12154_v15 = vpop.f32.mrf.mxu0 }
 0x2b1   :  { %13646 = vst [vmem:[#allocation24_spill] sm:$0xff] %v12154_v15  ;;  %v12159_v47 = vpop.f32.mrf.mxu1  ;;  %v5140_v9 = vsub.f32 %v12165_v4, %v13436_v16 }
 0x2b2   :  { %13647 = vst [vmem:[#allocation25_spill] sm:$0xff] %v12159_v47 }
 0x2b3   :  { %v5141_v0 = vand.u32 4294901760, %v5140_v9 }
 0x2b4   :  { %v9800_v3 = vpop.f32.mrf.mxu0 }
 0x2b5   :  { %v3574_v37 = vadd.f32 %v9800_v3, %v3377_v45  ;;  %v9837_v5 = vpop.f32.mrf.mxu1  ;;  %10045 = vmatprep.mubr.f32.mxu0 %v5141_v0 }
 0x2b6   :  { %v3749_v22 = vadd.f32 %v9837_v5, %v3546_v33  ;;  %v12168_v61 = vpop.f32.mrf.mxu0 }
 0x2b7   :  { %13650 = vst [vmem:[#allocation31_spill] sm:$0xff] %v12168_v61  ;;  %v12171_v48 = vpop.f32.mrf.mxu1 }
 0x2b8   :  { %13651 = vst [vmem:[#allocation5_spill] sm:$0xff] %v12171_v48 }
 0x2ba   :  { %v9803_v15 = vpop.f32.mrf.mxu0  ;;  %v9840_v47 = vpop.f32.mrf.mxu1 }
 0x2bb   :  { %v3588_v14 = vadd.f32 %v9803_v15, %v3389_v21  ;;  %v3765_v19 = vadd.f32 %v9840_v47, %v3560_v12 }
 0x2bc   :  { %v12176_v2 = vpop.f32.mrf.mxu0  ;;  %v12178_v45 = vpop.f32.mrf.mxu1 }
 0x2bd   :  { %13652 = vst [vmem:[#allocation34_spill] sm:$0xff] %v12178_v45 }
 0x2be   :  { %v9806_v33 = vpop.f32.mrf.mxu0 }
 0x2bf   :  { %v3602_v3 = vadd.f32 %v9806_v33, %v3401_v20  ;;  %v9843_v5 = vpop.f32.mrf.mxu1 }
 0x2c0   :  { %v3781_v61 = vadd.f32 %v9843_v5, %v3574_v37  ;;  %v12180_v28 = vpop.f32.mrf.mxu0 }
 0x2c1   :  { %v12182_v48 = vpop.f32.mrf.mxu1 }
 0x2c2   :  { %13653 = vst [vmem:[#allocation6_spill] sm:$0xff] %v12182_v48  ;;  %v9809_v59 = vpop.f32.mrf.mxu0 }
 0x2c3   :  { %v3616_v16 = vadd.f32 %v9809_v59, %v3413_v52  ;;  %v9846_v43 = vpop.f32.mrf.mxu1 }
 0x2c4   :  { %v3797_v11 = vadd.f32 %v9846_v43, %v3588_v14  ;;  %v12184_v9 = vpop.f32.mrf.mxu0 }
 0x2c5   :  { %v3788_v15 = vpop.f32.mrf.mxu1 }
 0x2c6   :  { %v9812_v21 = vpop.f32.mrf.mxu0 }
 0x2c7   :  { %v3630_v12 = vadd.f32 %v9812_v21, %v3425_v1  ;;  %v9849_v47 = vpop.f32.mrf.mxu1  ;;  %v2259_v21 = vadd.f32 %v12013_v46, %v11937_v17 }
 0x2c8   :  { %v12186_v45 = vadd.f32 %v9849_v47, %v3602_v3  ;;  %v12188_v0 = vpop.f32.mrf.mxu0 }
 0x2c9   :  { %v12190_v20 = vpop.f32.mrf.mxu1 }
 0x2ca   :  { %v9815_v37 = vpop.f32.mrf.mxu0 }
 0x2cb   :  { %v3644_v33 = vadd.f32 %v9815_v37, %v3437_v13  ;;  %v9852_v5 = vpop.f32.mrf.mxu1 }
 0x2cc   :  { %v12192_v48 = vadd.f32 %v9852_v5, %v3616_v16  ;;  %v12194_v59 = vpop.f32.mrf.mxu0  ;;  %v2467_v16 = vadd.f32 %v12036_v27, %v2259_v21 }
 0x2cd   :  { %13654 = vst [vmem:[#allocation35_spill] sm:$0xff] %v12194_v59  ;;  %v12196_v43 = vpop.f32.mrf.mxu1 }
 0x2ce   :  { %v9877_v52 = vpop.f32.mrf.mxu0 }
 0x2cf   :  { %v9855_v14 = vpop.f32.mrf.mxu1  ;;  %v3962_v7 = vadd.f32 %v9877_v52, %v3733_v32  ;;  %v2273_v32 = vadd.f32 %v12024_v51, %v11945_v55 }
 0x2d0   :  { %v12198_v1 = vadd.f32 %v9855_v14, %v3630_v12  ;;  %v12200_v3 = vpop.f32.mrf.mxu0  ;;  %v2682_v12 = vadd.f32 %v12090_v23, %v2467_v16 }
 0x2d1   :  { %13655 = vst [vmem:[#allocation7_spill] sm:$0xff] %v12200_v3  ;;  %v12204_v47 = vpop.f32.mrf.mxu1  ;;  %v2483_v17 = vadd.f32 %v12045_v44, %v2273_v32 }
 0x2d2   :  { %v9880_v13 = vpop.f32.mrf.mxu0  ;;  %v2863_v46 = vadd.f32 %v12100_v54, %v2682_v12 }
 0x2d3   :  { %v9858_v37 = vpop.f32.mrf.mxu1  ;;  %v3974_v5 = vadd.f32 %v9880_v13, %v3749_v22  ;;  %v2694_v55 = vadd.f32 %v12094_v62, %v2483_v17 }
 0x2d4   :  { %v12207_v4 = vadd.f32 %v9858_v37, %v3644_v33  ;;  %v12209_v59 = vpop.f32.mrf.mxu0  ;;  %v2287_v33 = vadd.f32 %v12034_v29, %v11953_v36  ;;  %v3134_v51 = vadd.f32 %v12126_v53, %v2863_v46  ;;  %v2301_v37 = vadd.f32 %v12043_v58, %v11963_v63 }
 0x2d5   :  { %13656 = vst [vmem:[#allocation36_spill] sm:$0xff] %v12209_v59  ;;  %v12214_v52 = vpop.f32.mrf.mxu1  ;;  %v2875_v54 = vadd.f32 %v12104_v10, %v2694_v55 }
 0x2d6   :  { %v9883_v14 = vpop.f32.mrf.mxu0  ;;  %v2499_v44 = vadd.f32 %v12054_v24, %v2287_v33  ;;  %v2515_v10 = vadd.f32 %v12063_v50, %v2301_v37 }
 0x2d7   :  { %v3986_v3 = vadd.f32 %v9883_v14, %v3765_v19  ;;  %v9920_v27 = vpop.f32.mrf.mxu1  ;;  %v3383_v19 = vadd.f32 %v12136_v38, %v3134_v51  ;;  %v3154_v53 = vadd.f32 %v12130_v57, %v2875_v54  ;;  %v2315_v14 = vadd.f32 %v12052_v35, %v11976_v31 }
 0x2d8   :  { %v12218_v21 = vadd.f32 %v9920_v27, %v3962_v7  ;;  %v12220_v22 = vpop.f32.mrf.mxu0  ;;  %v2706_v29 = vadd.f32 %v12098_v25, %v2499_v44 }
 0x2d9   :  { %13657 = vst [vmem:[#allocation8_spill] sm:$0xff] %v12220_v22  ;;  %v12226_v23 = vpop.f32.mrf.mxu1  ;;  %v3581_v62 = vadd.f32 %v12176_v2, %v3383_v19  ;;  %v3395_v12 = vadd.f32 %v12140_v56, %v3154_v53  ;;  %v2718_v2 = vadd.f32 %v12102_v40, %v2515_v10 }
 0x2da   :  { %v9886_v13 = vpop.f32.mrf.mxu0 }
 0x2db   :  { %v3998_v7 = vadd.f32 %v9886_v13, %v3781_v61  ;;  %v9923_v16 = vpop.f32.mrf.mxu1  ;;  %v2887_v61 = vadd.f32 %v12108_v39, %v2706_v29  ;;  %v3789_v63 = vadd.f32 %v3788_v15, %v3581_v62  ;;  %v3595_v50 = vadd.f32 %v12180_v28, %v3395_v12  ;;  %v13668_v62 = vld [vmem:[#allocation35_spill] sm:$0xff] }
 0x2dc   :  { %v12233_v32 = vadd.f32 %v9923_v16, %v3974_v5  ;;  %v12235_v36 = vpop.f32.mrf.mxu0  ;;  %v2531_v39 = vadd.f32 %v12072_v60, %v2315_v14 }
 0x2dd   :  { %13659 = vst [vmem:[#allocation11_spill] sm:$0xff] %v12235_v36  ;;  %v12240_v24 = vpop.f32.mrf.mxu1  ;;  %v3174_v17 = vadd.f32 %v12134_v34, %v2887_v61  ;;  %v3805_v31 = vadd.f32 %v12190_v20, %v3595_v50 }
 0x2de   :  { %13658 = vst [vmem:[#allocation9_spill] sm:$0xff] %v12233_v32  ;;  %13660 = vst [vmem:[#allocation10_spill] sm:$0xff] %v12240_v24  ;;  %v9889_v38 = vpop.f32.mrf.mxu0  ;;  %v2730_v28 = vadd.f32 %v12106_v8, %v2531_v39 }
 0x2df   :  { %v4010_v58 = vadd.f32 %v9889_v38, %v3797_v11  ;;  %v9926_v5 = vpop.f32.mrf.mxu1  ;;  %v2899_v11 = vadd.f32 %v12112_v6, %v2718_v2  ;;  %v3407_v15 = vadd.f32 %v12144_v49, %v3174_v17 }
 0x2e0   :  { %v12247_v25 = vadd.f32 %v9926_v5, %v3986_v3  ;;  %v4003_v57 = vpop.f32.mrf.mxu0  ;;  %v2911_v49 = vadd.f32 %v12116_v41, %v2730_v28 }
 0x2e1   :  { %v4004_v46 = vadd.f32 %v4003_v57, %v3789_v63  ;;  %v12252_v27 = vpop.f32.mrf.mxu1  ;;  %v3194_v33 = vadd.f32 %v12138_v26, %v2899_v11  ;;  %v3609_v55 = vadd.f32 %v12184_v9, %v3407_v15 }
 0x2e2   :  { %13661 = vst [vmem:[#allocation14_spill] sm:$0xff] %v12247_v25  ;;  %13662 = vst [vmem:[#allocation12_spill] sm:$0xff] %v12252_v27  ;;  %v9892_v56 = vpop.f32.mrf.mxu0  ;;  %v3214_v26 = vadd.f32 %v12142_v42, %v2911_v49 }
 0x2e3   :  { %v4022_v35 = vadd.f32 %v9892_v56, %v12186_v45  ;;  %v9929_v3 = vpop.f32.mrf.mxu1  ;;  %v3419_v20 = vadd.f32 %v12148_v30, %v3194_v33  ;;  %v3821_v45 = vadd.f32 %v12196_v43, %v3609_v55 }
 0x2e4   :  { %v12259_v40 = vadd.f32 %v9929_v3, %v3998_v7  ;;  %v4015_v34 = vpop.f32.mrf.mxu0  ;;  %v3431_v41 = vadd.f32 %v12152_v18, %v3214_v26 }
 0x2e5   :  { %v4016_v60 = vadd.f32 %v4015_v34, %v3805_v31  ;;  %v12264_v51 = vpop.f32.mrf.mxu1  ;;  %v3623_v9 = vadd.f32 %v12188_v0, %v3419_v20 }
 0x2e6   :  { %13663 = vst [vmem:[#allocation22_spill] sm:$0xff] %v12259_v40  ;;  %13664 = vst [vmem:[#allocation13_spill] sm:$0xff] %v12264_v51  ;;  %v9895_v6 = vpop.f32.mrf.mxu0  ;;  %v3637_v10 = vadd.f32 %v13668_v62, %v3431_v41 }
 0x2e7   :  { %v4034_v13 = vadd.f32 %v9895_v6, %v12192_v48  ;;  %v9932_v44 = vpop.f32.mrf.mxu1  ;;  %v3837_v30 = vadd.f32 %v12204_v47, %v3623_v9 }
 0x2e8   :  { %v12270_v54 = vadd.f32 %v9932_v44, %v4010_v58  ;;  %v4027_v8 = vpop.f32.mrf.mxu0  ;;  %v3853_v12 = vadd.f32 %v12214_v52, %v3637_v10 }
 0x2e9   :  { %v4028_v19 = vadd.f32 %v4027_v8, %v3821_v45  ;;  %v4184_v7 = vpop.f32.mrf.mxu1 }
 0x2ea   :  { %13665 = vst [vmem:[#allocation29_spill] sm:$0xff] %v12270_v54  ;;  %v12274_v16 = vadd.f32 %v4184_v7, %v4004_v46  ;;  %v9898_v37 = vpop.f32.mrf.mxu0 }
 0x2eb   :  { %v4046_v43 = vadd.f32 %v9898_v37, %v12198_v1  ;;  %v9935_v48 = vpop.f32.mrf.mxu1 }
 0x2ec   :  { %13666 = vst [vmem:[#allocation17_spill] sm:$0xff] %v12274_v16  ;;  %v12279_v29 = vadd.f32 %v9935_v48, %v4022_v35  ;;  %v4039_v53 = vpop.f32.mrf.mxu0 }
 0x2ed   :  { %v4040_v42 = vadd.f32 %v4039_v53, %v3837_v30  ;;  %v4196_v38 = vpop.f32.mrf.mxu1 }
 0x2ee   :  { %13667 = vst [vmem:[#allocation15_spill] sm:$0xff] %v12279_v29  ;;  %v12282_v0 = vadd.f32 %v4196_v38, %v4016_v60  ;;  %v9901_v61 = vpop.f32.mrf.mxu0 }
 0x2ef   :  { %v4058_v63 = vadd.f32 %v9901_v61, %v12207_v4  ;;  %v9938_v18 = vpop.f32.mrf.mxu1 }
 0x2f0   :  { %13669 = vst [vmem:[#allocation20_spill] sm:$0xff] %v12282_v0  ;;  %v12286_v58 = vadd.f32 %v9938_v18, %v4034_v13  ;;  %v4051_v47 = vpop.f32.mrf.mxu0 }
 0x2f1   :  { %v4052_v1 = vadd.f32 %v4051_v47, %v3853_v12  ;;  %v4208_v5 = vpop.f32.mrf.mxu1 }
 0x2f2   :  { %13670 = vst [vmem:[#allocation16_spill] sm:$0xff] %v12286_v58  ;;  %v12288_v14 = vadd.f32 %v4208_v5, %v4028_v19  ;;  %v12290_v57 = vpop.f32.mrf.mxu0 }
 0x2f3   :  { %v9941_v2 = vpop.f32.mrf.mxu1 }
 0x2f4   :  { %13671 = vst [vmem:[#allocation26_spill] sm:$0xff] %v12288_v14  ;;  %v12292_v17 = vadd.f32 %v9941_v2, %v4046_v43  ;;  %v12294_v50 = vpop.f32.mrf.mxu0  ;;  %v8505_v2 = vld [vmem:[%s13355_s1 + $0x128] sm:$0xff] }
 0x2f5   :  { %v4220_v46 = vpop.f32.mrf.mxu1  ;;  %v5014_v14 = vsel %vm1597_vm1, %v8505_v2, 0 }
 0x2f6   :  { %13672 = vst [vmem:[#allocation18_spill] sm:$0xff] %v12292_v17  ;;  %v12296_v39 = vadd.f32 %v4220_v46, %v4040_v42  ;;  %v9952_v52 = vpop.f32.mrf.mxu0 }
 0x2f7   :  { %v9944_v4 = vpop.f32.mrf.mxu1 }
 0x2f8   :  { %13673 = vst [vmem:[#allocation32_spill] sm:$0xff] %v12296_v39  ;;  %v12298_v56 = vadd.f32 %v9944_v4, %v4058_v63  ;;  %v4336_v11 = vpop.f32.mrf.mxu0 }
 0x2f9   :  { %v4232_v15 = vpop.f32.mrf.mxu1 }
 0x2fa   :  { %13674 = vst [vmem:[#allocation19_spill] sm:$0xff] %v12298_v56  ;;  %v12300_v31 = vadd.f32 %v4232_v15, %v4052_v1  ;;  %v9955_v35 = vpop.f32.mrf.mxu0 }
 0x2fb   :  { %v9963_v3 = vpop.f32.mrf.mxu1 }
 0x2fc   :  { %13675 = vst [vmem:[#allocation21_spill] sm:$0xff] %v12300_v31  ;;  %v4356_v34 = vpop.f32.mrf.mxu0 }
 0x2fd   :  { %v12302_v28 = vpop.f32.mrf.mxu1 }
 0x2fe   :  { %v9958_v33 = vpop.f32.mrf.mxu0 }
 0x2ff   :  { %v9966_v55 = vpop.f32.mrf.mxu1 }
 0x300   :  { %v4376_v60 = vpop.f32.mrf.mxu0  ;;  %v4481_v15 = vadd.f32 %v9966_v55, %v9952_v52  ;;  %v4469_v52 = vadd.f32 %v9963_v3, %v12290_v57 }
 0x301   :  { %v4474_v6 = vpop.f32.mrf.mxu1 }
 0x302   :  { %v9977_v49 = vpop.f32.mrf.mxu0  ;;  %v4475_v39 = vadd.f32 %v4474_v6, %v4336_v11  ;;  %v12321_v6 = vand.u32 4294901760, %v5014_v14 }
 0x303   :  { %v9969_v20 = vpop.f32.mrf.mxu1 }
 0x304   :  { %v12304_v45 = vpop.f32.mrf.mxu0  ;;  %v4493_v5 = vadd.f32 %v9969_v20, %v9955_v35 }
 0x305   :  { %v4486_v13 = vpop.f32.mrf.mxu1 }
 0x306   :  { %v9980_v44 = vpop.f32.mrf.mxu0  ;;  %v4487_v31 = vadd.f32 %v4486_v13, %v4356_v34 }
 0x307   :  { %v9972_v8 = vpop.f32.mrf.mxu1  ;;  %v4600_v0 = vadd.f32 %v9980_v44, %v4481_v15 }
 0x308   :  { %v4592_v26 = vpop.f32.mrf.mxu0  ;;  %v4505_v58 = vadd.f32 %v9972_v8, %v9958_v33 }
 0x309   :  { %v4498_v9 = vpop.f32.mrf.mxu1  ;;  %v4593_v35 = vadd.f32 %v4592_v26, %v4475_v39  ;;  %v8506_v39 = vld [vmem:[%s13355_s1 + $0x130] sm:$0xff] }
 0x30a   :  { %v9983_v19 = vpop.f32.mrf.mxu0  ;;  %v4499_v54 = vadd.f32 %v4498_v9, %v4376_v60 }
 0x30b   :  { %v9991_v7 = vpop.f32.mrf.mxu1  ;;  %v4614_v56 = vadd.f32 %v9983_v19, %v4493_v5 }
 0x30c   :  { %v4606_v37 = vpop.f32.mrf.mxu0 }
 0x30d   :  { %v12306_v41 = vpop.f32.mrf.mxu1  ;;  %v4607_v29 = vadd.f32 %v4606_v37, %v4487_v31 }
 0x30e   :  { %v9986_v30 = vpop.f32.mrf.mxu0 }
 0x30f   :  { %v9994_v43 = vpop.f32.mrf.mxu1  ;;  %v4628_v25 = vadd.f32 %v9986_v30, %v4505_v58 }
 0x310   :  { %v4620_v48 = vpop.f32.mrf.mxu0  ;;  %v4726_v32 = vadd.f32 %v9994_v43, %v4600_v0  ;;  %v4463_v0 = vadd.f32 %v12302_v28, %v12294_v50  ;;  %v5017_v50 = vsel %vm1597_vm1, %v8506_v39, 0 }
 0x311   :  { %v4717_v53 = vpop.f32.mrf.mxu1  ;;  %v4621_v34 = vadd.f32 %v4620_v48, %v4499_v54 }
 0x312   :  { %v12308_v62 = vpop.f32.mrf.mxu0  ;;  %v4718_v55 = vadd.f32 %v4717_v53, %v4593_v35 }
 0x313   :  { %v9997_v10 = vpop.f32.mrf.mxu1 }
 0x314   :  { %v12310_v42 = vpop.f32.mrf.mxu0  ;;  %v4742_v16 = vadd.f32 %v9997_v10, %v4614_v56 }
 0x315   :  { %v4733_v38 = vpop.f32.mrf.mxu1 }
 0x316   :  { %v10008_v61 = vpop.f32.mrf.mxu0  ;;  %v4734_v51 = vadd.f32 %v4733_v38, %v4607_v29  ;;  %v4586_v29 = vadd.f32 %v9977_v49, %v4469_v52 }
 0x317   :  { %v10000_v12 = vpop.f32.mrf.mxu1  ;;  %v4850_v33 = vadd.f32 %v10008_v61, %v4726_v32  ;;  %v8507_v32 = vld [vmem:[%s13355_s1 + $0x138] sm:$0xff] }
 0x318   :  { %v4843_v63 = vpop.f32.mrf.mxu0  ;;  %v4758_v13 = vadd.f32 %v10000_v12, %v4628_v25 }
 0x319   :  { %v4749_v18 = vpop.f32.mrf.mxu1  ;;  %v4844_v58 = vadd.f32 %v4843_v63, %v4718_v55 }
 0x31a   :  { %v10011_v47 = vpop.f32.mrf.mxu0 }
 0x31b   :  { %v12312_v1 = vpop.f32.mrf.mxu1  ;;  %v4862_v27 = vadd.f32 %v10011_v47, %v4742_v16  ;;  %v4750_v16 = vadd.f32 %v4749_v18, %v4621_v34 }
 0x31c   :  { %v4855_v46 = vpop.f32.mrf.mxu0 }
 0x31d   :  { %v12317_v4 = vpop.f32.mrf.mxu1  ;;  %v4856_v44 = vadd.f32 %v4855_v46, %v4734_v51  ;;  %v4710_v51 = vadd.f32 %v9991_v7, %v4586_v29  ;;  %v5020_v7 = vsel %vm1597_vm1, %v8507_v32, 0  ;;  %v8511_v29 = vld [vmem:[%s13355_s1 + $0x158] sm:$0xff] }
 0x31e   :  { %v10014_v20 = vpop.f32.mrf.mxu0 }
 0x31f   :  { %v10022_v17 = vpop.f32.mrf.mxu1  ;;  %v4874_v56 = vadd.f32 %v10014_v20, %v4758_v13  ;;  %v4838_v37 = vadd.f32 %v12308_v62, %v4710_v51 }
 0x320   :  { %v4867_v57 = vpop.f32.mrf.mxu0  ;;  %v4964_v3 = vadd.f32 %v10022_v17, %v4850_v33  ;;  %v8508_v17 = vld [vmem:[%s13355_s1 + $0x140] sm:$0xff]  ;;  %v8510_v33 = vld [vmem:[%s13355_s1 + $0x150] sm:$0xff] }
 0x321   :  { %v4957_v40 = vpop.f32.mrf.mxu1  ;;  %v4868_v28 = vadd.f32 %v4867_v57, %v4750_v16  ;;  %v4952_v10 = vadd.f32 %v12312_v1, %v4838_v37  ;;  %v5023_v38 = vsel %vm1597_vm1, %v8508_v17, 0  ;;  %v12375_v1 = vand.u32 4294901760, %v5020_v7 }
 0x322   :  { %v4958_v49 = vadd.f32 %v4957_v40, %v4844_v58  ;;  %v12346_v43 = vand.u32 4294901760, %v4964_v3  ;;  %v12397_v52 = vand.u32 4294901760, %v5023_v38  ;;  %v5029_v32 = vsel %vm1597_vm1, %v8510_v33, 0 }
 0x323   :  { %v10025_v11 = vpop.f32.mrf.mxu1  ;;  %v12391_v35 = vand.u32 4294901760, %v4952_v10  ;;  %v12421_v39 = vsub.f32 %v5020_v7, %v12375_v1 }
 0x324   :  { %v4976_v31 = vadd.f32 %v10025_v11, %v4862_v27  ;;  %v4579_v27 = vadd.f32 %v12304_v45, %v4463_v0  ;;  %v12343_v45 = vsub.f32 %v5014_v14, %v12321_v6  ;;  %v12358_v14 = vand.u32 4294901760, %v5017_v50 }
 0x325   :  { %v4969_v54 = vpop.f32.mrf.mxu1  ;;  %v12361_v61 = vand.u32 4294901760, %v4958_v49  ;;  %v12379_v2 = vsub.f32 %v4964_v3, %v12346_v43 }
 0x326   :  { %v12328_v60 = vand.u32 4294901760, %v4976_v31  ;;  %v4970_v25 = vadd.f32 %v4969_v54, %v4856_v44  ;;  %v4702_v19 = vadd.f32 %v12306_v41, %v4579_v27  ;;  %v8509_v41 = vld [vmem:[%s13355_s1 + $0x148] sm:$0xff]  ;;  %v13445_v47 = vand.u32 4294901760, %v12343_v45 }
 0x327   :  { %v10028_v8 = vpop.f32.mrf.mxu1  ;;  %v5026_v5 = vsel %vm1597_vm1, %v8509_v41, 0  ;;  %v12395_v20 = vsub.f32 %v5017_v50, %v12358_v14  ;;  %v12400_v34 = vsub.f32 %v4958_v49, %v12361_v61  ;;  %v12434_v54 = vand.u32 4294901760, %v12379_v2 }
 0x328   :  { %v12335_v26 = vand.u32 4294901760, %v4970_v25  ;;  %v4988_v9 = vadd.f32 %v10028_v8, %v4874_v56  ;;  %v12349_v40 = vsub.f32 %v4976_v31, %v12328_v60  ;;  %v4832_v62 = vadd.f32 %v12310_v42, %v4702_v19 }
 0x329   :  { %v4981_v30 = vpop.f32.mrf.mxu1  ;;  %v5150_v31 = vsub.f32 %v12343_v45, %v13445_v47  ;;  %v12423_v0 = vand.u32 4294901760, %v5026_v5  ;;  %v12437_v56 = vsub.f32 %v4952_v10, %v12391_v35  ;;  %v13443_v3 = vand.u32 4294901760, %v12395_v20  ;;  %v8513_v10 = vld [vmem:[%s13355_s1 + $0x168] sm:$0xff] }
 0x32a   :  { %v12351_v48 = vand.u32 4294901760, %v4988_v9  ;;  %v4982_v53 = vadd.f32 %v4981_v30, %v4868_v28  ;;  %v12364_v12 = vsub.f32 %v4970_v25, %v12335_v26  ;;  %v4946_v42 = vadd.f32 %v12317_v4, %v4832_v62 }
 0x32b   :  { %v12389_v4 = vand.u32 4294901760, %v12349_v40  ;;  %v12442_v25 = vsub.f32 %v5023_v38, %v12397_v52  ;;  %v12449_v8 = vand.u32 4294901760, %v12400_v34  ;;  %v5032_v50 = vsel %vm1597_vm1, %v8511_v29, 0 }
 0x32c   :  { %v12367_v63 = vsub.f32 %v4988_v9, %v12351_v48  ;;  %v12369_v18 = vand.u32 4294901760, %v4982_v53  ;;  %10029 = vmatprep.subr.mxu0 %v12351_v48  ;;  %v12409_v13 = vand.u32 4294901760, %v12364_v12  ;;  %v12414_v44 = vand.u32 4294901760, %v4946_v42  ;;  %v8512_v9 = vld [vmem:[%s13355_s1 + $0x160] sm:$0xff] }
 0x32d   :  { %10030 = vmatpush3.msra.mxu0 %v12351_v48  ;;  %v5351_v57 = vsub.f32 %v12349_v40, %v12389_v4  ;;  %v13441_v49 = vand.u32 4294901760, %v12421_v39  ;;  %v5365_v19 = vsub.f32 %v12379_v2, %v12434_v54  ;;  %v12464_v37 = vsub.f32 %v5026_v5, %v12423_v0 }
 0x32e   :  { %v12382_v46 = vsub.f32 %v4982_v53, %v12369_v18  ;;  %10031 = vmatprep.subr.mxu0 %v12369_v18  ;;  %v12386_v15 = vand.u32 4294901760, %v12367_v63  ;;  %v5358_v51 = vsub.f32 %v12364_v12, %v12409_v13  ;;  %v12453_v28 = vsub.f32 %v4946_v42, %v12414_v44 }
 0x32f   :  { %10032 = vmatpush3.msra.mxu0 %v12369_v18  ;;  %v5352_v17 = vand.u32 4294901760, %v5351_v57  ;;  %v12466_v30 = vand.u32 4294901760, %v5029_v32  ;;  %v5151_v7 = vand.u32 4294901760, %v5150_v31  ;;  %v5160_v53 = vsub.f32 %v12395_v20, %v13443_v3 }
 0x330   :  { %10033 = vmatprep.subr.mxu0 %v12328_v60  ;;  %v5337_v55 = vsub.f32 %v12367_v63, %v12386_v15  ;;  %v12406_v11 = vand.u32 4294901760, %v12382_v46  ;;  %v12473_v41 = vand.u32 4294901760, %v12437_v56  ;;  %v12475_v62 = vand.u32 4294901760, %v5032_v50 }
 0x331   :  { %10034 = vmatpush3.msra.mxu0 %v12328_v60  ;;  %v5359_v38 = vand.u32 4294901760, %v5358_v51  ;;  %v5372_v42 = vsub.f32 %v12400_v34, %v12449_v8  ;;  %v13442_v5 = vand.u32 4294901760, %v12442_v25  ;;  %v5170_v33 = vsub.f32 %v12421_v39, %v13441_v49 }
 0x332   :  { %10035 = vmatprep.subr.mxu0 %v12335_v26  ;;  %v5338_v16 = vand.u32 4294901760, %v5337_v55  ;;  %v5344_v58 = vsub.f32 %v12382_v46, %v12406_v11  ;;  %v5035_v55 = vsel %vm1597_vm1, %v8512_v9, 0  ;;  %v12490_v31 = vand.u32 4294901760, %v12453_v28 }
 0x333   :  { %10036 = vmatpush3.msra.mxu0 %v12335_v26  ;;  %v5366_v29 = vand.u32 4294901760, %v5365_v19  ;;  %v5038_v57 = vsel %vm1597_vm1, %v8513_v10, 0  ;;  %v5161_v51 = vand.u32 4294901760, %v5160_v53  ;;  %v5379_v9 = vsub.f32 %v12437_v56, %v12473_v41 }
 0x334   :  { %10037 = vmatprep.subr.mxu0 %v12346_v43  ;;  %10072 = vmatprep.subr.mxu1 %v5338_v16  ;;  %v5345_v27 = vand.u32 4294901760, %v5344_v58  ;;  %v12495_v58 = vsub.f32 %v5029_v32, %v12466_v30  ;;  %v12507_v19 = vand.u32 4294901760, %v5035_v55  ;;  %v5373_v32 = vand.u32 4294901760, %v5372_v42 }
 0x335   :  { %10038 = vmatpush3.msra.mxu0 %v12346_v43  ;;  %10073 = vmatpush3.msra.mxu1 %v5338_v16  ;;  %v13444_v16 = vand.u32 4294901760, %v12464_v37  ;;  %v5180_v10 = vsub.f32 %v12442_v25, %v13442_v5  ;;  %v5171_v53 = vand.u32 4294901760, %v5170_v33  ;;  %v12518_v49 = vand.u32 4294901760, %v5038_v57  ;;  %v8516_v33 = vld [vmem:[%s13355_s1 + $0x180] sm:$0xff]  ;;  %v8517_v5 = vld [vmem:[%s13355_s1 + $0x188] sm:$0xff] }
 0x336   :  { %10039 = vmatprep.subr.mxu0 %v12361_v61  ;;  %10074 = vmatprep.subr.mxu1 %v5345_v27 }
 0x337   :  { %10040 = vmatpush3.msra.mxu0 %v12361_v61  ;;  %10075 = vmatpush3.msra.mxu1 %v5345_v27  ;;  %v8514_v27 = vld [vmem:[%s13355_s1 + $0x170] sm:$0xff]  ;;  %v5190_v42 = vsub.f32 %v12464_v37, %v13444_v16  ;;  %v5181_v16 = vand.u32 4294901760, %v5180_v10 }
 0x338   :  { %10041 = vmatprep.subr.mxu0 %v12391_v35  ;;  %10076 = vmatprep.subr.mxu1 %v5352_v17 }
 0x339   :  { %10042 = vmatpush3.msra.mxu0 %v12391_v35  ;;  %10077 = vmatpush3.msra.mxu1 %v5352_v17  ;;  %v12505_v17 = vsub.f32 %v5032_v50, %v12475_v62  ;;  %v5386_v50 = vsub.f32 %v12453_v28, %v12490_v31 }
 0x33a   :  { %10043 = vmatprep.subr.mxu0 %v12414_v44  ;;  %10078 = vmatprep.subr.mxu1 %v5359_v38 }
 0x33b   :  { %10044 = vmatpush3.msra.mxu0 %v12414_v44  ;;  %10079 = vmatpush3.msra.mxu1 %v5359_v38  ;;  %v8515_v38 = vld [vmem:[%s13355_s1 + $0x178] sm:$0xff]  ;;  %v13446_v3 = vand.u32 4294901760, %v12505_v17 }
 0x33c   :  { %10046 = vmatmul.mubr.f32.vlgmr.msra.gmra.mxu0 %v5151_v7  ;;  %10080 = vmatprep.subr.mxu1 %v5366_v29  ;;  %v5041_v7 = vsel %vm1597_vm1, %v8514_v27, 0  ;;  %v12532_v27 = vsub.f32 %v5035_v55, %v12507_v19  ;;  %v5047_v55 = vsel %vm1597_vm1, %v8516_v33, 0 }
 0x33d   :  { %10115 = vmatprep.subr.mxu0 %v12367_v63  ;;  %10081 = vmatpush3.msra.mxu1 %v5366_v29  ;;  %v5380_v29 = vand.u32 4294901760, %v5379_v9  ;;  %v12536_v47 = vand.u32 4294901760, %v5041_v7  ;;  %v12542_v9 = vsub.f32 %v5038_v57, %v12518_v49  ;;  %v5210_v57 = vsub.f32 %v12505_v17, %v13446_v3 }
 0x33e   :  { %10116 = vmatpush3.msra.mxu0 %v12367_v63  ;;  %10082 = vmatprep.subr.mxu1 %v5373_v32  ;;  %v5044_v63 = vsel %vm1597_vm1, %v8515_v38, 0 }
 0x33f   :  { %10117 = vmatprep.subr.mxu0 %v12382_v46  ;;  %10048 = vmatprep.mubr.f32.mxu0 %v5161_v51  ;;  %v5387_v51 = vand.u32 4294901760, %v5386_v50  ;;  %v12549_v38 = vand.u32 4294901760, %v5044_v63  ;;  %v12562_v33 = vsub.f32 %v5041_v7, %v12536_v47 }
 0x340   :  { %10083 = vmatpush3.msra.mxu1 %v5373_v32  ;;  %10118 = vmatpush3.msra.mxu0 %v12382_v46  ;;  %v5191_v32 = vand.u32 4294901760, %v5190_v42  ;;  %v13676_v46 = vand.u32 4294901760, %v12495_v58  ;;  %v5050_v42 = vsel %vm1597_vm1, %v8517_v5, 0  ;;  %v8520_v5 = vld [vmem:[%s13355_s1 + $0x1a0] sm:$0xff] }
 0x341   :  { %10049 = vmatmul.mubr.f32.gmra.mxu0 %v5171_v53  ;;  %10084 = vmatprep.subr.mxu1 %v5380_v29  ;;  %v8518_v53 = vld [vmem:[%s13355_s1 + $0x190] sm:$0xff]  ;;  %v12577_v7 = vsub.f32 %v5044_v63, %v12549_v38  ;;  %v12579_v50 = vand.u32 4294901760, %v5050_v42  ;;  %v5059_v24 = vsel %vm1597_vm1, %v8520_v5, 0 }
 0x342   :  { %10119 = vmatprep.subr.mxu0 %v12349_v40  ;;  %10085 = vmatpush3.msra.mxu1 %v5380_v29  ;;  %v5200_v10 = vsub.f32 %v12495_v58, %v13676_v46  ;;  %v12564_v29 = vand.u32 4294901760, %v5047_v55  ;;  %v5053_v3 = vsel %vm1597_vm1, %v8518_v53, 0  ;;  %v12613_v63 = vand.u32 4294901760, %v5059_v24 }
 0x343   :  { %10120 = vmatpush3.msra.mxu0 %v12349_v40  ;;  %10086 = vmatprep.subr.mxu1 %v5387_v51  ;;  %v8519_v40 = vld [vmem:[%s13355_s1 + $0x198] sm:$0xff] }
 0x344   :  { %10121 = vmatprep.subr.mxu0 %v12364_v12  ;;  %10051 = vmatprep.mubr.f32.mxu0 %v5181_v16  ;;  %v5201_v16 = vand.u32 4294901760, %v5200_v10  ;;  %v5056_v46 = vsel %vm1597_vm1, %v8519_v40, 0  ;;  %v12593_v10 = vand.u32 4294901760, %v5053_v3 }
 0x345   :  { %10087 = vmatpush3.msra.mxu1 %v5387_v51  ;;  %10122 = vmatpush3.msra.mxu0 %v12364_v12  ;;  %v5211_v12 = vand.u32 4294901760, %v5210_v57  ;;  %v13677_v51 = vand.u32 4294901760, %v12532_v27  ;;  %v8521_v57 = vld [vmem:[%s13355_s1 + $0x1a8] sm:$0xff]  ;;  %v12609_v5 = vand.u32 4294901760, %v5056_v46 }
 0x346   :  { %10052 = vmatmul.mubr.f32.gmra.mxu0 %v5191_v32  ;;  %10089 = vmatmul.mubr.f32.vlgmr.msra.gmra.mxu1 %v12321_v6  ;;  %v12591_v32 = vsub.f32 %v5047_v55, %v12564_v29  ;;  %v5062_v36 = vsel %vm1597_vm1, %v8521_v57, 0  ;;  %v12622_v22 = vsub.f32 %v5053_v3, %v12593_v10 }
 0x347   :  { %10123 = vmatprep.subr.mxu0 %v12379_v2  ;;  %10158 = vmatprep.subr.mxu1 %v12351_v48  ;;  %v5220_v53 = vsub.f32 %v12532_v27, %v13677_v51  ;;  %v12607_v51 = vsub.f32 %v5050_v42, %v12579_v50  ;;  %v12635_v3 = vand.u32 4294901760, %v5062_v36 }
 0x348   :  { %10124 = vmatpush3.msra.mxu0 %v12379_v2  ;;  %10159 = vmatpush3.msra.mxu1 %v12351_v48  ;;  %v13678_v2 = vand.u32 4294901760, %v12542_v9  ;;  %v13447_v42 = vand.u32 4294901760, %v12591_v32 }
 0x349   :  { %10125 = vmatprep.subr.mxu0 %v12400_v34  ;;  %10160 = vmatprep.subr.mxu1 %v12369_v18  ;;  %v12655_v59 = vsub.f32 %v5062_v36, %v12635_v3 }
 0x34a   :  { %v5230_v40 = vsub.f32 %v12542_v9, %v13678_v2  ;;  %10054 = vmatprep.mubr.f32.mxu0 %v5201_v16  ;;  %10091 = vmatprep.mubr.f32.mxu1 %v12358_v14  ;;  %v5221_v16 = vand.u32 4294901760, %v5220_v53  ;;  %v13679_v2 = vand.u32 4294901760, %v12562_v33 }
 0x34b   :  { %10126 = vmatpush3.msra.mxu0 %v12400_v34  ;;  %10161 = vmatpush3.msra.mxu1 %v12369_v18 }
 0x34c   :  { %10055 = vmatmul.mubr.f32.gmra.mxu0 %v5211_v12  ;;  %10092 = vmatmul.mubr.f32.gmra.mxu1 %v12375_v1  ;;  %v5240_v55 = vsub.f32 %v12562_v33, %v13679_v2  ;;  %v5231_v34 = vand.u32 4294901760, %v5230_v40  ;;  %v13680_v12 = vand.u32 4294901760, %v12577_v7  ;;  %v12633_v2 = vsub.f32 %v5056_v46, %v12609_v5 }
 0x34d   :  { %10127 = vmatprep.subr.mxu0 %v12437_v56  ;;  %10162 = vmatprep.subr.mxu1 %v12328_v60  ;;  %v12640_v40 = vsub.f32 %v5059_v24, %v12613_v63  ;;  %v5279_v46 = vand.u32 4294901760, %v12622_v22  ;;  %v13681_v24 = vand.u32 4294901760, %v12607_v51 }
 0x34e   :  { %10128 = vmatpush3.msra.mxu0 %v12437_v56  ;;  %10163 = vmatpush3.msra.mxu1 %v12328_v60  ;;  %v5250_v53 = vsub.f32 %v12577_v7, %v13680_v12  ;;  %v5241_v56 = vand.u32 4294901760, %v5240_v55  ;;  %v5260_v12 = vsub.f32 %v12591_v32, %v13447_v42  ;;  %v5289_v55 = vand.u32 4294901760, %v12633_v2 }
 0x34f   :  { %10129 = vmatprep.subr.mxu0 %v12453_v28  ;;  %10164 = vmatprep.subr.mxu1 %v12335_v26  ;;  %v5309_v42 = vand.u32 4294901760, %v12655_v59 }
 0x350   :  { %10057 = vmatprep.mubr.f32.mxu0 %v5221_v16  ;;  %10094 = vmatprep.mubr.f32.mxu1 %v12397_v52  ;;  %v5251_v57 = vand.u32 4294901760, %v5250_v53  ;;  %v5270_v16 = vsub.f32 %v12607_v51, %v13681_v24  ;;  %v5280_v53 = vsub.f32 %v12622_v22, %v5279_v46  ;;  %v5290_v24 = vsub.f32 %v12633_v2, %v5289_v55 }
 0x351   :  { %10130 = vmatpush3.msra.mxu0 %v12453_v28  ;;  %10165 = vmatpush3.msra.mxu1 %v12335_v26  ;;  %v13448_v28 = vand.u32 4294901760, %v12640_v40 }
 0x352   :  { %10058 = vmatmul.mubr.f32.gmra.mxu0 %v5231_v34  ;;  %10095 = vmatmul.mubr.f32.gmra.mxu1 %v12423_v0  ;;  %v5261_v34 = vand.u32 4294901760, %v5260_v12  ;;  %v5271_v36 = vand.u32 4294901760, %v5270_v16  ;;  %v5281_v12 = vand.u32 4294901760, %v5280_v53  ;;  %v5310_v16 = vsub.f32 %v12655_v59, %v5309_v42  ;;  %v13682_v53 = vld [vmem:[#allocation30_spill] sm:$0xff] }
 0x353   :  { %10166 = vmatprep.subr.mxu1 %v12346_v43  ;;  %10201 = vmatprep.subr.mxu0 %v12386_v15 }
 0x354   :  { %10167 = vmatpush3.msra.mxu1 %v12346_v43  ;;  %10060 = vmatprep.mubr.f32.mxu0 %v5241_v56  ;;  %v5300_v56 = vsub.f32 %v12640_v40, %v13448_v28 }
 0x355   :  { %10168 = vmatprep.subr.mxu1 %v12361_v61  ;;  %10097 = vmatprep.mubr.f32.mxu1 %v12466_v30 }
 0x356   :  { %10169 = vmatpush3.msra.mxu1 %v12361_v61  ;;  %10061 = vmatmul.mubr.f32.gmra.mxu0 %v5251_v57  ;;  %v5291_v57 = vand.u32 4294901760, %v5290_v24  ;;  %v5301_v28 = vand.u32 4294901760, %v5300_v56 }
 0x357   :  { %10098 = vmatmul.mubr.f32.gmra.mxu1 %v12475_v62  ;;  %10170 = vmatprep.subr.mxu1 %v12391_v35 }
 0x358   :  { %10171 = vmatpush3.msra.mxu1 %v12391_v35  ;;  %10063 = vmatprep.mubr.f32.mxu0 %v5261_v34  ;;  %v5311_v34 = vand.u32 4294901760, %v5310_v16 }
 0x359   :  { %10172 = vmatprep.subr.mxu1 %v12414_v44  ;;  %10100 = vmatprep.mubr.f32.mxu1 %v12507_v19 }
 0x35a   :  { %10173 = vmatpush3.msra.mxu1 %v12414_v44  ;;  %10064 = vmatmul.mubr.f32.gmra.mxu0 %v5271_v36 }
 0x35b   :  { %10101 = vmatmul.mubr.f32.gmra.mxu1 %v12518_v49  ;;  %10244 = vmatprep.subr.mxu1 %v12351_v48 }
 0x35c   :  { %10066 = vmatprep.mubr.f32.mxu0 %v5281_v12  ;;  %10103 = vmatprep.mubr.f32.mxu1 %v12536_v47 }
 0x35e   :  { %10067 = vmatmul.mubr.f32.gmra.mxu0 %v5291_v57 }
 0x35f   :  { %10104 = vmatmul.mubr.f32.gmra.mxu1 %v12549_v38  ;;  %10069 = vmatprep.mubr.f32.mxu0 %v5301_v28 }
 0x360   :  { %10106 = vmatprep.mubr.f32.mxu1 %v12564_v29 }
 0x362   :  { %10070 = vmatmul.mubr.f32.gmra.mxu0 %v5311_v34 }
 0x363   :  { %10107 = vmatmul.mubr.f32.gmra.mxu1 %v12579_v50  ;;  %10131 = vmatprep.mubr.f32.mxu0 %v13682_v53 }
 0x364   :  { %10109 = vmatprep.mubr.f32.mxu1 %v12593_v10 }
 0x366   :  { %10132 = vmatmul.mubr.f32.vlgmr.msra.gmra.mxu0 %v12343_v45 }
 0x367   :  { %10110 = vmatmul.mubr.f32.gmra.mxu1 %v12609_v5  ;;  %10202 = vmatpush3.msra.mxu0 %v12386_v15  ;;  %v13683_v15 = vand.u32 4294901760, %v13682_v53 }
 0x368   :  { %10203 = vmatprep.subr.mxu0 %v12406_v11  ;;  %10112 = vmatprep.mubr.f32.mxu1 %v12613_v63 }
 0x369   :  { %10204 = vmatpush3.msra.mxu0 %v12406_v11  ;;  %10134 = vmatprep.mubr.f32.mxu0 %v12395_v20  ;;  %v13684_v11 = vand.u32 4294901760, %v12343_v45  ;;  %v13686_v45 = vand.u32 4294901760, %v12421_v39 }
 0x36a   :  { %10205 = vmatprep.subr.mxu0 %v12389_v4  ;;  %10135 = vmatmul.mubr.f32.gmra.mxu0 %v12421_v39  ;;  %v13697_v39 = vld [vmem:[#allocation27_spill] sm:$0xff] }
 0x36b   :  { %10113 = vmatmul.mubr.f32.gmra.mxu1 %v12635_v3  ;;  %10206 = vmatpush3.msra.mxu0 %v12389_v4  ;;  %v13685_v4 = vand.u32 4294901760, %v12395_v20  ;;  %v13693_v20 = vand.u32 4294901760, %v12562_v33 }
 0x36c   :  { %10207 = vmatprep.subr.mxu0 %v12409_v13  ;;  %10137 = vmatprep.mubr.f32.mxu0 %v12442_v25 }
 0x36d   :  { %10208 = vmatpush3.msra.mxu0 %v12409_v13  ;;  %10174 = vmatprep.mubr.f32.mxu1 %v13683_v15  ;;  %v13695_v13 = vand.u32 4294901760, %v12591_v32 }
 0x36e   :  { %10209 = vmatprep.subr.mxu0 %v12434_v54  ;;  %10138 = vmatmul.mubr.f32.gmra.mxu0 %v12464_v37 }
 0x36f   :  { %10175 = vmatmul.mubr.f32.vlgmr.msra.gmra.mxu1 %v13684_v11  ;;  %10210 = vmatpush3.msra.mxu0 %v12434_v54  ;;  %v13698_v54 = vand.u32 4294901760, %v12640_v40 }
 0x370   :  { %10245 = vmatpush3.msra.mxu1 %v12351_v48  ;;  %10211 = vmatprep.subr.mxu0 %v12449_v8  ;;  %v13687_v48 = vand.u32 4294901760, %v12442_v25 }
 0x371   :  { %10246 = vmatprep.subr.mxu1 %v12369_v18  ;;  %10212 = vmatpush3.msra.mxu0 %v12449_v8 }
 0x372   :  { %10247 = vmatpush3.msra.mxu1 %v12369_v18  ;;  %10140 = vmatprep.mubr.f32.mxu0 %v12495_v58  ;;  %v13688_v18 = vand.u32 4294901760, %v12464_v37 }
 0x373   :  { %10177 = vmatprep.mubr.f32.mxu1 %v13685_v4  ;;  %10213 = vmatprep.subr.mxu0 %v12473_v41 }
 0x374   :  { %10248 = vmatprep.subr.mxu1 %v12328_v60  ;;  %10141 = vmatmul.mubr.f32.gmra.mxu0 %v12505_v17 }
 0x375   :  { %10178 = vmatmul.mubr.f32.gmra.mxu1 %v13686_v45  ;;  %10214 = vmatpush3.msra.mxu0 %v12473_v41 }
 0x376   :  { %10249 = vmatpush3.msra.mxu1 %v12328_v60  ;;  %10215 = vmatprep.subr.mxu0 %v12490_v31  ;;  %v13689_v60 = vand.u32 4294901760, %v12495_v58 }
 0x377   :  { %10250 = vmatprep.subr.mxu1 %v12335_v26  ;;  %10216 = vmatpush3.msra.mxu0 %v12490_v31 }
 0x378   :  { %10251 = vmatpush3.msra.mxu1 %v12335_v26  ;;  %10143 = vmatprep.mubr.f32.mxu0 %v12532_v27  ;;  %v13690_v26 = vand.u32 4294901760, %v12505_v17 }
 0x379   :  { %10180 = vmatprep.mubr.f32.mxu1 %v13687_v48  ;;  %10252 = vmatprep.subr.mxu1 %v12346_v43 }
 0x37a   :  { %10144 = vmatmul.mubr.f32.gmra.mxu0 %v12542_v9  ;;  %10181 = vmatmul.mubr.f32.gmra.mxu1 %v13688_v18 }
 0x37b   :  { %10253 = vmatpush3.msra.mxu1 %v12346_v43  ;;  %10146 = vmatprep.mubr.f32.mxu0 %v12562_v33  ;;  %v13691_v43 = vand.u32 4294901760, %v12532_v27 }
 0x37c   :  { %10254 = vmatprep.subr.mxu1 %v12361_v61  ;;  %10183 = vmatprep.mubr.f32.mxu1 %v13689_v60 }
 0x37d   :  { %10255 = vmatpush3.msra.mxu1 %v12361_v61  ;;  %v13692_v61 = vand.u32 4294901760, %v12542_v9 }
 0x37e   :  { %10256 = vmatprep.subr.mxu1 %v12391_v35  ;;  %10147 = vmatmul.mubr.f32.gmra.mxu0 %v12577_v7 }
 0x37f   :  { %10184 = vmatmul.mubr.f32.gmra.mxu1 %v13690_v26  ;;  %10149 = vmatprep.mubr.f32.mxu0 %v12591_v32 }
 0x380   :  { %10257 = vmatpush3.msra.mxu1 %v12391_v35  ;;  %10186 = vmatprep.mubr.f32.mxu1 %v13691_v43  ;;  %v13694_v35 = vand.u32 4294901760, %v12577_v7 }
 0x381   :  { %10258 = vmatprep.subr.mxu1 %v12414_v44 }
 0x382   :  { %10259 = vmatpush3.msra.mxu1 %v12414_v44  ;;  %10150 = vmatmul.mubr.f32.gmra.mxu0 %v12607_v51  ;;  %v13696_v44 = vand.u32 4294901760, %v12607_v51 }
 0x383   :  { %10187 = vmatmul.mubr.f32.gmra.mxu1 %v13692_v61  ;;  %10152 = vmatprep.mubr.f32.mxu0 %v12622_v22 }
 0x384   :  { %10189 = vmatprep.mubr.f32.mxu1 %v13693_v20 }
 0x386   :  { %10153 = vmatmul.mubr.f32.gmra.mxu0 %v12633_v2 }
 0x387   :  { %10190 = vmatmul.mubr.f32.gmra.mxu1 %v13694_v35  ;;  %10155 = vmatprep.mubr.f32.mxu0 %v12640_v40 }
 0x388   :  { %10192 = vmatprep.mubr.f32.mxu1 %v13695_v13 }
 0x38a   :  { %10156 = vmatmul.mubr.f32.gmra.mxu0 %v12655_v59  ;;  %v8524_v59 = vld [vmem:[%s13358_s4 + $0x18] sm:$0xff] }
 0x38b   :  { %10193 = vmatmul.mubr.f32.gmra.mxu1 %v13696_v44  ;;  %10217 = vmatprep.mubr.f32.mxu0 %v13697_v39  ;;  %v12816_v22 = vand.u32 4294901760, %v8524_v59 }
 0x38c   :  { %10195 = vmatprep.mubr.f32.mxu1 %v5279_v46 }
 0x38d   :  { %13699 = vst [vmem:[#allocation23_spill] sm:$0xff] %v12816_v22  ;;  %10287 = vmatprep.subr.mxu0 %v12816_v22 }
 0x38e   :  { %10218 = vmatmul.mubr.f32.vlgmr.msra.gmra.mxu0 %v12321_v6 }
 0x38f   :  { %10196 = vmatmul.mubr.f32.gmra.mxu1 %v5289_v55  ;;  %10220 = vmatprep.mubr.f32.mxu0 %v12358_v14 }
 0x390   :  { %10198 = vmatprep.mubr.f32.mxu1 %v13698_v54  ;;  %10288 = vmatpush3.msra.mxu0 %v12816_v22 }
 0x392   :  { %10221 = vmatmul.mubr.f32.gmra.mxu0 %v12375_v1 }
 0x393   :  { %10199 = vmatmul.mubr.f32.gmra.mxu1 %v5309_v42  ;;  %10223 = vmatprep.mubr.f32.mxu0 %v12397_v52 }
 0x394   :  { %10260 = vmatprep.mubr.f32.mxu1 %v13697_v39 }
 0x396   :  { %10224 = vmatmul.mubr.f32.gmra.mxu0 %v12423_v0 }
 0x397   :  { %10261 = vmatmul.mubr.f32.vlgmr.msra.gmra.mxu1 %v12321_v6  ;;  %10226 = vmatprep.mubr.f32.mxu0 %v12466_v30  ;;  %v12820_v6 = vsub.f32 %v8524_v59, %v12816_v22 }
 0x398   :  { %10263 = vmatprep.mubr.f32.mxu1 %v12358_v14  ;;  %v8523_v14 = vld [vmem:[%s13358_s4 + $0x10] sm:$0xff] }
 0x399   :  { %13700 = vst [vmem:[#allocation28_spill] sm:$0xff] %v12820_v6 }
 0x39a   :  { %10227 = vmatmul.mubr.f32.gmra.mxu0 %v12475_v62 }
 0x39b   :  { %10264 = vmatmul.mubr.f32.gmra.mxu1 %v12375_v1  ;;  %10229 = vmatprep.mubr.f32.mxu0 %v12507_v19  ;;  %v12829_v1 = vand.u32 4294901760, %v12820_v6 }
 0x39c   :  { %10266 = vmatprep.mubr.f32.mxu1 %v12397_v52 }
 0x39d   :  { %13702 = vst [vmem:[#allocation35_spill] sm:$0xff] %v12829_v1 }
 0x39e   :  { %10230 = vmatmul.mubr.f32.gmra.mxu0 %v12518_v49 }
 0x39f   :  { %10267 = vmatmul.mubr.f32.gmra.mxu1 %v12423_v0  ;;  %10232 = vmatprep.mubr.f32.mxu0 %v12536_v47  ;;  %v6532_v0 = vsub.f32 %v12820_v6, %v12829_v1  ;;  %v13721_v1 = vld [vmem:[#allocation57_spill] sm:$0xff] }
 0x3a0   :  { %10269 = vmatprep.mubr.f32.mxu1 %v12466_v30 }
 0x3a1   :  { %v6533_v8 = vand.u32 4294901760, %v6532_v0 }
 0x3a2   :  { %10233 = vmatmul.mubr.f32.gmra.mxu0 %v12549_v38 }
 0x3a3   :  { %10270 = vmatmul.mubr.f32.gmra.mxu1 %v12475_v62  ;;  %10235 = vmatprep.mubr.f32.mxu0 %v12564_v29 }
 0x3a4   :  { %10272 = vmatprep.mubr.f32.mxu1 %v12507_v19  ;;  %10294 = vmatprep.subr.mxu1 %v6533_v8 }
 0x3a5   :  { %10295 = vmatpush3.msra.mxu1 %v6533_v8 }
 0x3a6   :  { %10236 = vmatmul.mubr.f32.gmra.mxu0 %v12579_v50 }
 0x3a7   :  { %10273 = vmatmul.mubr.f32.gmra.mxu1 %v12518_v49  ;;  %10238 = vmatprep.mubr.f32.mxu0 %v12593_v10 }
 0x3a8   :  { %10275 = vmatprep.mubr.f32.mxu1 %v12536_v47  ;;  %v12826_v47 = vand.u32 4294901760, %v8523_v14 }
 0x3aa   :  { %10239 = vmatmul.mubr.f32.gmra.mxu0 %v12609_v5  ;;  %13701 = vst [vmem:[#allocation33_spill] sm:$0xff] %v12826_v47  ;;  %10289 = vmatprep.subr.mxu0 %v12826_v47  ;;  %v12833_v52 = vsub.f32 %v8523_v14, %v12826_v47 }
 0x3ab   :  { %10276 = vmatmul.mubr.f32.gmra.mxu1 %v12549_v38  ;;  %10241 = vmatprep.mubr.f32.mxu0 %v12613_v63 }
 0x3ac   :  { %10278 = vmatprep.mubr.f32.mxu1 %v12564_v29  ;;  %13703 = vst [vmem:[#allocation30_spill] sm:$0xff] %v12833_v52  ;;  %10290 = vmatpush3.msra.mxu0 %v12826_v47  ;;  %v12839_v25 = vand.u32 4294901760, %v12833_v52 }
 0x3ad   :  { %10301 = vmatprep.subr.mxu0 %v12820_v6 }
 0x3ae   :  { %10242 = vmatmul.mubr.f32.gmra.mxu0 %v12635_v3  ;;  %13704 = vst [vmem:[#allocation27_spill] sm:$0xff] %v12839_v25  ;;  %v6539_v49 = vsub.f32 %v12833_v52, %v12839_v25  ;;  %v13720_v25 = vld [vmem:[#allocation40_spill] sm:$0xff] }
 0x3af   :  { %10279 = vmatmul.mubr.f32.gmra.mxu1 %v12579_v50  ;;  %v2634_v52 = vadd.f32 %v13721_v1, %v13720_v25  ;;  %v13731_v1 = vld [vmem:[#allocation58_spill] sm:$0xff] }
 0x3b0   :  { %10281 = vmatprep.mubr.f32.mxu1 %v12593_v10  ;;  %v6540_v37 = vand.u32 4294901760, %v6539_v49 }
 0x3b2   :  { %10296 = vmatprep.subr.mxu1 %v6540_v37 }
 0x3b3   :  { %10282 = vmatmul.mubr.f32.gmra.mxu1 %v12609_v5 }
 0x3b4   :  { %10284 = vmatprep.mubr.f32.mxu1 %v12613_v63  ;;  %10297 = vmatpush3.msra.mxu1 %v6540_v37 }
 0x3b5   :  { %10308 = vmatprep.subr.mxu1 %v12816_v22  ;;  %v13725_v22 = vld [vmem:[#allocation46_spill] sm:$0xff] }
 0x3b7   :  { %10285 = vmatmul.mubr.f32.gmra.mxu1 %v12635_v3 }
 0x3fc   :  { %v10047_v30 = vpop.f32.mrf.mxu0 }
 0x3fe   :  { %v5143_v41 = vpop.f32.mrf.mxu0 }
 0x401   :  { %v10050_v62 = vpop.f32.mrf.mxu0 }
 0x403   :  { %v5163_v31 = vpop.f32.mrf.mxu0 }
 0x406   :  { %v10053_v58 = vpop.f32.mrf.mxu0  ;;  %v10090_v17 = vpop.f32.mrf.mxu1 }
 0x407   :  { %v5431_v19 = vadd.f32 %v10090_v17, %v10047_v30 }
 0x408   :  { %v5183_v27 = vpop.f32.mrf.mxu0  ;;  %v5424_v9 = vpop.f32.mrf.mxu1 }
 0x409   :  { %v12845_v38 = vadd.f32 %v5424_v9, %v5143_v41 }
 0x40c   :  { %v10056_v50 = vpop.f32.mrf.mxu0  ;;  %v10093_v33 = vpop.f32.mrf.mxu1 }
 0x40d   :  { %v12847_v29 = vadd.f32 %v10093_v33, %v10050_v62 }
 0x40e   :  { %v5203_v7 = vpop.f32.mrf.mxu0  ;;  %v5436_v63 = vpop.f32.mrf.mxu1 }
 0x40f   :  { %v12849_v32 = vadd.f32 %v5436_v63, %v5163_v31 }
 0x412   :  { %v10059_v10 = vpop.f32.mrf.mxu0  ;;  %v10096_v51 = vpop.f32.mrf.mxu1 }
 0x413   :  { %v12851_v5 = vadd.f32 %v10096_v51, %v10053_v58 }
 0x414   :  { %v5223_v42 = vpop.f32.mrf.mxu0  ;;  %v5448_v2 = vpop.f32.mrf.mxu1 }
 0x415   :  { %v12853_v3 = vadd.f32 %v5448_v2, %v5183_v27 }
 0x416   :  { %v10062_v40 = vpop.f32.mrf.mxu0 }
 0x417   :  { %v10099_v46 = vpop.f32.mrf.mxu1 }
 0x418   :  { %v12855_v55 = vadd.f32 %v10099_v46, %v10056_v50  ;;  %v5243_v28 = vpop.f32.mrf.mxu0 }
 0x419   :  { %v5460_v36 = vpop.f32.mrf.mxu1 }
 0x41a   :  { %v12857_v24 = vadd.f32 %v5460_v36, %v5203_v7  ;;  %v10065_v56 = vpop.f32.mrf.mxu0 }
 0x41b   :  { %v10102_v12 = vpop.f32.mrf.mxu1 }
 0x41c   :  { %v12859_v57 = vadd.f32 %v10102_v12, %v10059_v10  ;;  %v5263_v16 = vpop.f32.mrf.mxu0 }
 0x41d   :  { %v5472_v34 = vpop.f32.mrf.mxu1 }
 0x41e   :  { %v12861_v53 = vadd.f32 %v5472_v34, %v5223_v42  ;;  %v10068_v15 = vpop.f32.mrf.mxu0 }
 0x41f   :  { %v10105_v11 = vpop.f32.mrf.mxu1 }
 0x420   :  { %v12863_v4 = vadd.f32 %v10105_v11, %v10062_v40  ;;  %v5283_v45 = vpop.f32.mrf.mxu0 }
 0x421   :  { %v5484_v48 = vpop.f32.mrf.mxu1 }
 0x422   :  { %v12865_v18 = vadd.f32 %v5484_v48, %v5243_v28  ;;  %v10071_v60 = vpop.f32.mrf.mxu0  ;;  %v13713_v48 = vld [vmem:[#allocation48_spill] sm:$0xff] }
 0x423   :  { %v10108_v26 = vpop.f32.mrf.mxu1 }
 0x424   :  { %v12867_v43 = vadd.f32 %v10108_v26, %v10065_v56  ;;  %v5303_v61 = vpop.f32.mrf.mxu0 }
 0x425   :  { %v5496_v20 = vpop.f32.mrf.mxu1 }
 0x426   :  { %v12869_v35 = vadd.f32 %v5496_v20, %v5263_v16  ;;  %v10133_v13 = vpop.f32.mrf.mxu0  ;;  %v13715_v20 = vld [vmem:[#allocation43_spill] sm:$0xff] }
 0x427   :  { %v10111_v44 = vpop.f32.mrf.mxu1  ;;  %v5622_v39 = vadd.f32 %v10133_v13, %v5431_v19  ;;  %v13716_v13 = vld [vmem:[#allocation60_spill] sm:$0xff] }
 0x428   :  { %v12871_v54 = vadd.f32 %v10111_v44, %v10068_v15  ;;  %v12873_v59 = vpop.f32.mrf.mxu0  ;;  %v2231_v44 = vadd.f32 %v13716_v13, %v13715_v20 }
 0x429   :  { %v5508_v14 = vpop.f32.mrf.mxu1 }
 0x42a   :  { %13705 = vst [vmem:[#allocation65_spill] sm:$0xff] %v12871_v54  ;;  %v12875_v0 = vadd.f32 %v5508_v14, %v5283_v45  ;;  %v12877_v8 = vpop.f32.mrf.mxu0  ;;  %v13712_v45 = vld [vmem:[#allocation42_spill] sm:$0xff]  ;;  %v13718_v14 = vld [vmem:[#allocation41_spill] sm:$0xff] }
 0x42b   :  { %v10114_v49 = vpop.f32.mrf.mxu1 }
 0x42c   :  { %13706 = vst [vmem:[#allocation66_spill] sm:$0xff] %v12875_v0  ;;  %v12879_v37 = vadd.f32 %v10114_v49, %v10071_v60  ;;  %v12881_v30 = vpop.f32.mrf.mxu0  ;;  %v2217_v60 = vadd.f32 %v13713_v48, %v13712_v45  ;;  %v13724_v45 = vld [vmem:[#allocation61_spill] sm:$0xff] }
 0x42d   :  { %v5520_v41 = vpop.f32.mrf.mxu1  ;;  %v2435_v48 = vadd.f32 %v13724_v45, %v2231_v44  ;;  %v13734_v45 = vld [vmem:[#allocation59_spill] sm:$0xff] }
 0x42e   :  { %13707 = vst [vmem:[#allocation67_spill] sm:$0xff] %v12879_v37  ;;  %v12883_v62 = vadd.f32 %v5520_v41, %v5303_v61  ;;  %v12885_v31 = vpop.f32.mrf.mxu0  ;;  %v13719_v41 = vld [vmem:[#allocation49_spill] sm:$0xff] }
 0x42f   :  { %v10176_v58 = vpop.f32.mrf.mxu1 }
 0x430   :  { %13708 = vst [vmem:[#allocation68_spill] sm:$0xff] %v12883_v62  ;;  %v12887_v17 = vadd.f32 %v10176_v58, %v5622_v39  ;;  %v12889_v19 = vpop.f32.mrf.mxu0  ;;  %v13717_v39 = vld [vmem:[#allocation50_spill] sm:$0xff]  ;;  %v2419_v58 = vadd.f32 %v13719_v41, %v2217_v60  ;;  %v13730_v41 = vld [vmem:[#allocation47_spill] sm:$0xff] }
 0x431   :  { %v5814_v27 = vpop.f32.mrf.mxu1  ;;  %v2245_v49 = vadd.f32 %v13718_v14, %v13717_v39  ;;  %v13729_v14 = vld [vmem:[#allocation39_spill] sm:$0xff] }
 0x432   :  { %v2658_v60 = vadd.f32 %v13729_v14, %v2435_v48  ;;  %v13739_v14 = vld [vmem:[#allocation62_spill] sm:$0xff] }
 0x433   :  { %v2451_v62 = vadd.f32 %v13725_v22, %v2245_v49  ;;  %v13735_v49 = vld [vmem:[#allocation54_spill] sm:$0xff] }
 0x434   :  { %v12891_v9 = vpop.f32.mrf.mxu0  ;;  %v2839_v22 = vadd.f32 %v13734_v45, %v2658_v60 }
 0x435   :  { %v12893_v50 = vpop.f32.mrf.mxu1  ;;  %v2670_v0 = vadd.f32 %v13730_v41, %v2451_v62  ;;  %v13740_v41 = vld [vmem:[#allocation56_spill] sm:$0xff] }
 0x436   :  { %v12895_v33 = vpop.f32.mrf.mxu0  ;;  %v3094_v62 = vadd.f32 %v13739_v14, %v2839_v22 }
 0x437   :  { %v12897_v7 = vpop.f32.mrf.mxu1 }
 0x43a   :  { %v12899_v63 = vpop.f32.mrf.mxu0  ;;  %v12901_v10 = vpop.f32.mrf.mxu1 }
 0x43c   :  { %v12903_v51 = vpop.f32.mrf.mxu0  ;;  %v12905_v42 = vpop.f32.mrf.mxu1 }
 0x43e   :  { %v12907_v2 = vpop.f32.mrf.mxu0 }
 0x43f   :  { %v12909_v40 = vpop.f32.mrf.mxu1 }
 0x440   :  { %v12911_v46 = vpop.f32.mrf.mxu0 }
 0x441   :  { %v12913_v28 = vpop.f32.mrf.mxu1 }
 0x442   :  { %v12915_v36 = vpop.f32.mrf.mxu0 }
 0x443   :  { %v12917_v56 = vpop.f32.mrf.mxu1 }
 0x444   :  { %v12919_v12 = vpop.f32.mrf.mxu0 }
 0x445   :  { %13709 = vst [vmem:[#allocation69_spill] sm:$0xff] %v12919_v12  ;;  %v12921_v16 = vpop.f32.mrf.mxu1 }
 0x446   :  { %v12923_v34 = vpop.f32.mrf.mxu0 }
 0x447   :  { %13710 = vst [vmem:[#allocation70_spill] sm:$0xff] %v12923_v34  ;;  %v12925_v15 = vpop.f32.mrf.mxu1  ;;  %v13732_v34 = vld [vmem:[#allocation37_spill] sm:$0xff] }
 0x448   :  { %v12927_v11 = vpop.f32.mrf.mxu0 }
 0x449   :  { %13711 = vst [vmem:[#allocation71_spill] sm:$0xff] %v12927_v11  ;;  %v12931_v26 = vpop.f32.mrf.mxu1  ;;  %v13727_v11 = vld [vmem:[#allocation44_spill] sm:$0xff] }
 0x44a   :  { %v12933_v61 = vpop.f32.mrf.mxu0  ;;  %v2815_v20 = vadd.f32 %v13727_v11, %v2634_v52  ;;  %v13737_v11 = vld [vmem:[#allocation51_spill] sm:$0xff] }
 0x44b   :  { %13714 = vst [vmem:[#allocation42_spill] sm:$0xff] %v12933_v61  ;;  %v12942_v6 = vpop.f32.mrf.mxu1  ;;  %v13726_v61 = vld [vmem:[#allocation38_spill] sm:$0xff] }
 0x44c   :  { %13722 = vst [vmem:[#allocation48_spill] sm:$0xff] %v12942_v6  ;;  %v12944_v47 = vpop.f32.mrf.mxu0  ;;  %v2646_v37 = vadd.f32 %v13726_v61, %v2419_v58  ;;  %v3054_v54 = vadd.f32 %v13732_v34, %v2815_v20  ;;  %v2851_v61 = vadd.f32 %v13735_v49, %v2670_v0  ;;  %v13736_v58 = vld [vmem:[#allocation45_spill] sm:$0xff]  ;;  %v13742_v20 = vld [vmem:[#allocation64_spill] sm:$0xff]  ;;  %v5615_v0 = vadd.f32 %v12873_v59, %v12845_v38  ;;  %v13748_v59 = vld [vmem:[#allocation31_spill] sm:$0xff] }
 0x44d   :  { %13723 = vst [vmem:[#allocation43_spill] sm:$0xff] %v12944_v47  ;;  %v12950_v13 = vpop.f32.mrf.mxu1 }
 0x44e   :  { %13728 = vst [vmem:[#allocation60_spill] sm:$0xff] %v12950_v13  ;;  %v10219_v39 = vpop.f32.mrf.mxu0  ;;  %v2827_v25 = vadd.f32 %v13731_v1, %v2646_v37  ;;  %v3335_v13 = vadd.f32 %v13737_v11, %v3054_v54  ;;  %v3114_v37 = vadd.f32 %v13740_v41, %v2851_v61  ;;  %v13741_v1 = vld [vmem:[#allocation55_spill] sm:$0xff]  ;;  %v13744_v54 = vld [vmem:[#allocation52_spill] sm:$0xff]  ;;  %v5636_v61 = vadd.f32 %v12877_v8, %v12847_v29 }
 0x44f   :  { %v12956_v47 = vpop.f32.mrf.mxu1 }
 0x450   :  { %13733 = vst [vmem:[#allocation50_spill] sm:$0xff] %v12956_v47  ;;  %v6045_v44 = vpop.f32.mrf.mxu0  ;;  %v3074_v52 = vadd.f32 %v13736_v58, %v2827_v25  ;;  %v3525_v47 = vadd.f32 %v13742_v20, %v3335_v13  ;;  %v13743_v25 = vld [vmem:[#allocation63_spill] sm:$0xff]  ;;  %v3371_v49 = vadd.f32 %v13744_v54, %v3114_v37  ;;  %v13745_v58 = vld [vmem:[#allocation53_spill] sm:$0xff]  ;;  %v5815_v13 = vadd.f32 %v5814_v27, %v5615_v0  ;;  %v13751_v27 = vld [vmem:[#allocation34_spill] sm:$0xff] }
 0x451   :  { %v12962_v6 = vpop.f32.mrf.mxu1  ;;  %v3359_v45 = vadd.f32 %v13743_v25, %v3094_v62  ;;  %v13749_v62 = vld [vmem:[#allocation5_spill] sm:$0xff]  ;;  %v13750_v37 = vld [vmem:[#allocation7_spill] sm:$0xff] }
 0x452   :  { %13738 = vst [vmem:[#allocation41_spill] sm:$0xff] %v12962_v6  ;;  %v10222_v48 = vpop.f32.mrf.mxu0  ;;  %v3347_v34 = vadd.f32 %v13741_v1, %v3074_v52  ;;  %v13746_v6 = vld [vmem:[#allocation25_spill] sm:$0xff]  ;;  %v6052_v52 = vadd.f32 %v10219_v39, %v12887_v17  ;;  %v13747_v1 = vld [vmem:[#allocation24_spill] sm:$0xff]  ;;  %v3567_v20 = vadd.f32 %v13748_v59, %v3371_v49  ;;  %v13752_v39 = vld [vmem:[#allocation6_spill] sm:$0xff]  ;;  %v5650_v49 = vadd.f32 %v12885_v31, %v12851_v5 }
 0x453   :  { %v12968_v12 = vpop.f32.mrf.mxu1  ;;  %v3725_v22 = vadd.f32 %v13746_v6, %v3525_v47  ;;  %v3553_v38 = vadd.f32 %v13747_v1, %v3359_v45  ;;  %v5629_v6 = vadd.f32 %v12881_v30, %v12849_v32  ;;  %v5839_v47 = vadd.f32 %v12893_v50, %v5636_v61  ;;  %v12998_v30 = vld [vmem:[%s13357_s3] ss:$0 sm:$0xff] }
 0x454   :  { %v6057_v60 = vpop.f32.mrf.mxu0  ;;  %v3539_v11 = vadd.f32 %v13745_v58, %v3347_v34  ;;  %v6046_v58 = vadd.f32 %v6045_v44, %v5815_v13  ;;  %v3773_v0 = vadd.f32 %v13752_v39, %v3567_v20  ;;  %v13753_v61 = vld [vmem:[#allocation36_spill] sm:$0xff]  ;;  %v5643_v5 = vadd.f32 %v12889_v19, %v12853_v3 }
 0x455   :  { %v12976_v14 = vpop.f32.mrf.mxu1  ;;  %v3956_v54 = vadd.f32 %v13750_v37, %v3725_v22  ;;  %v3757_v17 = vadd.f32 %v13751_v27, %v3553_v38  ;;  %v5831_v22 = vadd.f32 %v12897_v7, %v5629_v6  ;;  %v6064_v1 = vadd.f32 %v10222_v48, %v5839_v47  ;;  %v13755_v38 = vld [vmem:[#allocation11_spill] sm:$0xff]  ;;  %v13009_v37 = vld [vmem:[%s13358_s4 + $0x8] sm:$0xff] }
 0x456   :  { %v10225_v41 = vpop.f32.mrf.mxu0  ;;  %v3741_v25 = vadd.f32 %v13749_v62, %v3539_v11  ;;  %v3992_v59 = vadd.f32 %v13755_v38, %v3773_v0  ;;  %v5855_v7 = vadd.f32 %v12901_v10, %v5650_v49  ;;  %v13758_v47 = vld [vmem:[#allocation13_spill] sm:$0xff]  ;;  %v5847_v10 = vadd.f32 %v12905_v42, %v5643_v5 }
 0x457   :  { %v10262_v34 = vpop.f32.mrf.mxu1  ;;  %v4137_v45 = vadd.f32 %v12226_v23, %v3956_v54  ;;  %v5664_v0 = vadd.f32 %v12891_v9, %v12855_v55 }
 0x458   :  { %v6233_v29 = vadd.f32 %v10262_v34, %v6052_v52  ;;  %v6069_v8 = vpop.f32.mrf.mxu0  ;;  %v3968_v13 = vadd.f32 %v13753_v61, %v3741_v25  ;;  %v13754_v52 = vld [vmem:[#allocation8_spill] sm:$0xff]  ;;  %v13756_v25 = vld [vmem:[#allocation10_spill] sm:$0xff]  ;;  %v5678_v61 = vadd.f32 %v12899_v63, %v12859_v57 }
 0x459   :  { %v6226_v11 = vpop.f32.mrf.mxu1  ;;  %v3980_v23 = vadd.f32 %v13754_v52, %v3757_v17  ;;  %v13757_v34 = vld [vmem:[#allocation12_spill] sm:$0xff]  ;;  %v5871_v55 = vadd.f32 %v12909_v40, %v5664_v0 }
 0x45a   :  { %v6333_v32 = vadd.f32 %v6233_v29, %v12218_v21  ;;  %v6227_v50 = vadd.f32 %v6226_v11, %v6046_v58  ;;  %v10228_v44 = vpop.f32.mrf.mxu0  ;;  %v6058_v21 = vadd.f32 %v6057_v60, %v5831_v22  ;;  %v4149_v54 = vadd.f32 %v13756_v25, %v3968_v13  ;;  %v13759_v29 = vld [vmem:[#allocation9_spill] sm:$0xff] }
 0x45b   :  { %v10265_v31 = vpop.f32.mrf.mxu1  ;;  %v4161_v6 = vadd.f32 %v13757_v34, %v3980_v23  ;;  %v4173_v58 = vadd.f32 %v13758_v47, %v3992_v59  ;;  %v6076_v60 = vadd.f32 %v10225_v41, %v5855_v7  ;;  %v13023_v22 = vand.u32 4294901760, %v13009_v37  ;;  %v13760_v23 = vld [vmem:[#allocation14_spill] sm:$0xff] }
 0x45c   :  { %v6332_v48 = vadd.f32 %v6227_v50, %v4137_v45  ;;  %v6245_v20 = vadd.f32 %v10265_v31, %v6064_v1  ;;  %v6081_v62 = vpop.f32.mrf.mxu0  ;;  %v6358_v3 = vadd.f32 %v12998_v30, %v6333_v32  ;;  %v5657_v45 = vadd.f32 %v12895_v33, %v12857_v24 }
 0x45d   :  { %v6238_v19 = vpop.f32.mrf.mxu1  ;;  %v6070_v1 = vadd.f32 %v6069_v8, %v5847_v10  ;;  %v5887_v5 = vadd.f32 %v12917_v56, %v5678_v61  ;;  %v6088_v7 = vadd.f32 %v10228_v44, %v5871_v55  ;;  %v5671_v25 = vadd.f32 %v12903_v51, %v12861_v53  ;;  %v13761_v53 = vld [vmem:[#allocation22_spill] sm:$0xff] }
 0x45e   :  { %v6335_v27 = vadd.f32 %v6245_v20, %v13759_v29  ;;  %v6239_v17 = vadd.f32 %v6238_v19, %v6058_v21  ;;  %v10231_v39 = vpop.f32.mrf.mxu0  ;;  %v6357_v49 = vadd.f32 %v12998_v30, %v6332_v48  ;;  %v5863_v9 = vadd.f32 %v12913_v28, %v5657_v45 }
 0x45f   :  { %v10268_v11 = vpop.f32.mrf.mxu1  ;;  %v6376_v24 = vmax.f32 %v6358_v3, 0.0  ;;  %v6100_v34 = vadd.f32 %v10231_v39, %v5887_v5  ;;  %v5706_v45 = vadd.f32 %v12915_v36, %v12867_v43  ;;  %v13764_v43 = vld [vmem:[#allocation48_spill] sm:$0xff]  ;;  %v13061_v55 = vsub.f32 %v13009_v37, %v13023_v22  ;;  %v13767_v37 = vld [vmem:[#allocation15_spill] sm:$0xff] }
 0x460   :  { %v6360_v42 = vadd.f32 %v12998_v30, %v6335_v27  ;;  %v6334_v41 = vadd.f32 %v6239_v17, %v4149_v54  ;;  %v6257_v32 = vadd.f32 %v10268_v11, %v6076_v60  ;;  %v6093_v50 = vpop.f32.mrf.mxu0  ;;  %v6375_v31 = vmax.f32 %v6357_v49, 0.0 }
 0x461   :  { %v6250_v33 = vpop.f32.mrf.mxu1  ;;  %v6082_v21 = vadd.f32 %v6081_v62, %v5863_v9  ;;  %v5692_v54 = vadd.f32 %v12907_v2, %v12863_v4  ;;  %v5685_v60 = vadd.f32 %v12911_v46, %v12865_v18  ;;  %v6397_v46 = vld [vmem:[%s13358_s4] sm:$0xff]  ;;  %v5919_v36 = vadd.f32 %v13764_v43, %v5706_v45 }
 0x462   :  { %v6378_v13 = vmax.f32 %v6360_v42, 0.0  ;;  %v6359_v52 = vadd.f32 %v12998_v30, %v6334_v41  ;;  %v6337_v38 = vadd.f32 %v6257_v32, %v13760_v23  ;;  %v6251_v8 = vadd.f32 %v6250_v33, %v6070_v1  ;;  %v10234_v59 = vpop.f32.mrf.mxu0  ;;  %v13762_v42 = vld [vmem:[#allocation29_spill] sm:$0xff] }
 0x463   :  { %v10271_v48 = vpop.f32.mrf.mxu1  ;;  %v5903_v29 = vadd.f32 %v12925_v15, %v5692_v54  ;;  %v5895_v49 = vadd.f32 %v12931_v26, %v5685_v60  ;;  %v13763_v32 = vld [vmem:[#allocation69_spill] sm:$0xff]  ;;  %v13773_v60 = vld [vmem:[#allocation67_spill] sm:$0xff] }
 0x464   :  { %v6394_v57 = vmax.f32 %v6376_v24, %v6378_v13  ;;  %v6377_v63 = vmax.f32 %v6359_v52, 0.0  ;;  %v6362_v40 = vadd.f32 %v12998_v30, %v6337_v38  ;;  %v6336_v28 = vadd.f32 %v6251_v8, %v4161_v6  ;;  %v6105_v20 = vpop.f32.mrf.mxu0  ;;  %v13765_v52 = vld [vmem:[#allocation60_spill] sm:$0xff]  ;;  %v13766_v8 = vld [vmem:[#allocation17_spill] sm:$0xff] }
 0x465   :  { %v6269_v47 = vadd.f32 %v10271_v48, %v6088_v7  ;;  %v6262_v3 = vpop.f32.mrf.mxu1  ;;  %v5879_v6 = vadd.f32 %v12921_v16, %v5671_v25  ;;  %v6112_v15 = vadd.f32 %v10234_v59, %v5903_v29  ;;  %v5699_v61 = vadd.f32 %v13763_v32, %v12869_v35  ;;  %v13771_v25 = vld [vmem:[#allocation71_spill] sm:$0xff] }
 0x466   :  { %v6393_v56 = vmax.f32 %v6375_v31, %v6377_v63  ;;  %v6380_v19 = vmax.f32 %v6362_v40, 0.0  ;;  %v6361_v44 = vadd.f32 %v12998_v30, %v6336_v28  ;;  %v6263_v62 = vadd.f32 %v6262_v3, %v6082_v21  ;;  %v10237_v10 = vpop.f32.mrf.mxu0  ;;  %v13768_v63 = vld [vmem:[#allocation65_spill] sm:$0xff]  ;;  %v13769_v40 = vld [vmem:[#allocation70_spill] sm:$0xff] }
 0x467   :  { %v6339_v51 = vadd.f32 %v6269_v47, %v13761_v53  ;;  %v10274_v27 = vpop.f32.mrf.mxu1  ;;  %v6094_v11 = vadd.f32 %v6093_v50, %v5879_v6  ;;  %v6106_v9 = vadd.f32 %v6105_v20, %v5895_v49  ;;  %v13064_v13 = vand.u32 4294901760, %v6397_v46  ;;  %v13770_v20 = vld [vmem:[#allocation66_spill] sm:$0xff]  ;;  %v13776_v49 = vld [vmem:[#allocation16_spill] sm:$0xff] }
 0x468   :  { %v13044_v4 = vmax.f32 %v6394_v57, %v6380_v19  ;;  %v6379_v2 = vmax.f32 %v6361_v44, 0.0  ;;  %v6338_v17 = vadd.f32 %v6263_v62, %v4173_v58  ;;  %v6281_v39 = vadd.f32 %v10274_v27, %v6100_v34  ;;  %v6117_v0 = vpop.f32.mrf.mxu0  ;;  %v13772_v44 = vld [vmem:[#allocation20_spill] sm:$0xff]  ;;  %v13774_v6 = vld [vmem:[#allocation42_spill] sm:$0xff] }
 0x469   :  { %v6274_v18 = vpop.f32.mrf.mxu1  ;;  %v6364_v1 = vadd.f32 %v12998_v30, %v6339_v51  ;;  %v5911_v23 = vadd.f32 %v13765_v52, %v5699_v61  ;;  %v6124_v35 = vadd.f32 %v10237_v10, %v5919_v36  ;;  %v5720_v28 = vadd.f32 %v13769_v40, %v13768_v63  ;;  %v13775_v53 = vld [vmem:[#allocation50_spill] sm:$0xff] }
 0x46a   :  { %v13052_v16 = vmax.f32 %v6393_v56, %v6379_v2  ;;  %v6341_v58 = vadd.f32 %v6281_v39, %v13762_v42  ;;  %v10240_v41 = vpop.f32.mrf.mxu0  ;;  %v6275_v26 = vadd.f32 %v6274_v18, %v6094_v11  ;;  %v6363_v38 = vadd.f32 %v12998_v30, %v6338_v17 }
 0x46b   :  { %v10277_v50 = vpop.f32.mrf.mxu1  ;;  %v6382_v7 = vmax.f32 %v6364_v1, 0.0  ;;  %v5713_v54 = vadd.f32 %v13771_v25, %v13770_v20  ;;  %v6118_v34 = vadd.f32 %v6117_v0, %v5911_v23  ;;  %v5734_v29 = vadd.f32 %v13774_v6, %v13773_v60  ;;  %v13778_v1 = vld [vmem:[#allocation43_spill] sm:$0xff] }
 0x46c   :  { %v6366_v24 = vadd.f32 %v12998_v30, %v6341_v58  ;;  %v6293_v33 = vadd.f32 %v10277_v50, %v6112_v15  ;;  %v6340_v59 = vadd.f32 %v6275_v26, %v13766_v8  ;;  %v6129_v5 = vpop.f32.mrf.mxu0  ;;  %v5935_v51 = vadd.f32 %v13775_v53, %v5720_v28  ;;  %v13777_v15 = vld [vmem:[#allocation68_spill] sm:$0xff]  ;;  %v13779_v58 = vld [vmem:[#allocation41_spill] sm:$0xff] }
 0x46d   :  { %v6286_v31 = vpop.f32.mrf.mxu1  ;;  %v6381_v27 = vmax.f32 %v6363_v38, 0.0  ;;  %v5727_v42 = vadd.f32 %v13778_v1, %v13777_v15  ;;  %v5927_v32 = vadd.f32 %v13779_v58, %v5713_v54  ;;  %v5951_v26 = vadd.f32 %v12968_v12, %v5734_v29  ;;  %v13782_v54 = vld [vmem:[#allocation32_spill] sm:$0xff] }
 0x46e   :  { %v6384_v21 = vmax.f32 %v6366_v24, 0.0  ;;  %v6343_v48 = vadd.f32 %v6293_v33, %v13767_v37  ;;  %v6287_v57 = vadd.f32 %v6286_v31, %v6106_v9  ;;  %v6365_v47 = vadd.f32 %v12998_v30, %v6340_v59  ;;  %v10243_v17 = vpop.f32.mrf.mxu0  ;;  %v13780_v24 = vld [vmem:[#allocation26_spill] sm:$0xff] }
 0x46f   :  { %v10280_v3 = vpop.f32.mrf.mxu1  ;;  %v6136_v43 = vadd.f32 %v10240_v41, %v5935_v51  ;;  %v5943_v52 = vadd.f32 %v12976_v14, %v5727_v42  ;;  %v6130_v23 = vadd.f32 %v6129_v5, %v5927_v32  ;;  %v13089_v59 = vsub.f32 %v6397_v46, %v13064_v13  ;;  %v13781_v37 = vld [vmem:[#allocation18_spill] sm:$0xff]  ;;  %v13786_v42 = vld [vmem:[#allocation33_spill] sm:$0xff] }
 0x470   :  { %v6400_v56 = vmax.f32 %v6382_v7, %v6384_v21  ;;  %v6368_v19 = vadd.f32 %v12998_v30, %v6343_v48  ;;  %v6342_v62 = vadd.f32 %v6287_v57, %v13772_v44  ;;  %v6305_v10 = vadd.f32 %v10280_v3, %v6124_v35  ;;  %v6141_v38 = vpop.f32.mrf.mxu0 }
 0x471   :  { %v6383_v2 = vmax.f32 %v6365_v47, 0.0  ;;  %v6298_v39 = vpop.f32.mrf.mxu1  ;;  %v6148_v41 = vadd.f32 %v10243_v17, %v5951_v26  ;;  %v13097_v14 = vand.u32 4294901760, %v13061_v55  ;;  %v6142_v5 = vadd.f32 %v6141_v38, %v5943_v52  ;;  %v8525_v38 = vld [vmem:[%s13358_s4 + $0x20] sm:$0xff] }
 0x472   :  { %v6386_v45 = vmax.f32 %v6368_v19, 0.0  ;;  %v6367_v0 = vadd.f32 %v12998_v30, %v6342_v62  ;;  %v6345_v11 = vadd.f32 %v6305_v10, %v13776_v49  ;;  %v6299_v18 = vadd.f32 %v6298_v39, %v6118_v34  ;;  %v13783_v19 = vld [vmem:[#allocation19_spill] sm:$0xff] }
 0x473   :  { %v6399_v61 = vmax.f32 %v6381_v27, %v6383_v2  ;;  %v10283_v36 = vpop.f32.mrf.mxu1  ;;  %v13110_v10 = vand.u32 4294901760, %v13089_v59  ;;  %v13784_v27 = vld [vmem:[#allocation21_spill] sm:$0xff]  ;;  %v7040_v17 = vsub.f32 %v13061_v55, %v13097_v14  ;;  %v6916_v39 = vsel %vm6406_vm2, %v13052_v16, 0 }
 0x474   :  { %v6402_v50 = vmax.f32 %v6400_v56, %v6386_v45  ;;  %v6385_v9 = vmax.f32 %v6367_v0, 0.0  ;;  %v6344_v33 = vadd.f32 %v6299_v18, %v13780_v24  ;;  %v6317_v35 = vadd.f32 %v10283_v36, %v6136_v43 }
 0x475   :  { %v6310_v8 = vpop.f32.mrf.mxu1  ;;  %v6370_v21 = vadd.f32 %v12998_v30, %v6345_v11  ;;  %v13785_v11 = vld [vmem:[#allocation23_spill] sm:$0xff]  ;;  %v7047_v16 = vsub.f32 %v13089_v59, %v13110_v10  ;;  %v6919_v43 = vsel %vm6406_vm2, %v13044_v4, 0  ;;  %v7041_v24 = vand.u32 4294901760, %v7040_v17 }
 0x476   :  { %v6411_v31 = vsel %vm6406_vm2, %v6402_v50, 0  ;;  %v6401_v7 = vmax.f32 %v6399_v61, %v6385_v9  ;;  %v6347_v48 = vadd.f32 %v6317_v35, %v13781_v37  ;;  %v6311_v57 = vadd.f32 %v6310_v8, %v6130_v23  ;;  %v8526_v50 = vld [vmem:[%s13358_s4 + $0x28] sm:$0xff] }
 0x477   :  { %v13093_v12 = vand.u32 4294901760, %v6411_v31  ;;  %v10286_v63 = vpop.f32.mrf.mxu1  ;;  %v6369_v40 = vadd.f32 %v12998_v30, %v6344_v33  ;;  %v6388_v56 = vmax.f32 %v6370_v21, 0.0  ;;  %v13141_v4 = vand.u32 4294901760, %v6919_v43  ;;  %v13788_v21 = vld [vmem:[#allocation30_spill] sm:$0xff] }
 0x478   :  { %v6329_v46 = vadd.f32 %v10286_v63, %v6148_v41  ;;  %v6408_v28 = vsel %vm6406_vm2, %v6401_v7, 0  ;;  %v6372_v25 = vadd.f32 %v12998_v30, %v6347_v48  ;;  %v6346_v34 = vadd.f32 %v6311_v57, %v13782_v54  ;;  %v13789_v57 = vld [vmem:[#allocation35_spill] sm:$0xff] }
 0x479   :  { %v13102_v20 = vsub.f32 %v6411_v31, %v13093_v12  ;;  %v6322_v47 = vpop.f32.mrf.mxu1  ;;  %v13106_v3 = vand.u32 4294901760, %v6408_v28  ;;  %v6387_v45 = vmax.f32 %v6369_v40, 0.0  ;;  %v13144_v23 = vand.u32 4294901760, %v8526_v50  ;;  %v13787_v31 = vld [vmem:[#allocation28_spill] sm:$0xff] }
 0x47a   :  { %v6349_v44 = vadd.f32 %v6329_v46, %v13783_v19  ;;  %v6323_v62 = vadd.f32 %v6322_v47, %v6142_v5  ;;  %v6390_v60 = vmax.f32 %v6372_v25, 0.0  ;;  %v6371_v6 = vadd.f32 %v12998_v30, %v6346_v34 }
 0x47b   :  { %10298 = vmatprep.mubr.f32.mxu1 %v13106_v3  ;;  %v6481_v29 = vsub.f32 %v6408_v28, %v13106_v3  ;;  %v6492_v53 = vand.u32 4294901760, %v13102_v20  ;;  %v7048_v35 = vand.u32 4294901760, %v7047_v16  ;;  %v13152_v7 = vand.u32 4294901760, %v8525_v38  ;;  %v13790_v28 = vld [vmem:[#allocation27_spill] sm:$0xff] }
 0x47c   :  { %v6374_v51 = vadd.f32 %v12998_v30, %v6349_v44  ;;  %v6348_v2 = vadd.f32 %v6323_v62, %v13784_v27  ;;  %10299 = vmatmul.mubr.f32.vlgmr.msra.gmra.mxu1 %v13093_v12  ;;  %v7424_v0 = vmax.f32 %v6388_v56, %v6390_v60  ;;  %v6389_v49 = vmax.f32 %v6371_v6, 0.0  ;;  %v7968_v27 = vld [vmem:[%s13360_s6 + $0x10] sm:$0xff] }
 0x47d   :  { %10309 = vmatpush3.msra.mxu1 %v13785_v11  ;;  %v6482_v18 = vand.u32 4294901760, %v6481_v29  ;;  %v6493_v58 = vsub.f32 %v13102_v20, %v6492_v53  ;;  %v6999_v41 = vsub.f32 %v6919_v43, %v13141_v4  ;;  %v13158_v37 = vsub.f32 %v8526_v50, %v13144_v23 }
 0x47e   :  { %v6392_v15 = vmax.f32 %v6374_v51, 0.0  ;;  %v6373_v1 = vadd.f32 %v12998_v30, %v6348_v2  ;;  %10310 = vmatprep.subr.mxu1 %v13786_v42  ;;  %v7423_v32 = vmax.f32 %v6387_v45, %v6389_v49  ;;  %v13133_v30 = vand.u32 4294901760, %v6916_v39 }
 0x47f   :  { %10311 = vmatpush3.msra.mxu1 %v13786_v42  ;;  %10312 = vmatprep.mubr.f32.mxu1 %v6482_v18  ;;  %v6483_v61 = vsub.f32 %v6481_v29, %v6482_v18  ;;  %v6494_v52 = vand.u32 4294901760, %v6493_v58  ;;  %v13165_v63 = vsub.f32 %v8525_v38, %v13152_v7  ;;  %v7000_v5 = vand.u32 4294901760, %v6999_v41 }
 0x480   :  { %v7426_v36 = vmax.f32 %v7424_v0, %v6392_v15  ;;  %v6391_v26 = vmax.f32 %v6373_v1, 0.0  ;;  %10313 = vmatmul.mubr.f32.vlgmr.msra.gmra.mxu1 %v6492_v53  ;;  %10322 = vmatprep.subr.mxu1 %v13785_v11  ;;  %v6989_v8 = vsub.f32 %v6916_v39, %v13133_v30  ;;  %v13170_v40 = vand.u32 4294901760, %v13158_v37  ;;  %v7969_v53 = vld [vmem:[%s13360_s6 + $0x18] sm:$0xff]  ;;  %v7967_v39 = vld [vmem:[%s13360_s6 + $0x8] sm:$0xff] }
 0x481   :  { %10323 = vmatpush3.msra.mxu1 %v13785_v11  ;;  %10326 = vmatprep.mubr.f32.mxu1 %v13106_v3  ;;  %v6484_v9 = vand.u32 4294901760, %v6483_v61  ;;  %v7001_v25 = vsub.f32 %v6999_v41, %v7000_v5  ;;  %v13237_v51 = vand.u32 4294901760, %v7969_v53  ;;  %v13245_v17 = vand.u32 4294901760, %v7968_v27  ;;  %v7966_v11 = vld [vmem:[%s13360_s6] sm:$0xff] }
 0x482   :  { %v7425_v33 = vmax.f32 %v7423_v32, %v6391_v26  ;;  %10324 = vmatprep.subr.mxu1 %v13786_v42  ;;  %v6990_v48 = vand.u32 4294901760, %v6989_v8  ;;  %v7555_v54 = vsub.f32 %v13158_v37, %v13170_v40  ;;  %v13254_v49 = vand.u32 4294901760, %v7967_v39 }
 0x483   :  { %10291 = vmatprep.mubr.f32.mxu0 %v6484_v9  ;;  %10325 = vmatpush3.msra.mxu1 %v13786_v42  ;;  %v7002_v19 = vand.u32 4294901760, %v7001_v25  ;;  %v13243_v2 = vsub.f32 %v7969_v53, %v13237_v51  ;;  %v13252_v0 = vsub.f32 %v7968_v27, %v13245_v17  ;;  %v13266_v42 = vand.u32 4294901760, %v7966_v11 }
 0x484   :  { %10292 = vmatmul.mubr.f32.vlgmr.msra.gmra.mxu0 %v6494_v52  ;;  %10327 = vmatmul.mubr.f32.vlgmr.msra.gmra.mxu1 %v13093_v12  ;;  %v6991_v46 = vsub.f32 %v6989_v8, %v6990_v48  ;;  %v7431_v34 = vsel %vm6406_vm2, %v7425_v33, 0  ;;  %v7556_v44 = vand.u32 4294901760, %v7555_v54  ;;  %v13264_v1 = vsub.f32 %v7967_v39, %v13254_v49 }
 0x485   :  { %10336 = vmatprep.subr.mxu1 %v7041_v24  ;;  %10302 = vmatpush3.msra.mxu0 %v13787_v31  ;;  %v8089_v45 = vand.u32 4294901760, %v13243_v2  ;;  %v8096_v15 = vand.u32 4294901760, %v13252_v0  ;;  %v10504_v16 = vmov 0.0   ;;  %v13274_v43 = vsub.f32 %v7966_v11, %v13266_v42 }
 0x486   :  { %10305 = vmatprep.mubr.f32.mxu0 %v6481_v29  ;;  %10337 = vmatpush3.msra.mxu1 %v7041_v24  ;;  %v6992_v47 = vand.u32 4294901760, %v6991_v46  ;;  %v8103_v61 = vand.u32 4294901760, %v13264_v1 }
 0x487   :  { %10340 = vmatprep.mubr.f32.mxu1 %v13133_v30  ;;  %10303 = vmatprep.subr.mxu0 %v13788_v21  ;;  %v8090_v18 = vsub.f32 %v13243_v2, %v8089_v45  ;;  %v8097_v32 = vsub.f32 %v13252_v0, %v8096_v15 }
 0x488   :  { %10338 = vmatprep.subr.mxu1 %v7048_v35  ;;  %10304 = vmatpush3.msra.mxu0 %v13788_v21  ;;  %v8104_v26 = vsub.f32 %v13264_v1, %v8103_v61 }
 0x489   :  { %10339 = vmatpush3.msra.mxu1 %v7048_v35  ;;  %10306 = vmatmul.mubr.f32.vlgmr.msra.gmra.mxu0 %v13102_v20  ;;  %v13178_v20 = vand.u32 4294901760, %v13165_v63  ;;  %v8091_v58 = vand.u32 4294901760, %v8090_v18 }
 0x48a   :  { %10315 = vmatprep.subr.mxu0 %v13789_v57  ;;  %10341 = vmatmul.mubr.f32.vlgmr.msra.gmra.mxu1 %v13141_v4  ;;  %v8105_v50 = vand.u32 4294901760, %v8104_v26 }
 0x48b   :  { %10350 = vmatprep.subr.mxu1 %v13023_v22  ;;  %10316 = vmatpush3.msra.mxu0 %v13789_v57  ;;  %v7562_v56 = vsub.f32 %v13165_v63, %v13178_v20 }
 0x48c   :  { %10319 = vmatprep.mubr.f32.mxu0 %v13106_v3  ;;  %10351 = vmatpush3.msra.mxu1 %v13023_v22  ;;  %v7434_v3 = vsel %vm6406_vm2, %v7426_v36, 0  ;;  %v8098_v36 = vand.u32 4294901760, %v8097_v32 }
 0x48d   :  { %10354 = vmatprep.mubr.f32.mxu1 %v6990_v48  ;;  %10317 = vmatprep.subr.mxu0 %v13790_v28  ;;  %v7513_v62 = vand.u32 4294901760, %v7434_v3 }
 0x48e   :  { %10352 = vmatprep.subr.mxu1 %v13064_v13  ;;  %10318 = vmatpush3.msra.mxu0 %v13790_v28 }
 0x48f   :  { %10353 = vmatpush3.msra.mxu1 %v13064_v13  ;;  %10320 = vmatmul.mubr.f32.vlgmr.msra.gmra.mxu0 %v13093_v12  ;;  %v13190_v12 = vand.u32 4294901760, %v7431_v34  ;;  %v7514_v6 = vsub.f32 %v7434_v3, %v7513_v62 }
 0x490   :  { %10329 = vmatprep.subr.mxu0 %v13023_v22  ;;  %10355 = vmatmul.mubr.f32.vlgmr.msra.gmra.mxu1 %v7000_v5 }
 0x491   :  { %10364 = vmatprep.subr.mxu1 %v13023_v22  ;;  %10330 = vmatpush3.msra.mxu0 %v13023_v22  ;;  %v7504_v60 = vsub.f32 %v7431_v34, %v13190_v12 }
 0x492   :  { %10333 = vmatprep.mubr.f32.mxu0 %v6992_v47  ;;  %10365 = vmatpush3.msra.mxu1 %v13023_v22  ;;  %v7563_v22 = vand.u32 4294901760, %v7562_v56 }
 0x493   :  { %10368 = vmatprep.mubr.f32.mxu1 %v13133_v30  ;;  %10331 = vmatprep.subr.mxu0 %v13064_v13 }
 0x494   :  { %10366 = vmatprep.subr.mxu1 %v13064_v13  ;;  %10332 = vmatpush3.msra.mxu0 %v13064_v13 }
 0x495   :  { %10367 = vmatpush3.msra.mxu1 %v13064_v13  ;;  %10334 = vmatmul.mubr.f32.vlgmr.msra.gmra.mxu0 %v7002_v19  ;;  %v7505_v13 = vand.u32 4294901760, %v7504_v60 }
 0x496   :  { %10343 = vmatprep.subr.mxu0 %v13061_v55  ;;  %10369 = vmatmul.mubr.f32.vlgmr.msra.gmra.mxu1 %v13141_v4 }
 0x497   :  { %10378 = vmatprep.subr.mxu1 %v7556_v44  ;;  %10344 = vmatpush3.msra.mxu0 %v13061_v55  ;;  %v7515_v55 = vand.u32 4294901760, %v7514_v6  ;;  %v7506_v29 = vsub.f32 %v7504_v60, %v7505_v13 }
 0x498   :  { %10347 = vmatprep.mubr.f32.mxu0 %v6989_v8  ;;  %10379 = vmatpush3.msra.mxu1 %v7556_v44 }
 0x499   :  { %10382 = vmatprep.mubr.f32.mxu1 %v13190_v12  ;;  %10345 = vmatprep.subr.mxu0 %v13089_v59 }
 0x49a   :  { %10380 = vmatprep.subr.mxu1 %v7563_v22  ;;  %10346 = vmatpush3.msra.mxu0 %v13089_v59  ;;  %v7516_v59 = vsub.f32 %v7514_v6, %v7515_v55 }
 0x49b   :  { %10381 = vmatpush3.msra.mxu1 %v7563_v22  ;;  %10348 = vmatmul.mubr.f32.vlgmr.msra.gmra.mxu0 %v6999_v41 }
 0x49c   :  { %10357 = vmatprep.subr.mxu0 %v13097_v14  ;;  %10383 = vmatmul.mubr.f32.vlgmr.msra.gmra.mxu1 %v7513_v62 }
 0x49d   :  { %10392 = vmatprep.subr.mxu1 %v13144_v23  ;;  %10358 = vmatpush3.msra.mxu0 %v13097_v14  ;;  %v7507_v14 = vand.u32 4294901760, %v7506_v29 }
 0x49e   :  { %10361 = vmatprep.mubr.f32.mxu0 %v13133_v30  ;;  %10393 = vmatpush3.msra.mxu1 %v13144_v23  ;;  %v8110_v30 = vand.u32 4294901760, %v13274_v43 }
 0x49f   :  { %10396 = vmatprep.mubr.f32.mxu1 %v7505_v13  ;;  %10359 = vmatprep.subr.mxu0 %v13110_v10 }
 0x4a0   :  { %10394 = vmatprep.subr.mxu1 %v13152_v7  ;;  %10360 = vmatpush3.msra.mxu0 %v13110_v10  ;;  %v7517_v10 = vand.u32 4294901760, %v7516_v59  ;;  %v8111_v9 = vsub.f32 %v13274_v43, %v8110_v30 }
 0x4a1   :  { %10395 = vmatpush3.msra.mxu1 %v13152_v7  ;;  %10362 = vmatmul.mubr.f32.vlgmr.msra.gmra.mxu0 %v13141_v4 }
 0x4a2   :  { %10371 = vmatprep.subr.mxu0 %v13144_v23  ;;  %10397 = vmatmul.mubr.f32.vlgmr.msra.gmra.mxu1 %v7515_v55  ;;  %v8112_v24 = vand.u32 4294901760, %v8111_v9 }
 0x4a3   :  { %10406 = vmatprep.subr.mxu1 %v13144_v23  ;;  %10372 = vmatpush3.msra.mxu0 %v13144_v23 }
 0x4a4   :  { %10375 = vmatprep.mubr.f32.mxu0 %v7507_v14  ;;  %10407 = vmatpush3.msra.mxu1 %v13144_v23 }
 0x4a5   :  { %10410 = vmatprep.mubr.f32.mxu1 %v13190_v12  ;;  %10373 = vmatprep.subr.mxu0 %v13152_v7 }
 0x4a6   :  { %10408 = vmatprep.subr.mxu1 %v13152_v7  ;;  %10374 = vmatpush3.msra.mxu0 %v13152_v7 }
 0x4a7   :  { %10409 = vmatpush3.msra.mxu1 %v13152_v7  ;;  %10376 = vmatmul.mubr.f32.vlgmr.msra.gmra.mxu0 %v7517_v10 }
 0x4a8   :  { %10385 = vmatprep.subr.mxu0 %v13158_v37  ;;  %10411 = vmatmul.mubr.f32.vlgmr.msra.gmra.mxu1 %v7513_v62 }
 0x4a9   :  { %10386 = vmatpush3.msra.mxu0 %v13158_v37  ;;  %10389 = vmatprep.mubr.f32.mxu0 %v7504_v60 }
 0x4aa   :  { %10387 = vmatprep.subr.mxu0 %v13165_v63  ;;  %10424 = vmatprep.subr.mxu1 %v10504_v16 }
 0x4ab   :  { %10388 = vmatpush3.msra.mxu0 %v13165_v63  ;;  %10425 = vmatpush3.msra.mxu1 %v8091_v58 }
 0x4ac   :  { %10390 = vmatmul.mubr.f32.vlgmr.msra.gmra.mxu0 %v7514_v6  ;;  %10399 = vmatprep.subr.mxu0 %v13170_v40 }
 0x4ad   :  { %10400 = vmatpush3.msra.mxu0 %v13170_v40  ;;  %10403 = vmatprep.mubr.f32.mxu0 %v13190_v12 }
 0x4ae   :  { %10401 = vmatprep.subr.mxu0 %v13178_v20  ;;  %10426 = vmatprep.subr.mxu1 %v10504_v16 }
 0x4af   :  { %10402 = vmatpush3.msra.mxu0 %v13178_v20  ;;  %10427 = vmatpush3.msra.mxu1 %v8098_v36 }
 0x4b0   :  { %10404 = vmatmul.mubr.f32.vlgmr.msra.gmra.mxu0 %v7513_v62  ;;  %10413 = vmatprep.subr.mxu0 %v10504_v16 }
 0x4b1   :  { %10414 = vmatpush3.msra.mxu0 %v13237_v51  ;;  %10428 = vmatprep.subr.mxu1 %v10504_v16 }
 0x4b2   :  { %10415 = vmatprep.subr.mxu0 %v10504_v16  ;;  %10432 = vmatprep.mubr.msk.f32.mxu1 %vm10505_vm3, %v10504_v16 }
 0x4b3   :  { %10416 = vmatpush3.msra.mxu0 %v13245_v17  ;;  %10429 = vmatpush3.msra.mxu1 %v8105_v50 }
 0x4b4   :  { %10417 = vmatprep.subr.mxu0 %v10504_v16  ;;  %10430 = vmatprep.subr.mxu1 %v10504_v16 }
 0x4b5   :  { %10418 = vmatpush3.msra.mxu0 %v13254_v49  ;;  %10421 = vmatprep.mubr.msk.f32.mxu0 %vm10505_vm3, %v10504_v16 }
 0x4b6   :  { %10419 = vmatprep.subr.mxu0 %v10504_v16  ;;  %10431 = vmatpush3.msra.mxu1 %v8112_v24 }
 0x4b7   :  { %10420 = vmatpush3.msra.mxu0 %v13266_v42  ;;  %10446 = vmatprep.subr.mxu1 %v10504_v16 }
 0x4b8   :  { %10435 = vmatprep.subr.mxu0 %v10504_v16 }
 0x53c   :  { %v10300_v33 = vpop.f32.mrf.mxu1 }
 0x53e   :  { %v6577_v52 = vpop.f32.mrf.mxu1 }
 0x540   :  { %v10314_v4 = vpop.f32.mrf.mxu1 }
 0x542   :  { %v6741_v23 = vpop.f32.mrf.mxu1 }
 0x544   :  { %v10293_v38 = vpop.f32.mrf.mxu0  ;;  %v10328_v35 = vpop.f32.mrf.mxu1 }
 0x545   :  { %v6584_v48 = vadd.f32 %v10300_v33, %v10293_v38 }
 0x546   :  { %v6486_v8 = vpop.f32.mrf.mxu0  ;;  %v6905_v31 = vpop.f32.mrf.mxu1 }
 0x547   :  { %v6578_v57 = vadd.f32 %v6577_v52, %v6486_v8 }
 0x549   :  { %v10307_v7 = vpop.f32.mrf.mxu0 }
 0x54a   :  { %v10342_v41 = vpop.f32.mrf.mxu1  ;;  %v6667_v63 = vadd.f32 %v10307_v7, %v6584_v48 }
 0x54b   :  { %v6659_v21 = vpop.f32.mrf.mxu0 }
 0x54c   :  { %v7085_v37 = vpop.f32.mrf.mxu1  ;;  %v6660_v46 = vadd.f32 %v6659_v21, %v6578_v57  ;;  %v6750_v20 = vadd.f32 %v10314_v4, %v6667_v63 }
 0x54e   :  { %v6742_v54 = vadd.f32 %v6741_v23, %v6660_v46 }
 0x54f   :  { %v10321_v5 = vpop.f32.mrf.mxu0 }
 0x550   :  { %v10356_v40 = vpop.f32.mrf.mxu1  ;;  %v6833_v47 = vadd.f32 %v10321_v5, %v6750_v20  ;;  %v8527_v5 = vld [vmem:[%s13359_s5] ss:$0 sm:$0xff] }
 0x551   :  { %v6826_v28 = vpop.f32.mrf.mxu0 }
 0x552   :  { %v7249_v25 = vpop.f32.mrf.mxu1  ;;  %v6827_v56 = vadd.f32 %v6826_v28, %v6742_v54  ;;  %v6912_v19 = vadd.f32 %v10328_v35, %v6833_v47 }
 0x554   :  { %v6906_v22 = vadd.f32 %v6905_v31, %v6827_v56 }
 0x555   :  { %v10335_v34 = vpop.f32.mrf.mxu0 }
 0x556   :  { %v10370_v12 = vpop.f32.mrf.mxu1  ;;  %v7005_v6 = vadd.f32 %v10335_v34, %v6912_v19 }
 0x557   :  { %v6994_v3 = vpop.f32.mrf.mxu0 }
 0x558   :  { %v7413_v62 = vpop.f32.mrf.mxu1  ;;  %v6995_v55 = vadd.f32 %v6994_v3, %v6906_v22  ;;  %v7092_v59 = vadd.f32 %v10342_v41, %v7005_v6 }
 0x55a   :  { %v7086_v53 = vadd.f32 %v7085_v37, %v6995_v55 }
 0x55b   :  { %v10349_v44 = vpop.f32.mrf.mxu0 }
 0x55c   :  { %v10384_v13 = vpop.f32.mrf.mxu1  ;;  %v7175_v27 = vadd.f32 %v10349_v44, %v7092_v59 }
 0x55d   :  { %v7167_v60 = vpop.f32.mrf.mxu0 }
 0x55e   :  { %v7600_v10 = vpop.f32.mrf.mxu1  ;;  %v7168_v18 = vadd.f32 %v7167_v60, %v7086_v53  ;;  %v7258_v32 = vadd.f32 %v10356_v40, %v7175_v27 }
 0x560   :  { %v7250_v9 = vadd.f32 %v7249_v25, %v7168_v18 }
 0x561   :  { %v10363_v29 = vpop.f32.mrf.mxu0 }
 0x562   :  { %v10398_v11 = vpop.f32.mrf.mxu1  ;;  %v7341_v4 = vadd.f32 %v10363_v29, %v7258_v32 }
 0x563   :  { %v7334_v14 = vpop.f32.mrf.mxu0 }
 0x564   :  { %v7764_v26 = vpop.f32.mrf.mxu1  ;;  %v7335_v31 = vadd.f32 %v7334_v14, %v7250_v9  ;;  %v7420_v37 = vadd.f32 %v10370_v12, %v7341_v4 }
 0x566   :  { %v7414_v40 = vadd.f32 %v7413_v62, %v7335_v31 }
 0x567   :  { %v10377_v39 = vpop.f32.mrf.mxu0 }
 0x568   :  { %v7607_v36 = vadd.f32 %v10384_v13, %v10377_v39  ;;  %v10412_v35 = vpop.f32.mrf.mxu1 }
 0x569   :  { %v7509_v58 = vpop.f32.mrf.mxu0 }
 0x56a   :  { %v7601_v24 = vadd.f32 %v7600_v10, %v7509_v58  ;;  %v7928_v63 = vpop.f32.mrf.mxu1 }
 0x56c   :  { %v10391_v50 = vpop.f32.mrf.mxu0 }
 0x56d   :  { %v7690_v33 = vadd.f32 %v10391_v50, %v7607_v36 }
 0x56e   :  { %v7682_v52 = vpop.f32.mrf.mxu0 }
 0x56f   :  { %v7683_v23 = vadd.f32 %v7682_v52, %v7601_v24  ;;  %v7773_v38 = vadd.f32 %v10398_v11, %v7690_v33 }
 0x570   :  { %v10405_v8 = vpop.f32.mrf.mxu0 }
 0x571   :  { %v7856_v7 = vadd.f32 %v10405_v8, %v7773_v38  ;;  %v7765_v41 = vadd.f32 %v7764_v26, %v7683_v23 }
 0x572   :  { %v7849_v21 = vpop.f32.mrf.mxu0 }
 0x573   :  { %v7935_v48 = vadd.f32 %v10412_v35, %v7856_v7  ;;  %v7850_v57 = vadd.f32 %v7849_v21, %v7765_v41 }
 0x575   :  { %v7939_v46 = vadd.f32 %v7935_v48, %v7420_v37  ;;  %v7929_v28 = vadd.f32 %v7928_v63, %v7850_v57 }
 0x577   :  { %v7948_v20 = vadd.f32 %v8527_v5, %v7939_v46  ;;  %v7938_v25 = vadd.f32 %v7929_v28, %v7414_v40 }
 0x579   :  { %v7950_v54 = vmax.f32 %v7948_v20, 0.0  ;;  %v7947_v34 = vadd.f32 %v8527_v5, %v7938_v25 }
 0x57b   :  { %v7959_v47 = vsel %vm7951_vm4, %v7950_v54, -inf  ;;  %v7949_v3 = vmax.f32 %v7947_v34, 0.0 }
 0x57c   :  { %v7960_v56 = vrot.slane %v7959_v47, 4 }
 0x57d   :  { %v7952_v12 = vsel %vm7951_vm4, %v7949_v3, -inf }
 0x57e   :  { %v7961_v19 = vmax.f32 %v7959_v47, %v7960_v56  ;;  %v7953_v44 = vrot.slane %v7952_v12, 4 }
 0x580   :  { %v7962_v22 = vrot.slane %v7961_v19, 2  ;;  %v7954_v60 = vmax.f32 %v7952_v12, %v7953_v44 }
 0x582   :  { %v7963_v6 = vmax.f32 %v7961_v19, %v7962_v22  ;;  %v7955_v13 = vrot.slane %v7954_v60, 2 }
 0x584   :  { %v7964_v62 = vrot.slane %v7963_v6, 1  ;;  %v7956_v55 = vmax.f32 %v7954_v60, %v7955_v13 }
 0x586   :  { %v7957_v29 = vrot.slane %v7956_v55, 1  ;;  %v7965_v59 = vmax.f32 %v7963_v6, %v7964_v62 }
 0x588   :  { %v7958_v14 = vmax.f32 %v7956_v55, %v7957_v29 }
 0x58a   :  { %v7980_v10 = vsel %vm7979_vm5, %v7965_v59, %v7958_v14 }
 0x58b   :  { %v7981_v53 = vsel %vm7951_vm4, %v7980_v10, 0 }
 0x58c   :  { %v8052_v27 = vand.u32 4294901760, %v7981_v53 }
 0x58e   :  { %v8053_v39 = vsub.f32 %v7981_v53, %v8052_v27  ;;  %10433 = vmatmul.mubr.f32.vlgmr.msra.gmra.mxu1 %v8052_v27 }
 0x58f   :  { %10447 = vmatpush3.msra.mxu1 %v13237_v51  ;;  %10454 = vmatprep.mubr.msk.f32.mxu1 %vm10505_vm3, %v10504_v16 }
 0x590   :  { %10448 = vmatprep.subr.mxu1 %v10504_v16  ;;  %v8054_v11 = vand.u32 4294901760, %v8053_v39 }
 0x591   :  { %10449 = vmatpush3.msra.mxu1 %v13245_v17 }
 0x592   :  { %10450 = vmatprep.subr.mxu1 %v10504_v16  ;;  %v8055_v18 = vsub.f32 %v8053_v39, %v8054_v11 }
 0x593   :  { %10451 = vmatpush3.msra.mxu1 %v13254_v49 }
 0x594   :  { %10452 = vmatprep.subr.mxu1 %v10504_v16  ;;  %v8056_v58 = vand.u32 4294901760, %v8055_v18 }
 0x595   :  { %10453 = vmatpush3.msra.mxu1 %v13266_v42 }
 0x596   :  { %10455 = vmatmul.mubr.f32.vlgmr.msra.gmra.mxu1 %v8054_v11  ;;  %10468 = vmatprep.subr.mxu1 %v10504_v16 }
 0x597   :  { %10422 = vmatmul.mubr.f32.vlgmr.msra.gmra.mxu0 %v8056_v58  ;;  %10469 = vmatpush3.msra.mxu1 %v13237_v51 }
 0x598   :  { %10436 = vmatpush3.msra.mxu0 %v13243_v2  ;;  %10470 = vmatprep.subr.mxu1 %v10504_v16 }
 0x599   :  { %10437 = vmatprep.subr.mxu0 %v10504_v16  ;;  %10471 = vmatpush3.msra.mxu1 %v13245_v17 }
 0x59a   :  { %10438 = vmatpush3.msra.mxu0 %v13252_v0  ;;  %10472 = vmatprep.subr.mxu1 %v10504_v16  ;;  %v8528_v0 = vld [vmem:[%s13361_s7] ss:$0 sm:$0xff] }
 0x59b   :  { %10439 = vmatprep.subr.mxu0 %v10504_v16  ;;  %10473 = vmatpush3.msra.mxu1 %v13254_v49 }
 0x59c   :  { %10440 = vmatpush3.msra.mxu0 %v13264_v1  ;;  %10474 = vmatprep.subr.mxu1 %v10504_v16 }
 0x59d   :  { %10441 = vmatprep.subr.mxu0 %v10504_v16  ;;  %10443 = vmatprep.mubr.msk.f32.mxu0 %vm10505_vm3, %v10504_v16 }
 0x59e   :  { %10442 = vmatpush3.msra.mxu0 %v13274_v43  ;;  %10475 = vmatpush3.msra.mxu1 %v13266_v42 }
 0x59f   :  { %10476 = vmatprep.mubr.msk.f32.mxu1 %vm10505_vm3, %v10504_v16  ;;  %10444 = vmatmul.mubr.f32.vlgmr.msra.gmra.mxu0 %v8053_v39 }
 0x5a0   :  { %10457 = vmatprep.subr.mxu0 %v10504_v16  ;;  %10477 = vmatmul.mubr.f32.vlgmr.msra.gmra.mxu1 %v8052_v27 }
 0x5a1   :  { %10458 = vmatpush3.msra.mxu0 %v8089_v45  ;;  %10465 = vmatprep.mubr.msk.f32.mxu0 %vm10505_vm3, %v10504_v16 }
 0x5a2   :  { %10459 = vmatprep.subr.mxu0 %v10504_v16 }
 0x5a3   :  { %10460 = vmatpush3.msra.mxu0 %v8096_v15 }
 0x5a4   :  { %10461 = vmatprep.subr.mxu0 %v10504_v16 }
 0x5a5   :  { %10462 = vmatpush3.msra.mxu0 %v8103_v61 }
 0x5a6   :  { %10463 = vmatprep.subr.mxu0 %v10504_v16 }
 0x5a7   :  { %10464 = vmatpush3.msra.mxu0 %v8110_v30 }
 0x5a8   :  { %10466 = vmatmul.mubr.f32.vlgmr.msra.gmra.mxu0 %v8052_v27 }
 0x64e   :  { %v8149_v51 = vpop.f32.mrf.mxu1 }
 0x650   :  { %v10434_v2 = vpop.f32.mrf.mxu1 }
 0x656   :  { %v8306_v17 = vpop.f32.mrf.mxu1 }
 0x657   :  { %v8058_v45 = vpop.f32.mrf.mxu0 }
 0x658   :  { %v10456_v49 = vpop.f32.mrf.mxu1  ;;  %v8059_v15 = vadd.f32 %v8528_v0, %v8058_v45 }
 0x659   :  { %v10423_v42 = vpop.f32.mrf.mxu0 }
 0x65a   :  { %v8150_v61 = vadd.f32 %v8149_v51, %v8059_v15 }
 0x65f   :  { %v8229_v32 = vpop.f32.mrf.mxu0 }
 0x660   :  { %v8464_v1 = vpop.f32.mrf.mxu1  ;;  %v8230_v26 = vadd.f32 %v8229_v32, %v8150_v61 }
 0x661   :  { %v10445_v36 = vpop.f32.mrf.mxu0 }
 0x662   :  { %v10478_v16 = vpop.f32.mrf.mxu1  ;;  %v8307_v43 = vadd.f32 %v8306_v17, %v8230_v26 }
 0x668   :  { %v8389_v30 = vpop.f32.mrf.mxu0 }
 0x669   :  { %v8390_v50 = vadd.f32 %v8389_v30, %v8307_v43 }
 0x66a   :  { %v10467_v9 = vpop.f32.mrf.mxu0 }
 0x66b   :  { %v8465_v24 = vadd.f32 %v8464_v1, %v8390_v50 }
 0x66d   :  { %8469 = vst.msk [vmem:[#allocation2] sm:$0x3] %vm8468_vm6, %v8465_v24 }
 0x66e   :  { %10493 = shalt.err (!%p10490_p4)
}
 0x66f   :  { %8479 = dma.vmem_to_hbm [thread:$0]  %s8477_s16, 32, %s13362_s8, [#allocation3]  }
 0x670   :  { %10502 = dma.done.wait [#allocation3], 32  }
 0x671   :  { %10503 = vsyncadd [#allocation3], 4294967264 }
 0x672   :  { %8483 = vsyncpa [#allocation3], 1 }

</bundles_post_ra>
